<compile_context>
chip_gen: v7x
topology: tpu7x:2x2x1
jax: 0.10.0
libtpu: 0.0.40
codegen_flags: <defaults>
</compile_context>

<pallas_src>
import jax
import jax.numpy as jnp
from jax.experimental import pallas as pl
from jax.experimental.pallas import tpu as pltpu

C_PAD = 128          # conv output channels padded to one full lane width
LIN_K = 7776         # 96 * 9 * 9  (PyTorch NCHW flatten)
LIN_K_PAD = 8192     # zero-padded so the linear GEMM K-tiles in 128 multiples
LIN_N = 512


# ---------------------------------------------------------------------------
# Pallas kernels (hot paths)
# ---------------------------------------------------------------------------
def _gemm_bias_relu_kernel(a_ref, b_ref, bias_ref, o_ref, acc_ref):
    """K-tiled GEMM: bf16 operands on the MXU, f32 accumulation, fused bias+ReLU."""
    @pl.when(pl.program_id(1) == 0)
    def _():
        acc_ref[...] = jnp.zeros_like(acc_ref)

    acc_ref[...] += jnp.dot(a_ref[...], b_ref[...],
                            preferred_element_type=jnp.float32)

    @pl.when(pl.program_id(1) == pl.num_programs(1) - 1)
    def _():
        o_ref[...] = jnp.maximum(acc_ref[...] + bias_ref[...], 0.0).astype(o_ref.dtype)


def _maxpool9_kernel(x_ref, o_ref):
    # x_ref: (1, 9, M, C) — leading axis 1 is the flattened 3x3 window, so each
    # slice is a dense (M, 128) vreg tile; reduction stays on the VPU.
    m = x_ref[0, 0, :, :]
    for k in range(1, 9):
        m = jnp.maximum(m, x_ref[0, k, :, :])
    o_ref[0, :, :] = m


# ---------------------------------------------------------------------------
# Pallas wrappers
# ---------------------------------------------------------------------------
def _largest_tile(dim, step, cap):
    """Largest multiple of `step` that divides `dim` and is <= cap (else None)."""
    best = None
    d = step
    while d <= cap:
        if dim % d == 0:
            best = d
        d += step
    return best


def gemm_bias_relu(a, b, bias2d, out_dtype=jnp.float32):
    """ReLU(a @ b + bias): a (M,K) / b (K,N) in bf16 on the MXU, f32 accumulate."""
    m, k = a.shape
    k2, n = b.shape
    assert k == k2 and bias2d.shape == (1, n)

    a = a.astype(jnp.bfloat16)
    b = b.astype(jnp.bfloat16)
    bias2d = bias2d.astype(jnp.float32)

    # M tile: whole extent when small (avoids 49-step micro-grids), otherwise the
    # largest multiple-of-8 divisor <= 1024 (keeps >=2 M tiles for megacore).
    tm = m if m <= 1024 else (_largest_tile(m, 8, 1024) or m)
    # K tile: keep the whole contraction resident if it is small; otherwise
    # stream 128-multiple slabs so the (tk, N) weight block is ~1 MB and its
    # DMA overlaps MXU work (fits v7x's 64 MiB VMEM with the default limit).
    tk = k if k <= 2048 else (_largest_tile(k, 128, 1024) or k)

    grid = (m // tm, k // tk)
    return pl.pallas_call(
        _gemm_bias_relu_kernel,
        out_shape=jax.ShapeDtypeStruct((m, n), out_dtype),
        grid=grid,
        in_specs=[
            pl.BlockSpec((tm, tk), lambda i, kk: (i, kk)),
            pl.BlockSpec((tk, n), lambda i, kk: (kk, 0)),
            pl.BlockSpec((1, n), lambda i, kk: (0, 0)),
        ],
        out_specs=pl.BlockSpec((tm, n), lambda i, kk: (i, 0)),
        scratch_shapes=[pltpu.VMEM((tm, n), jnp.float32)],
        compiler_params=pltpu.CompilerParams(
            dimension_semantics=("parallel", "arbitrary"),
        ),
    )(a, b, bias2d)


def maxpool_3x3_stride3(x):
    """nn.MaxPool2d((3,3)) (stride 3, floor) on NHWC input, via Pallas kernel."""
    n, h, w, c = x.shape
    ho, wo = h // 3, w // 3
    # glue: gather windows as (N, 9, Ho*Wo, C): window index leads, (M, C) dense.
    xw = (
        x[:, : ho * 3, : wo * 3, :]
        .reshape(n, ho, 3, wo, 3, c)
        .transpose(0, 2, 4, 1, 3, 5)          # (n, dy, dx, ho, wo, c)
        .reshape(n, 9, ho * wo, c)
    )
    y = pl.pallas_call(
        _maxpool9_kernel,
        out_shape=jax.ShapeDtypeStruct((n, ho * wo, c), x.dtype),
        grid=(n,),
        in_specs=[pl.BlockSpec((1, 9, ho * wo, c), lambda i: (i, 0, 0, 0))],
        out_specs=pl.BlockSpec((1, ho * wo, c), lambda i: (i, 0, 0)),
        compiler_params=pltpu.CompilerParams(dimension_semantics=("parallel",)),
    )(xw)
    return y.reshape(n, ho, wo, c)


# ---------------------------------------------------------------------------
# Conv = im2col (glue) + Pallas GEMM (output channels padded to 128 lanes)
# ---------------------------------------------------------------------------
def _im2col_3x3_pad1(x):
    n, h, w, c = x.shape
    xp = jnp.pad(x, ((0, 0), (1, 1), (1, 1), (0, 0)))
    cols = [xp[:, ky:ky + h, kx:kx + w, :] for ky in range(3) for kx in range(3)]
    patches = jnp.stack(cols, axis=3)            # (N, H, W, 9, C), order (ky,kx,c)
    return patches.reshape(n * h * w, 9 * c)


def conv3x3_relu(x, wmat, bias2d):
    """Conv2d(k=3, padding=1) + ReLU on NHWC input whose channel dim matches wmat.

    wmat: (9*Cin, 128) bf16 (pre-padded), bias2d: (1, 128) f32.  Output is bf16
    NHWC with 128 (zero-padded) channels — lane-dense for stores & downstream use.
    """
    n, h, w, _ = x.shape
    # TODO(synk): for the 9x9 layers the im2col + GEMM could be fused into one
    # VMEM-resident pallas_call (patches formed in-kernel) to cut launch overhead
    # and the 9x activation expansion HBM traffic.
    patches = _im2col_3x3_pad1(x)                                  # glue only
    y = gemm_bias_relu(patches, wmat, bias2d, out_dtype=jnp.bfloat16)
    return y.reshape(n, h, w, C_PAD)


# ---------------------------------------------------------------------------
# Parameters (PyTorch layout) + one-time kernel-ready preparation
# ---------------------------------------------------------------------------
def init_params(key):
    ks = jax.random.split(key, 10)

    def conv_w(k, cout, cin):
        return 0.05 * jax.random.normal(k, (cout, cin, 3, 3), jnp.float32)

    def bias_v(k, cout):
        return 0.01 * jax.random.normal(k, (cout,), jnp.float32)

    return dict(
        w1=conv_w(ks[0], 24, 1), b1=bias_v(ks[1], 24),
        w2=conv_w(ks[2], 64, 24), b2=bias_v(ks[3], 64),
        w3=conv_w(ks[4], 96, 64), b3=bias_v(ks[5], 96),
        w4=conv_w(ks[6], 96, 96), b4=bias_v(ks[7], 96),
        wl=0.02 * jax.random.normal(ks[8], (512, LIN_K), jnp.float32),
        bl=0.01 * jax.random.normal(ks[9], (512,), jnp.float32),
    )


def prepare_params(p):
    """One-time: reshape/transpose/zero-pad weights and cast matmul operands to bf16."""
    def conv_prep(w_oihw, b, cin_pad):
        cout, cin, kh, kw = w_oihw.shape
        wm = jnp.transpose(w_oihw, (2, 3, 1, 0))                 # (3,3,cin,cout)
        wm = jnp.pad(wm, ((0, 0), (0, 0), (0, cin_pad - cin), (0, C_PAD - cout)))
        wm = wm.reshape(kh * kw * cin_pad, C_PAD).astype(jnp.bfloat16)
        bm = jnp.pad(b, (0, C_PAD - cout)).reshape(1, C_PAD).astype(jnp.float32)
        return wm, bm

    w1, b1 = conv_prep(p["w1"], p["b1"], cin_pad=1)      # first layer: cin stays 1
    w2, b2 = conv_prep(p["w2"], p["b2"], cin_pad=C_PAD)  # padded activations feed in
    w3, b3 = conv_prep(p["w3"], p["b3"], cin_pad=C_PAD)
    w4, b4 = conv_prep(p["w4"], p["b4"], cin_pad=C_PAD)
    # Linear: pre-transpose once to (7776, 512), zero-pad K to 8192, store bf16.
    wl = jnp.pad(p["wl"].T, ((0, LIN_K_PAD - LIN_K), (0, 0))).astype(jnp.bfloat16)
    bl = p["bl"].reshape(1, LIN_N).astype(jnp.float32)
    return dict(w1=w1, b1=b1, w2=w2, b2=b2, w3=w3, b3=b3, w4=w4, b4=b4,
                wl=wl, bl=bl)


# ---------------------------------------------------------------------------
# FeatureNetwork forward
# ---------------------------------------------------------------------------
def feature_network(x_nchw, kp):
    n = x_nchw.shape[0]
    x = jnp.transpose(x_nchw, (0, 2, 3, 1)).astype(jnp.bfloat16)  # NCHW -> NHWC
    # TODO(synk): conv1 (cin=1, K=9) under-fills the MXU contraction; a VPU
    # shift-add formulation fused with the pool would remove the padded-K pass.
    x = conv3x3_relu(x, kp["w1"], kp["b1"])                       # (N, 28, 28, 128)
    x = maxpool_3x3_stride3(x)                                    # (N, 9, 9, 128)
    x = conv3x3_relu(x, kp["w2"], kp["b2"])                       # (N, 9, 9, 128)
    x = conv3x3_relu(x, kp["w3"], kp["b3"])                       # (N, 9, 9, 128)
    x = conv3x3_relu(x, kp["w4"], kp["b4"])                       # (N, 9, 9, 128)
    # PyTorch nn.Flatten() operates on NCHW of the real 96 channels -> (N, 7776)
    x = x[..., :96]
    x_flat = jnp.transpose(x, (0, 3, 1, 2)).reshape(n, LIN_K)
    x_flat = jnp.pad(x_flat, ((0, 0), (0, LIN_K_PAD - LIN_K)))    # zero-pad K
    # nn.Linear(7776, 512) + ReLU, K-tiled bf16 GEMM with f32 accumulation.
    return gemm_bias_relu(x_flat, kp["wl"], kp["bl"], out_dtype=jnp.float32)


if __name__ == "__main__":
    key = jax.random.PRNGKey(0)
    pkey, xkey = jax.random.split(key)
    raw_params = init_params(pkey)
    kparams = prepare_params(raw_params)   # one-time weight prep (outside forward)
    # MNIST-shaped input: Linear(7776, 512) requires 28x28 spatial size.
    x = jax.random.normal(xkey, (2, 1, 28, 28), jnp.float32)

    out = jax.jit(feature_network)(x, kparams)
    out = jax.block_until_ready(out)

    assert out.shape == (2, 512), out.shape
    assert out.dtype == jnp.float32
    assert bool(jnp.all(out >= 0.0))           # final ReLU
    assert bool(jnp.all(jnp.isfinite(out)))
    print("KERNEL_OK")
</pallas_src>

<mosaic_0001>
module attributes {stable_mosaic.version = 11 : i64} {
  func.func @_gemm_bias_relu_kernel(%arg0: i32, %arg1: i32, %arg2: memref<784x9xbf16, #tpu.memory_space<vmem>>, %arg3: memref<9x128xbf16, #tpu.memory_space<vmem>>, %arg4: memref<1x128xf32, #tpu.memory_space<vmem>>, %arg5: memref<784x128xbf16, #tpu.memory_space<vmem>>, %arg6: memref<784x128xf32, #tpu.memory_space<vmem>>) attributes {dimension_semantics = [#tpu.dimension_semantics<parallel>, #tpu.dimension_semantics<arbitrary>], iteration_bounds = array<i64: 2, 1>, scalar_prefetch = 0 : i64, scratch_operands = 1 : i64, tpu.core_type = #tpu.core_type<tc>, window_params = [{transform_indices = @transform_0, window_bounds = array<i64: 784, 9>}, {transform_indices = @transform_1, window_bounds = array<i64: 9, 128>}, {pipeline_mode = #tpu.pipeline_mode<synchronous>, transform_indices = @transform_2, window_bounds = array<i64: 1, 128>}, {transform_indices = @transform_3, window_bounds = array<i64: 784, 128>}]} {
    %c0_i32 = arith.constant 0 : i32
    %0 = arith.cmpi eq, %arg1, %c0_i32 : i32
    %1 = arith.extui %0 : i1 to i32
    %c0_i32_0 = arith.constant 0 : i32
    %2 = arith.cmpi ne, %1, %c0_i32_0 : i32
    scf.if %2 {
      %cst_10 = arith.constant 0.000000e+00 : f32
      %12 = vector.broadcast %cst_10 : f32 to vector<784x128xf32>
      %c0_11 = arith.constant 0 : index
      %c0_12 = arith.constant 0 : index
      %13 = vector.load %arg6[%c0_11, %c0_12] : memref<784x128xf32, #tpu.memory_space<vmem>>, vector<784x128xf32>
      tpu.vector_store %arg6[%c0_11, %c0_12], %12 {strides = array<i32>} : memref<784x128xf32, #tpu.memory_space<vmem>>, vector<784x128xf32>,
    } else {
    }
    %c0 = arith.constant 0 : index
    %c0_1 = arith.constant 0 : index
    %3 = vector.load %arg6[%c0, %c0_1] : memref<784x128xf32, #tpu.memory_space<vmem>>, vector<784x128xf32>
    %c0_2 = arith.constant 0 : index
    %c0_3 = arith.constant 0 : index
    %4 = vector.load %arg2[%c0_2, %c0_3] : memref<784x9xbf16, #tpu.memory_space<vmem>>, vector<784x9xbf16>
    %c0_4 = arith.constant 0 : index
    %c0_5 = arith.constant 0 : index
    %5 = vector.load %arg3[%c0_4, %c0_5] : memref<9x128xbf16, #tpu.memory_space<vmem>>, vector<9x128xbf16>
    %cst = arith.constant dense<0.000000e+00> : vector<784x128xf32>
    %6 = tpu.matmul %4, %5, %cst {dimension_numbers = #tpu.dot_dimension_numbers<[1], [0], [0], [1], [0, 0, 1, 1], [], []>} : vector<784x9xbf16>, vector<9x128xbf16>, vector<784x128xf32> -> vector<784x128xf32>
    %7 = arith.addf %3, %6 : vector<784x128xf32>
    %c0_6 = arith.constant 0 : index
    %c0_7 = arith.constant 0 : index
    %8 = vector.load %arg6[%c0_6, %c0_7] : memref<784x128xf32, #tpu.memory_space<vmem>>, vector<784x128xf32>
    tpu.vector_store %arg6[%c0_6, %c0_7], %7 {strides = array<i32>} : memref<784x128xf32, #tpu.memory_space<vmem>>, vector<784x128xf32>,
    %c0_i32_8 = arith.constant 0 : i32
    %9 = arith.cmpi eq, %arg1, %c0_i32_8 : i32
    %10 = arith.extui %9 : i1 to i32
    %c0_i32_9 = arith.constant 0 : i32
    %11 = arith.cmpi ne, %10, %c0_i32_9 : i32
    scf.if %11 {
      %c0_10 = arith.constant 0 : index
      %c0_11 = arith.constant 0 : index
      %12 = vector.load %arg6[%c0_10, %c0_11] : memref<784x128xf32, #tpu.memory_space<vmem>>, vector<784x128xf32>
      %c0_12 = arith.constant 0 : index
      %c0_13 = arith.constant 0 : index
      %13 = vector.load %arg4[%c0_12, %c0_13] : memref<1x128xf32, #tpu.memory_space<vmem>>, vector<1x128xf32>
      %14 = vector.broadcast %13 : vector<1x128xf32> to vector<784x128xf32>
      %15 = arith.addf %12, %14 : vector<784x128xf32>
      %cst_14 = arith.constant 0.000000e+00 : f32
      %16 = vector.broadcast %cst_14 : f32 to vector<784x128xf32>
      %17 = arith.maximumf %15, %16 : vector<784x128xf32>
      %18 = arith.truncf %17 : vector<784x128xf32> to vector<784x128xbf16>
      %c0_15 = arith.constant 0 : index
      %c0_16 = arith.constant 0 : index
      %19 = vector.load %arg5[%c0_15, %c0_16] : memref<784x128xbf16, #tpu.memory_space<vmem>>, vector<784x128xbf16>
      tpu.vector_store %arg5[%c0_15, %c0_16], %18 {strides = array<i32>} : memref<784x128xbf16, #tpu.memory_space<vmem>>, vector<784x128xbf16>,
    } else {
    }
    return
  }
  func.func @transform_0(%arg0: i32, %arg1: i32) -> (i32, i32) {
    %c0_i32 = arith.constant 0 : i32
    return %arg0, %arg1 : i32, i32
  }
  func.func @transform_1(%arg0: i32, %arg1: i32) -> (i32, i32) {
    %c0_i32 = arith.constant 0 : i32
    %c0_i32_0 = arith.constant 0 : i32
    return %arg1, %c0_i32 : i32, i32
  }
  func.func @transform_2(%arg0: i32, %arg1: i32) -> (i32, i32) {
    %c0_i32 = arith.constant 0 : i32
    %c0_i32_0 = arith.constant 0 : i32
    %c0_i32_1 = arith.constant 0 : i32
    return %c0_i32, %c0_i32_0 : i32, i32
  }
  func.func @transform_3(%arg0: i32, %arg1: i32) -> (i32, i32) {
    %c0_i32 = arith.constant 0 : i32
    %c0_i32_0 = arith.constant 0 : i32
    return %arg0, %c0_i32 : i32, i32
  }
}

module attributes {stable_mosaic.version = 11 : i64} {
  func.func @_maxpool9_kernel(%arg0: i32, %arg1: memref<1x9x81x128xbf16, #tpu.memory_space<vmem>>, %arg2: memref<1x81x128xbf16, #tpu.memory_space<vmem>>) attributes {dimension_semantics = [#tpu.dimension_semantics<parallel>], iteration_bounds = array<i64: 2>, scalar_prefetch = 0 : i64, scratch_operands = 0 : i64, tpu.core_type = #tpu.core_type<tc>, window_params = [{transform_indices = @transform_0, window_bounds = array<i64: 1, 9, 81, 128>}, {transform_indices = @transform_1, window_bounds = array<i64: 1, 81, 128>}]} {
    %c0 = arith.constant 0 : index
    %c0_0 = arith.constant 0 : index
    %c0_1 = arith.constant 0 : index
    %c0_2 = arith.constant 0 : index
    %0 = vector.load %arg1[%c0, %c0_0, %c0_1, %c0_2] : memref<1x9x81x128xbf16, #tpu.memory_space<vmem>>, vector<1x1x81x128xbf16>
    %1 = vector.shape_cast %0 : vector<1x1x81x128xbf16> to vector<81x128xbf16>
    %c0_3 = arith.constant 0 : index
    %c1 = arith.constant 1 : index
    %c0_4 = arith.constant 0 : index
    %c0_5 = arith.constant 0 : index
    %2 = vector.load %arg1[%c0_3, %c1, %c0_4, %c0_5] : memref<1x9x81x128xbf16, #tpu.memory_space<vmem>>, vector<1x1x81x128xbf16>
    %3 = vector.shape_cast %2 : vector<1x1x81x128xbf16> to vector<81x128xbf16>
    %4 = arith.maximumf %1, %3 : vector<81x128xbf16>
    %c0_6 = arith.constant 0 : index
    %c2 = arith.constant 2 : index
    %c0_7 = arith.constant 0 : index
    %c0_8 = arith.constant 0 : index
    %5 = vector.load %arg1[%c0_6, %c2, %c0_7, %c0_8] : memref<1x9x81x128xbf16, #tpu.memory_space<vmem>>, vector<1x1x81x128xbf16>
    %6 = vector.shape_cast %5 : vector<1x1x81x128xbf16> to vector<81x128xbf16>
    %7 = arith.maximumf %4, %6 : vector<81x128xbf16>
    %c0_9 = arith.constant 0 : index
    %c3 = arith.constant 3 : index
    %c0_10 = arith.constant 0 : index
    %c0_11 = arith.constant 0 : index
    %8 = vector.load %arg1[%c0_9, %c3, %c0_10, %c0_11] : memref<1x9x81x128xbf16, #tpu.memory_space<vmem>>, vector<1x1x81x128xbf16>
    %9 = vector.shape_cast %8 : vector<1x1x81x128xbf16> to vector<81x128xbf16>
    %10 = arith.maximumf %7, %9 : vector<81x128xbf16>
    %c0_12 = arith.constant 0 : index
    %c4 = arith.constant 4 : index
    %c0_13 = arith.constant 0 : index
    %c0_14 = arith.constant 0 : index
    %11 = vector.load %arg1[%c0_12, %c4, %c0_13, %c0_14] : memref<1x9x81x128xbf16, #tpu.memory_space<vmem>>, vector<1x1x81x128xbf16>
    %12 = vector.shape_cast %11 : vector<1x1x81x128xbf16> to vector<81x128xbf16>
    %13 = arith.maximumf %10, %12 : vector<81x128xbf16>
    %c0_15 = arith.constant 0 : index
    %c5 = arith.constant 5 : index
    %c0_16 = arith.constant 0 : index
    %c0_17 = arith.constant 0 : index
    %14 = vector.load %arg1[%c0_15, %c5, %c0_16, %c0_17] : memref<1x9x81x128xbf16, #tpu.memory_space<vmem>>, vector<1x1x81x128xbf16>
    %15 = vector.shape_cast %14 : vector<1x1x81x128xbf16> to vector<81x128xbf16>
    %16 = arith.maximumf %13, %15 : vector<81x128xbf16>
    %c0_18 = arith.constant 0 : index
    %c6 = arith.constant 6 : index
    %c0_19 = arith.constant 0 : index
    %c0_20 = arith.constant 0 : index
    %17 = vector.load %arg1[%c0_18, %c6, %c0_19, %c0_20] : memref<1x9x81x128xbf16, #tpu.memory_space<vmem>>, vector<1x1x81x128xbf16>
    %18 = vector.shape_cast %17 : vector<1x1x81x128xbf16> to vector<81x128xbf16>
    %19 = arith.maximumf %16, %18 : vector<81x128xbf16>
    %c0_21 = arith.constant 0 : index
    %c7 = arith.constant 7 : index
    %c0_22 = arith.constant 0 : index
    %c0_23 = arith.constant 0 : index
    %20 = vector.load %arg1[%c0_21, %c7, %c0_22, %c0_23] : memref<1x9x81x128xbf16, #tpu.memory_space<vmem>>, vector<1x1x81x128xbf16>
    %21 = vector.shape_cast %20 : vector<1x1x81x128xbf16> to vector<81x128xbf16>
    %22 = arith.maximumf %19, %21 : vector<81x128xbf16>
    %c0_24 = arith.constant 0 : index
    %c8 = arith.constant 8 : index
    %c0_25 = arith.constant 0 : index
    %c0_26 = arith.constant 0 : index
    %23 = vector.load %arg1[%c0_24, %c8, %c0_25, %c0_26] : memref<1x9x81x128xbf16, #tpu.memory_space<vmem>>, vector<1x1x81x128xbf16>
    %24 = vector.shape_cast %23 : vector<1x1x81x128xbf16> to vector<81x128xbf16>
    %25 = arith.maximumf %22, %24 : vector<81x128xbf16>
    %c0_27 = arith.constant 0 : index
    %c0_28 = arith.constant 0 : index
    %c0_29 = arith.constant 0 : index
    %26 = vector.load %arg2[%c0_27, %c0_28, %c0_29] : memref<1x81x128xbf16, #tpu.memory_space<vmem>>, vector<1x81x128xbf16>
    %27 = vector.shape_cast %26 : vector<1x81x128xbf16> to vector<81x128xbf16>
    %28 = vector.shape_cast %25 : vector<81x128xbf16> to vector<1x81x128xbf16>
    tpu.vector_store %arg2[%c0_27, %c0_28, %c0_29], %28 {strides = array<i32>} : memref<1x81x128xbf16, #tpu.memory_space<vmem>>, vector<1x81x128xbf16>,
    return
  }
  func.func @transform_0(%arg0: i32) -> (i32, i32, i32, i32) {
    %c0_i32 = arith.constant 0 : i32
    %c0_i32_0 = arith.constant 0 : i32
    %c0_i32_1 = arith.constant 0 : i32
    %c0_i32_2 = arith.constant 0 : i32
    return %arg0, %c0_i32, %c0_i32_0, %c0_i32_1 : i32, i32, i32, i32
  }
  func.func @transform_1(%arg0: i32) -> (i32, i32, i32) {
    %c0_i32 = arith.constant 0 : i32
    %c0_i32_0 = arith.constant 0 : i32
    %c0_i32_1 = arith.constant 0 : i32
    return %arg0, %c0_i32, %c0_i32_0 : i32, i32, i32
  }
}

module attributes {stable_mosaic.version = 11 : i64} {
  func.func @_gemm_bias_relu_kernel(%arg0: i32, %arg1: i32, %arg2: memref<162x1152xbf16, #tpu.memory_space<vmem>>, %arg3: memref<1152x128xbf16, #tpu.memory_space<vmem>>, %arg4: memref<1x128xf32, #tpu.memory_space<vmem>>, %arg5: memref<162x128xbf16, #tpu.memory_space<vmem>>, %arg6: memref<162x128xf32, #tpu.memory_space<vmem>>) attributes {dimension_semantics = [#tpu.dimension_semantics<parallel>, #tpu.dimension_semantics<arbitrary>], iteration_bounds = array<i64: 1, 1>, scalar_prefetch = 0 : i64, scratch_operands = 1 : i64, tpu.core_type = #tpu.core_type<tc>, window_params = [{transform_indices = @transform_0, window_bounds = array<i64: 162, 1152>}, {transform_indices = @transform_1, window_bounds = array<i64: 1152, 128>}, {pipeline_mode = #tpu.pipeline_mode<synchronous>, transform_indices = @transform_2, window_bounds = array<i64: 1, 128>}, {transform_indices = @transform_3, window_bounds = array<i64: 162, 128>}]} {
    %c0_i32 = arith.constant 0 : i32
    %0 = arith.cmpi eq, %arg1, %c0_i32 : i32
    %1 = arith.extui %0 : i1 to i32
    %c0_i32_0 = arith.constant 0 : i32
    %2 = arith.cmpi ne, %1, %c0_i32_0 : i32
    scf.if %2 {
      %cst_10 = arith.constant 0.000000e+00 : f32
      %12 = vector.broadcast %cst_10 : f32 to vector<162x128xf32>
      %c0_11 = arith.constant 0 : index
      %c0_12 = arith.constant 0 : index
      %13 = vector.load %arg6[%c0_11, %c0_12] : memref<162x128xf32, #tpu.memory_space<vmem>>, vector<162x128xf32>
      tpu.vector_store %arg6[%c0_11, %c0_12], %12 {strides = array<i32>} : memref<162x128xf32, #tpu.memory_space<vmem>>, vector<162x128xf32>,
    } else {
    }
    %c0 = arith.constant 0 : index
    %c0_1 = arith.constant 0 : index
    %3 = vector.load %arg6[%c0, %c0_1] : memref<162x128xf32, #tpu.memory_space<vmem>>, vector<162x128xf32>
    %c0_2 = arith.constant 0 : index
    %c0_3 = arith.constant 0 : index
    %4 = vector.load %arg2[%c0_2, %c0_3] : memref<162x1152xbf16, #tpu.memory_space<vmem>>, vector<162x1152xbf16>
    %c0_4 = arith.constant 0 : index
    %c0_5 = arith.constant 0 : index
    %5 = vector.load %arg3[%c0_4, %c0_5] : memref<1152x128xbf16, #tpu.memory_space<vmem>>, vector<1152x128xbf16>
    %cst = arith.constant dense<0.000000e+00> : vector<162x128xf32>
    %6 = tpu.matmul %4, %5, %cst {dimension_numbers = #tpu.dot_dimension_numbers<[1], [0], [0], [1], [0, 0, 1, 1], [], []>} : vector<162x1152xbf16>, vector<1152x128xbf16>, vector<162x128xf32> -> vector<162x128xf32>
    %7 = arith.addf %3, %6 : vector<162x128xf32>
    %c0_6 = arith.constant 0 : index
    %c0_7 = arith.constant 0 : index
    %8 = vector.load %arg6[%c0_6, %c0_7] : memref<162x128xf32, #tpu.memory_space<vmem>>, vector<162x128xf32>
    tpu.vector_store %arg6[%c0_6, %c0_7], %7 {strides = array<i32>} : memref<162x128xf32, #tpu.memory_space<vmem>>, vector<162x128xf32>,
    %c0_i32_8 = arith.constant 0 : i32
    %9 = arith.cmpi eq, %arg1, %c0_i32_8 : i32
    %10 = arith.extui %9 : i1 to i32
    %c0_i32_9 = arith.constant 0 : i32
    %11 = arith.cmpi ne, %10, %c0_i32_9 : i32
    scf.if %11 {
      %c0_10 = arith.constant 0 : index
      %c0_11 = arith.constant 0 : index
      %12 = vector.load %arg6[%c0_10, %c0_11] : memref<162x128xf32, #tpu.memory_space<vmem>>, vector<162x128xf32>
      %c0_12 = arith.constant 0 : index
      %c0_13 = arith.constant 0 : index
      %13 = vector.load %arg4[%c0_12, %c0_13] : memref<1x128xf32, #tpu.memory_space<vmem>>, vector<1x128xf32>
      %14 = vector.broadcast %13 : vector<1x128xf32> to vector<162x128xf32>
      %15 = arith.addf %12, %14 : vector<162x128xf32>
      %cst_14 = arith.constant 0.000000e+00 : f32
      %16 = vector.broadcast %cst_14 : f32 to vector<162x128xf32>
      %17 = arith.maximumf %15, %16 : vector<162x128xf32>
      %18 = arith.truncf %17 : vector<162x128xf32> to vector<162x128xbf16>
      %c0_15 = arith.constant 0 : index
      %c0_16 = arith.constant 0 : index
      %19 = vector.load %arg5[%c0_15, %c0_16] : memref<162x128xbf16, #tpu.memory_space<vmem>>, vector<162x128xbf16>
      tpu.vector_store %arg5[%c0_15, %c0_16], %18 {strides = array<i32>} : memref<162x128xbf16, #tpu.memory_space<vmem>>, vector<162x128xbf16>,
    } else {
    }
    return
  }
  func.func @transform_0(%arg0: i32, %arg1: i32) -> (i32, i32) {
    %c0_i32 = arith.constant 0 : i32
    return %arg0, %arg1 : i32, i32
  }
  func.func @transform_1(%arg0: i32, %arg1: i32) -> (i32, i32) {
    %c0_i32 = arith.constant 0 : i32
    %c0_i32_0 = arith.constant 0 : i32
    return %arg1, %c0_i32 : i32, i32
  }
  func.func @transform_2(%arg0: i32, %arg1: i32) -> (i32, i32) {
    %c0_i32 = arith.constant 0 : i32
    %c0_i32_0 = arith.constant 0 : i32
    %c0_i32_1 = arith.constant 0 : i32
    return %c0_i32, %c0_i32_0 : i32, i32
  }
  func.func @transform_3(%arg0: i32, %arg1: i32) -> (i32, i32) {
    %c0_i32 = arith.constant 0 : i32
    %c0_i32_0 = arith.constant 0 : i32
    return %arg0, %c0_i32 : i32, i32
  }
}

module attributes {stable_mosaic.version = 11 : i64} {
  func.func @_gemm_bias_relu_kernel(%arg0: i32, %arg1: i32, %arg2: memref<2x1024xbf16, #tpu.memory_space<vmem>>, %arg3: memref<1024x512xbf16, #tpu.memory_space<vmem>>, %arg4: memref<1x512xf32, #tpu.memory_space<vmem>>, %arg5: memref<2x512xf32, #tpu.memory_space<vmem>>, %arg6: memref<2x512xf32, #tpu.memory_space<vmem>>) attributes {dimension_semantics = [#tpu.dimension_semantics<parallel>, #tpu.dimension_semantics<arbitrary>], iteration_bounds = array<i64: 1, 8>, scalar_prefetch = 0 : i64, scratch_operands = 1 : i64, tpu.core_type = #tpu.core_type<tc>, window_params = [{transform_indices = @transform_0, window_bounds = array<i64: 2, 1024>}, {transform_indices = @transform_1, window_bounds = array<i64: 1024, 512>}, {pipeline_mode = #tpu.pipeline_mode<synchronous>, transform_indices = @transform_2, window_bounds = array<i64: 1, 512>}, {transform_indices = @transform_3, window_bounds = array<i64: 2, 512>}]} {
    %c0_i32 = arith.constant 0 : i32
    %0 = arith.cmpi eq, %arg1, %c0_i32 : i32
    %1 = arith.extui %0 : i1 to i32
    %c0_i32_0 = arith.constant 0 : i32
    %2 = arith.cmpi ne, %1, %c0_i32_0 : i32
    scf.if %2 {
      %cst_9 = arith.constant 0.000000e+00 : f32
      %12 = vector.broadcast %cst_9 : f32 to vector<2x512xf32>
      %c0_10 = arith.constant 0 : index
      %c0_11 = arith.constant 0 : index
      %13 = vector.load %arg6[%c0_10, %c0_11] : memref<2x512xf32, #tpu.memory_space<vmem>>, vector<2x512xf32>
      tpu.vector_store %arg6[%c0_10, %c0_11], %12 {strides = array<i32>} : memref<2x512xf32, #tpu.memory_space<vmem>>, vector<2x512xf32>,
    } else {
    }
    %c0 = arith.constant 0 : index
    %c0_1 = arith.constant 0 : index
    %3 = vector.load %arg6[%c0, %c0_1] : memref<2x512xf32, #tpu.memory_space<vmem>>, vector<2x512xf32>
    %c0_2 = arith.constant 0 : index
    %c0_3 = arith.constant 0 : index
    %4 = vector.load %arg2[%c0_2, %c0_3] : memref<2x1024xbf16, #tpu.memory_space<vmem>>, vector<2x1024xbf16>
    %c0_4 = arith.constant 0 : index
    %c0_5 = arith.constant 0 : index
    %5 = vector.load %arg3[%c0_4, %c0_5] : memref<1024x512xbf16, #tpu.memory_space<vmem>>, vector<1024x512xbf16>
    %cst = arith.constant dense<0.000000e+00> : vector<2x512xf32>
    %6 = tpu.matmul %4, %5, %cst {dimension_numbers = #tpu.dot_dimension_numbers<[1], [0], [0], [1], [0, 0, 1, 1], [], []>} : vector<2x1024xbf16>, vector<1024x512xbf16>, vector<2x512xf32> -> vector<2x512xf32>
    %7 = arith.addf %3, %6 : vector<2x512xf32>
    %c0_6 = arith.constant 0 : index
    %c0_7 = arith.constant 0 : index
    %8 = vector.load %arg6[%c0_6, %c0_7] : memref<2x512xf32, #tpu.memory_space<vmem>>, vector<2x512xf32>
    tpu.vector_store %arg6[%c0_6, %c0_7], %7 {strides = array<i32>} : memref<2x512xf32, #tpu.memory_space<vmem>>, vector<2x512xf32>,
    %c7_i32 = arith.constant 7 : i32
    %9 = arith.cmpi eq, %arg1, %c7_i32 : i32
    %10 = arith.extui %9 : i1 to i32
    %c0_i32_8 = arith.constant 0 : i32
    %11 = arith.cmpi ne, %10, %c0_i32_8 : i32
    scf.if %11 {
      %c0_9 = arith.constant 0 : index
      %c0_10 = arith.constant 0 : index
      %12 = vector.load %arg6[%c0_9, %c0_10] : memref<2x512xf32, #tpu.memory_space<vmem>>, vector<2x512xf32>
      %c0_11 = arith.constant 0 : index
      %c0_12 = arith.constant 0 : index
      %13 = vector.load %arg4[%c0_11, %c0_12] : memref<1x512xf32, #tpu.memory_space<vmem>>, vector<1x512xf32>
      %14 = vector.broadcast %13 : vector<1x512xf32> to vector<2x512xf32>
      %15 = arith.addf %12, %14 : vector<2x512xf32>
      %cst_13 = arith.constant 0.000000e+00 : f32
      %16 = vector.broadcast %cst_13 : f32 to vector<2x512xf32>
      %17 = arith.maximumf %15, %16 : vector<2x512xf32>
      %c0_14 = arith.constant 0 : index
      %c0_15 = arith.constant 0 : index
      %18 = vector.load %arg5[%c0_14, %c0_15] : memref<2x512xf32, #tpu.memory_space<vmem>>, vector<2x512xf32>
      tpu.vector_store %arg5[%c0_14, %c0_15], %17 {strides = array<i32>} : memref<2x512xf32, #tpu.memory_space<vmem>>, vector<2x512xf32>,
    } else {
    }
    return
  }
  func.func @transform_0(%arg0: i32, %arg1: i32) -> (i32, i32) {
    %c0_i32 = arith.constant 0 : i32
    return %arg0, %arg1 : i32, i32
  }
  func.func @transform_1(%arg0: i32, %arg1: i32) -> (i32, i32) {
    %c0_i32 = arith.constant 0 : i32
    %c0_i32_0 = arith.constant 0 : i32
    return %arg1, %c0_i32 : i32, i32
  }
  func.func @transform_2(%arg0: i32, %arg1: i32) -> (i32, i32) {
    %c0_i32 = arith.constant 0 : i32
    %c0_i32_0 = arith.constant 0 : i32
    %c0_i32_1 = arith.constant 0 : i32
    return %c0_i32, %c0_i32_0 : i32, i32
  }
  func.func @transform_3(%arg0: i32, %arg1: i32) -> (i32, i32) {
    %c0_i32 = arith.constant 0 : i32
    %c0_i32_0 = arith.constant 0 : i32
    return %arg0, %c0_i32 : i32, i32
  }
}

</mosaic_0001>

<bundles_post_ra>
// kernel: feature_network.6
= control target key start
LH: loop header
LB: loop body
LE: loop exit
PB: predicated region body
PF: predicated region fallthrough
CT: control target
= control target key end

     0   :  { %8 = vsyncpa [#allocation4], 0  ;;  %s3985_s0 = inlined_call_operand.vmem [shape: bf16[1568,9], index: 0, kind: input, shape index: {}]   ;;  %s3986_s1 = inlined_call_operand.hbm [shape: bf16[9,128], index: 1, kind: input, shape index: {}]   ;;  %s3987_s2 = inlined_call_operand.hbm [shape: f32[1,128], index: 2, kind: input, shape index: {}]   ;;  %s3988_s3 = inlined_call_operand.vmem [shape: bf16[1568,128], index: 3, kind: output, shape index: {}]  }
   0x1   :  { %9 = vsyncpa [#allocation6], 0  ;;  %s3514_s12 = smov 0   ;;  %s3516_s13 = smov 0  }
   0x2   :  { %s3518_s14 = smov 0  }
   0x3 LB: > { %s2447_s15 = sadd.s32 4294967295, %s3485_s14   ;;  %s27_s16 = sadd.s32 1, %s3481_s13  ;;  %s3485_s14 = sphi %s3518_s14, %s15_s14   ;;  %s3481_s13 = sphi %s3516_s13, %s3998_s13   ;;  %s3477_s12 = sphi %s3514_s12, %s3997_s12  }
   0x4   : > { %p29_p0 = scmp.ge.s32.totalorder %s27_s16, 2  ;;  %p2449_p1 = scmp.ge.s32.totalorder %s3485_s14, 1 }
   0x5   : > { %p133_p2 = scmp.lt.s32.totalorder %s3485_s14, 3  ;;  %p3539_p4 = scmp.eq.s32.totalorder %s2447_s15, 0 }
   0x6   : > { %s4000_s16 = smov (%p29_p0, %s27_s16), 0  ;;  %s3487_s19 = smov [#allocation3]  }
   0x7   : > { %p3535_p3 = pnand %p2449_p1, %p133_p2  ;;  %s148_s20 = sshll.u32 %s3487_s19, 4  ;;  %s149_s20 = int_to_ptr.vmem [resolvable:$true] %s148_s20 }
   0x8   : > { %s3993_s18 = scalar_select %p3539_p4, 1, 0 }
   0x9   : > { %s3992_s17 = scalar_select %p3535_p3, 1, 0 }
   0xa   : > { %p3307_p5 = pneg %p3535_p3  ;;  %s3488_s22 = smov [#allocation5]  }
   0xb   : > { %s162_s23 = sshll.u32 %s3488_s22, 4  ;;  %s3399_s26 = scalar_lea.hbm %s3986_s1, 128  ;;  %s3551_s23 = int_to_ptr.vmem [resolvable:$true] %s162_s23 }
   0xc   : > { %p3547_p6 = pnand %p3539_p4, %p3307_p5  ;;  %p3400_p7 = scmp.ne.s32.totalorder %s3986_s1, %s3399_s26 }
   0xd   : > { %p3406_p11 = scmp.lt.u32.totalorder %s3399_s26, %s3986_s1 }
   0xe   : > { %p3401_p8 = pneg %p3547_p6 }
  0x10   : > { %p3402_p9 = pnand %p3401_p8, %p3400_p7 }
  0x12   : > { %p3403_p10 = pneg %p3402_p9 }
  0x14   : > { %p3408_p12 = pnand %p3406_p11, %p3403_p10 }
  0x16   : > { %3411 = shalt.err (!%p3408_p12)
}
  0x17   : > { %s3412_s4 = scalar_lea.vmem %s149_s20, 128  ;;  %p3420_p2 = scmp.lt.s32.totalorder %s149_s20, %s149_s20 }
  0x18   : > { %p3413_p13 = scmp.ne.s32.totalorder %s149_s20, %s3412_s4  ;;  %p3421_p5 = scmp.lt.s32.totalorder %s3412_s4, %s3412_s4 }
  0x1a   : > { %p3415_p0 = pnand %p3413_p13, %p3401_p8  ;;  %p3422_p4 = por %p3421_p5, %p3420_p2 }
  0x1c   : > { %p3416_p1 = pneg %p3415_p0 }
  0x1e   : > { %p3423_p3 = pnand %p3422_p4, %p3416_p1 }
  0x20   : > { %3426 = shalt.err (!%p3423_p3)
}
  0x21   : > { %s3489_s5 = smov 64   ;;  %s3490_s6 = smov 4  }
  0x22   : > { %3310 = dma.hbm_to_vmem [thread:$0]  (!%p3547_p6), %s3986_s1, 128, %s149_s20, [#allocation4], %s3489_s5, %s3489_s5, %s3490_s6  }
  0x23   : > { %s3427_s11 = scalar_lea.hbm %s3987_s2, 16 }
  0x24   : > { %p3428_p7 = scmp.ne.s32.totalorder %s3987_s2, %s3427_s11  ;;  %p3434_p9 = scmp.lt.u32.totalorder %s3427_s11, %s3987_s2 }
  0x26   : > { %p3430_p3 = pnand %p3428_p7, %p3401_p8 }
  0x28   : > { %p3431_p4 = pneg %p3430_p3 }
  0x2a   : > { %p3436_p10 = pnand %p3434_p9, %p3431_p4 }
  0x2c   : > { %3439 = shalt.err (!%p3436_p10)
}
  0x2d   : > { %s3440_s20 = scalar_lea.vmem %s3551_s23, 16  ;;  %s3447_s25 = scalar_lea.vmem %s3551_s23, 32 }
  0x2e   : > { %p3441_p11 = scmp.ne.s32.totalorder %s3551_s23, %s3440_s20  ;;  %p3448_p0 = scmp.lt.s32.totalorder %s3551_s23, %s3551_s23 }
  0x2f   : > { %p3449_p1 = scmp.lt.s32.totalorder %s3447_s25, %s3440_s20 }
  0x30   : > { %p3443_p12 = pnand %p3441_p11, %p3401_p8 }
  0x31   : > { %p3450_p2 = por %p3449_p1, %p3448_p0 }
  0x32   : > { %p3444_p13 = pneg %p3443_p12 }
  0x34   : > { %p3451_p5 = pnand %p3450_p2, %p3444_p13 }
  0x36   : > { %3454 = shalt.err (!%p3451_p5)
}
  0x37   : > { %3313 = dma.hbm_to_vmem [thread:$0]  (!%p3547_p6), %s3987_s2, 16, %s3551_s23, [#allocation6]  }
  0x38   : > { %p3995_p7 = scmp.ne.s32.totalorder %s3992_s17, 0 }
  0x39   : > { %p3996_p8 = scmp.ne.s32.totalorder (!%p3995_p7), %s3993_s18, 0 }
  0x3a   : > { %187 = sbr.rel (%p3995_p7) target bundleno = 490 (0x1ea), region = 32 }
  0x41   : > { %3468 = dma.done.wait (%p3996_p8), [#allocation4], 128  }
  0x42   : > { %3470 = vsyncadd (%p3996_p8), [#allocation4], 4294967168 }
  0x43   : > { %3472 = dma.done.wait (%p3996_p8), [#allocation6], 16  }
  0x44   : > { %3474 = vsyncadd (%p3996_p8), [#allocation6], 4294967280  ;;  %vm933_vm0 = vcmask 1043456   ;;  %v3491_v0 = vmov 0.0   ;;  %s218_s21 = smul.u32 98, %s3477_s12  ;;  %vm3492_vm1 = vmmov 0  }
  0x45   : > { %3099 = vmatprep.subr.bf16.mxu0 %v3491_v0  ;;  %3297 = vmatprep.subr.bf16.mxu1 %v3491_v0  ;;  %vm934_vm2 = vcmask 1044480   ;;  %v3493_v1 = vmov 65535   ;;  %v3349_v4 = vld [vmem:[#allocation3] sm:$0x1f]   ;;  %vm785_vm3 = vcmask 72704  }
  0x46   : > { %3101 = vmatprep.mubr.msk.bf16.mxu0 %vm3492_vm1, %v3491_v0  ;;  %3201 = vmatprep.mubr.msk.bf16.mxu1 %vm3492_vm1, %v3491_v0  ;;  %v935_v2 = vsel %vm933_vm0, 4294967295, %v3493_v1  ;;  %p219_p6 = scmp.lt.s32.totalorder %s218_s21, 195  ;;  %v3820_v55 = vld [vmem:[#allocation5] ss:$0 sm:$0xff] }
  0x47   : > { %v936_v3 = vsel %vm934_vm2, %v935_v2, 0 }
  0x48   : > { %s4002_s21 = smov (!%p219_p6, %s218_s21), 195  ;;  %v938_v5 = vand.u32 %v3349_v4, %v936_v3 }
  0x49   : > { %s2456_s12 = sshll.u32 %s4002_s21, 2 }
  0x4a   : > { %s3626_s23 = scalar_lea.vmem %s3985_s0, %s2456_s12  ;;  %3100 = vmatpush3.bf16.msra.mxu0 %v938_v5  ;;  %3298 = vmatpush3.bf16.msra.mxu1 %v938_v5  ;;  %s3831_s30 = scalar_lea.vmem %s3988_s3, %s2456_s12 }
  0x4b   : > { %v3350_v6 = vld [vmem:[%s3626_s23] sm:$0xff]   ;;  %v3351_v7 = vld [vmem:[%s3626_s23 + $0xc8] sm:$0xff]   ;;  %v3353_v9 = vld [vmem:[%s3626_s23 + $0xd0] sm:$0xff]  }
  0x4c   : > { %v3352_v8 = vld [vmem:[%s3626_s23 + $0x8] sm:$0xff]   ;;  %v3354_v10 = vld [vmem:[%s3626_s23 + $0x10] sm:$0xff]   ;;  %v3355_v11 = vld [vmem:[%s3626_s23 + $0xd8] sm:$0xff]  }
  0x4d   : > { %3102 = vmatmul.mubr.msk.bf16.vlgmr.msra.gmra.mrb[0].mxu0 %vm785_vm3, %v3350_v6  ;;  %3202 = vmatmul.mubr.msk.bf16.vlgmr.msra.gmra.mrb[0].mxu1 %vm785_vm3, %v3351_v7  ;;  %v3356_v12 = vld [vmem:[%s3626_s23 + $0x18] sm:$0xff]   ;;  %v3357_v13 = vld [vmem:[%s3626_s23 + $0xe0] sm:$0xff]   ;;  %v3359_v15 = vld [vmem:[%s3626_s23 + $0xe8] sm:$0xff]  }
  0x4e   : > { %3105 = vmatprep.mubr.msk.bf16.mxu0 %vm3492_vm1, %v3491_v0  ;;  %3205 = vmatprep.mubr.msk.bf16.mxu1 %vm3492_vm1, %v3491_v0  ;;  %v3358_v14 = vld [vmem:[%s3626_s23 + $0x20] sm:$0xff]   ;;  %v3360_v16 = vld [vmem:[%s3626_s23 + $0x28] sm:$0xff]   ;;  %v3361_v17 = vld [vmem:[%s3626_s23 + $0xf0] sm:$0xff]  }
  0x4f   : > { %v3362_v18 = vld [vmem:[%s3626_s23 + $0x30] sm:$0xff]   ;;  %v3363_v19 = vld [vmem:[%s3626_s23 + $0xf8] sm:$0xff]   ;;  %v3365_v21 = vld [vmem:[%s3626_s23 + $0x100] sm:$0xff]  }
  0x50   : > { %v3364_v20 = vld [vmem:[%s3626_s23 + $0x38] sm:$0xff]   ;;  %v3366_v22 = vld [vmem:[%s3626_s23 + $0x40] sm:$0xff]   ;;  %v3367_v23 = vld [vmem:[%s3626_s23 + $0x108] sm:$0xff]  }
  0x51   : > { %v3368_v24 = vld [vmem:[%s3626_s23 + $0x48] sm:$0xff]   ;;  %v3369_v25 = vld [vmem:[%s3626_s23 + $0x110] sm:$0xff]   ;;  %v3371_v27 = vld [vmem:[%s3626_s23 + $0x118] sm:$0xff]  }
  0x52   : > { %v3370_v26 = vld [vmem:[%s3626_s23 + $0x50] sm:$0xff]   ;;  %v3372_v28 = vld [vmem:[%s3626_s23 + $0x58] sm:$0xff]   ;;  %v3373_v29 = vld [vmem:[%s3626_s23 + $0x120] sm:$0xff]  }
  0x53   : > { %v3374_v30 = vld [vmem:[%s3626_s23 + $0x60] sm:$0xff]   ;;  %v3375_v31 = vld [vmem:[%s3626_s23 + $0x128] sm:$0xff]   ;;  %v3377_v33 = vld [vmem:[%s3626_s23 + $0x130] sm:$0xff]  }
  0x54   : > { %v3376_v32 = vld [vmem:[%s3626_s23 + $0x68] sm:$0xff]   ;;  %v3378_v34 = vld [vmem:[%s3626_s23 + $0x70] sm:$0xff]   ;;  %v3379_v35 = vld [vmem:[%s3626_s23 + $0x138] sm:$0xff]  }
  0x55   : > { %3106 = vmatmul.mubr.msk.bf16.gmra.mrb[4].mxu0 %vm785_vm3, %v3352_v8  ;;  %3206 = vmatmul.mubr.msk.bf16.gmra.mrb[4].mxu1 %vm785_vm3, %v3353_v9  ;;  %v3380_v36 = vld [vmem:[%s3626_s23 + $0x78] sm:$0xff]   ;;  %v3381_v37 = vld [vmem:[%s3626_s23 + $0x140] sm:$0xff]   ;;  %v3383_v39 = vld [vmem:[%s3626_s23 + $0x148] sm:$0xff]  }
  0x56   : > { %3109 = vmatprep.mubr.msk.bf16.mxu0 %vm3492_vm1, %v3491_v0  ;;  %3209 = vmatprep.mubr.msk.bf16.mxu1 %vm3492_vm1, %v3491_v0  ;;  %v3382_v38 = vld [vmem:[%s3626_s23 + $0x80] sm:$0xff]   ;;  %v3384_v40 = vld [vmem:[%s3626_s23 + $0x88] sm:$0xff]   ;;  %v3385_v41 = vld [vmem:[%s3626_s23 + $0x150] sm:$0xff]  }
  0x57   : > { %v3386_v42 = vld [vmem:[%s3626_s23 + $0x90] sm:$0xff]   ;;  %v3387_v43 = vld [vmem:[%s3626_s23 + $0x158] sm:$0xff]   ;;  %v3389_v45 = vld [vmem:[%s3626_s23 + $0x160] sm:$0xff]  }
  0x58   : > { %v3388_v44 = vld [vmem:[%s3626_s23 + $0x98] sm:$0xff]   ;;  %v3390_v46 = vld [vmem:[%s3626_s23 + $0xa0] sm:$0xff]   ;;  %v3391_v47 = vld [vmem:[%s3626_s23 + $0x168] sm:$0xff]  }
  0x59   : > { %v3392_v48 = vld [vmem:[%s3626_s23 + $0xa8] sm:$0xff]   ;;  %v3393_v49 = vld [vmem:[%s3626_s23 + $0x170] sm:$0xff]   ;;  %v3395_v51 = vld [vmem:[%s3626_s23 + $0x178] sm:$0xff]  }
  0x5a   : > { %v3394_v50 = vld [vmem:[%s3626_s23 + $0xb0] sm:$0xff]   ;;  %v3396_v52 = vld [vmem:[%s3626_s23 + $0xb8] sm:$0xff]   ;;  %v3397_v53 = vld [vmem:[%s3626_s23 + $0x180] sm:$0xff]  }
  0x5b   : > { %v3398_v54 = vld [vmem:[%s3626_s23 + $0xc0] sm:$0xff]  }
  0x5d   : > { %3110 = vmatmul.mubr.msk.bf16.gmra.mrb[8].mxu0 %vm785_vm3, %v3354_v10  ;;  %3210 = vmatmul.mubr.msk.bf16.gmra.mrb[8].mxu1 %vm785_vm3, %v3355_v11 }
  0x5e   : > { %3113 = vmatprep.mubr.msk.bf16.mxu0 %vm3492_vm1, %v3491_v0  ;;  %3213 = vmatprep.mubr.msk.bf16.mxu1 %vm3492_vm1, %v3491_v0 }
  0x65   : > { %3114 = vmatmul.mubr.msk.bf16.gmra.mrb[12].mxu0 %vm785_vm3, %v3356_v12  ;;  %3214 = vmatmul.mubr.msk.bf16.gmra.mrb[12].mxu1 %vm785_vm3, %v3357_v13 }
  0x66   : > { %3117 = vmatprep.mubr.msk.bf16.mxu0 %vm3492_vm1, %v3491_v0  ;;  %3217 = vmatprep.mubr.msk.bf16.mxu1 %vm3492_vm1, %v3491_v0 }
  0x6d   : > { %3118 = vmatmul.mubr.msk.bf16.gmra.mrb[16].mxu0 %vm785_vm3, %v3358_v14  ;;  %3218 = vmatmul.mubr.msk.bf16.gmra.mrb[16].mxu1 %vm785_vm3, %v3359_v15 }
  0x6e   : > { %3121 = vmatprep.mubr.msk.bf16.mxu0 %vm3492_vm1, %v3491_v0  ;;  %3221 = vmatprep.mubr.msk.bf16.mxu1 %vm3492_vm1, %v3491_v0 }
  0x75   : > { %3122 = vmatmul.mubr.msk.bf16.gmra.mrb[20].mxu0 %vm785_vm3, %v3360_v16  ;;  %3222 = vmatmul.mubr.msk.bf16.gmra.mrb[20].mxu1 %vm785_vm3, %v3361_v17 }
  0x76   : > { %3125 = vmatprep.mubr.msk.bf16.mxu0 %vm3492_vm1, %v3491_v0  ;;  %3225 = vmatprep.mubr.msk.bf16.mxu1 %vm3492_vm1, %v3491_v0 }
  0x7d   : > { %3126 = vmatmul.mubr.msk.bf16.gmra.mrb[24].mxu0 %vm785_vm3, %v3362_v18  ;;  %3226 = vmatmul.mubr.msk.bf16.gmra.mrb[24].mxu1 %vm785_vm3, %v3363_v19 }
  0x7e   : > { %3129 = vmatprep.mubr.msk.bf16.mxu0 %vm3492_vm1, %v3491_v0  ;;  %3229 = vmatprep.mubr.msk.bf16.mxu1 %vm3492_vm1, %v3491_v0 }
  0x85   : > { %3130 = vmatmul.mubr.msk.bf16.gmra.mrb[28].mxu0 %vm785_vm3, %v3364_v20  ;;  %3230 = vmatmul.mubr.msk.bf16.gmra.mrb[28].mxu1 %vm785_vm3, %v3365_v21 }
  0x86   : > { %3133 = vmatprep.mubr.msk.bf16.mxu0 %vm3492_vm1, %v3491_v0  ;;  %3233 = vmatprep.mubr.msk.bf16.mxu1 %vm3492_vm1, %v3491_v0 }
  0x8d   : > { %3134 = vmatmul.mubr.msk.bf16.gmra.mrb[32].mxu0 %vm785_vm3, %v3366_v22  ;;  %3234 = vmatmul.mubr.msk.bf16.gmra.mrb[32].mxu1 %vm785_vm3, %v3367_v23 }
  0x8e   : > { %3137 = vmatprep.mubr.msk.bf16.mxu0 %vm3492_vm1, %v3491_v0  ;;  %3237 = vmatprep.mubr.msk.bf16.mxu1 %vm3492_vm1, %v3491_v0 }
  0x95   : > { %3138 = vmatmul.mubr.msk.bf16.gmra.mrb[36].mxu0 %vm785_vm3, %v3368_v24  ;;  %3238 = vmatmul.mubr.msk.bf16.gmra.mrb[36].mxu1 %vm785_vm3, %v3369_v25 }
  0x96   : > { %3141 = vmatprep.mubr.msk.bf16.mxu0 %vm3492_vm1, %v3491_v0  ;;  %3241 = vmatprep.mubr.msk.bf16.mxu1 %vm3492_vm1, %v3491_v0 }
  0x9d   : > { %3142 = vmatmul.mubr.msk.bf16.gmra.mrb[40].mxu0 %vm785_vm3, %v3370_v26  ;;  %3242 = vmatmul.mubr.msk.bf16.gmra.mrb[40].mxu1 %vm785_vm3, %v3371_v27 }
  0x9e   : > { %3145 = vmatprep.mubr.msk.bf16.mxu0 %vm3492_vm1, %v3491_v0  ;;  %3245 = vmatprep.mubr.msk.bf16.mxu1 %vm3492_vm1, %v3491_v0 }
  0xa5   : > { %3146 = vmatmul.mubr.msk.bf16.gmra.mrb[44].mxu0 %vm785_vm3, %v3372_v28  ;;  %3246 = vmatmul.mubr.msk.bf16.gmra.mrb[44].mxu1 %vm785_vm3, %v3373_v29 }
  0xa6   : > { %3149 = vmatprep.mubr.msk.bf16.mxu0 %vm3492_vm1, %v3491_v0  ;;  %3249 = vmatprep.mubr.msk.bf16.mxu1 %vm3492_vm1, %v3491_v0 }
  0xad   : > { %3150 = vmatmul.mubr.msk.bf16.gmra.mrb[48].mxu0 %vm785_vm3, %v3374_v30  ;;  %3250 = vmatmul.mubr.msk.bf16.gmra.mrb[48].mxu1 %vm785_vm3, %v3375_v31 }
  0xae   : > { %3153 = vmatprep.mubr.msk.bf16.mxu0 %vm3492_vm1, %v3491_v0  ;;  %3253 = vmatprep.mubr.msk.bf16.mxu1 %vm3492_vm1, %v3491_v0 }
  0xb5   : > { %3154 = vmatmul.mubr.msk.bf16.gmra.mrb[52].mxu0 %vm785_vm3, %v3376_v32  ;;  %3254 = vmatmul.mubr.msk.bf16.gmra.mrb[52].mxu1 %vm785_vm3, %v3377_v33 }
  0xb6   : > { %3157 = vmatprep.mubr.msk.bf16.mxu0 %vm3492_vm1, %v3491_v0  ;;  %3257 = vmatprep.mubr.msk.bf16.mxu1 %vm3492_vm1, %v3491_v0 }
  0xbd   : > { %3158 = vmatmul.mubr.msk.bf16.gmra.mrb[56].mxu0 %vm785_vm3, %v3378_v34  ;;  %3258 = vmatmul.mubr.msk.bf16.gmra.mrb[56].mxu1 %vm785_vm3, %v3379_v35 }
  0xbe   : > { %3161 = vmatprep.mubr.msk.bf16.mxu0 %vm3492_vm1, %v3491_v0  ;;  %3261 = vmatprep.mubr.msk.bf16.mxu1 %vm3492_vm1, %v3491_v0 }
  0xc5   : > { %3162 = vmatmul.mubr.msk.bf16.gmra.mrb[60].mxu0 %vm785_vm3, %v3380_v36  ;;  %3262 = vmatmul.mubr.msk.bf16.gmra.mrb[60].mxu1 %vm785_vm3, %v3381_v37 }
  0xc6   : > { %3165 = vmatprep.mubr.msk.bf16.mxu0 %vm3492_vm1, %v3491_v0  ;;  %3265 = vmatprep.mubr.msk.bf16.mxu1 %vm3492_vm1, %v3491_v0 }
  0xcd   : > { %3166 = vmatmul.mubr.msk.bf16.gmra.mrb[64].mxu0 %vm785_vm3, %v3382_v38  ;;  %3266 = vmatmul.mubr.msk.bf16.gmra.mrb[64].mxu1 %vm785_vm3, %v3383_v39 }
  0xce   : > { %3169 = vmatprep.mubr.msk.bf16.mxu0 %vm3492_vm1, %v3491_v0  ;;  %3269 = vmatprep.mubr.msk.bf16.mxu1 %vm3492_vm1, %v3491_v0 }
  0xd5   : > { %3170 = vmatmul.mubr.msk.bf16.gmra.mrb[68].mxu0 %vm785_vm3, %v3384_v40  ;;  %3270 = vmatmul.mubr.msk.bf16.gmra.mrb[68].mxu1 %vm785_vm3, %v3385_v41 }
  0xd6   : > { %3173 = vmatprep.mubr.msk.bf16.mxu0 %vm3492_vm1, %v3491_v0  ;;  %3273 = vmatprep.mubr.msk.bf16.mxu1 %vm3492_vm1, %v3491_v0 }
  0xdd   : > { %3174 = vmatmul.mubr.msk.bf16.gmra.mrb[72].mxu0 %vm785_vm3, %v3386_v42  ;;  %3274 = vmatmul.mubr.msk.bf16.gmra.mrb[72].mxu1 %vm785_vm3, %v3387_v43 }
  0xde   : > { %3177 = vmatprep.mubr.msk.bf16.mxu0 %vm3492_vm1, %v3491_v0  ;;  %3277 = vmatprep.mubr.msk.bf16.mxu1 %vm3492_vm1, %v3491_v0 }
  0xe5   : > { %3178 = vmatmul.mubr.msk.bf16.gmra.mrb[76].mxu0 %vm785_vm3, %v3388_v44  ;;  %3278 = vmatmul.mubr.msk.bf16.gmra.mrb[76].mxu1 %vm785_vm3, %v3389_v45 }
  0xe6   : > { %3181 = vmatprep.mubr.msk.bf16.mxu0 %vm3492_vm1, %v3491_v0  ;;  %3281 = vmatprep.mubr.msk.bf16.mxu1 %vm3492_vm1, %v3491_v0 }
  0xed   : > { %3182 = vmatmul.mubr.msk.bf16.gmra.mrb[80].mxu0 %vm785_vm3, %v3390_v46  ;;  %3282 = vmatmul.mubr.msk.bf16.gmra.mrb[80].mxu1 %vm785_vm3, %v3391_v47 }
  0xee   : > { %3185 = vmatprep.mubr.msk.bf16.mxu0 %vm3492_vm1, %v3491_v0  ;;  %3285 = vmatprep.mubr.msk.bf16.mxu1 %vm3492_vm1, %v3491_v0 }
  0xf5   : > { %3186 = vmatmul.mubr.msk.bf16.gmra.mrb[84].mxu0 %vm785_vm3, %v3392_v48  ;;  %3286 = vmatmul.mubr.msk.bf16.gmra.mrb[84].mxu1 %vm785_vm3, %v3393_v49 }
  0xf6   : > { %3189 = vmatprep.mubr.msk.bf16.mxu0 %vm3492_vm1, %v3491_v0  ;;  %3289 = vmatprep.mubr.msk.bf16.mxu1 %vm3492_vm1, %v3491_v0 }
  0xfd   : > { %3190 = vmatmul.mubr.msk.bf16.gmra.mrb[88].mxu0 %vm785_vm3, %v3394_v50  ;;  %3290 = vmatmul.mubr.msk.bf16.gmra.mrb[88].mxu1 %vm785_vm3, %v3395_v51 }
  0xfe   : > { %3193 = vmatprep.mubr.msk.bf16.mxu0 %vm3492_vm1, %v3491_v0  ;;  %3293 = vmatprep.mubr.msk.bf16.mxu1 %vm3492_vm1, %v3491_v0 }
 0x105   : > { %3194 = vmatmul.mubr.msk.bf16.gmra.mrb[92].mxu0 %vm785_vm3, %v3396_v52  ;;  %3294 = vmatmul.mubr.msk.bf16.gmra.mrb[92].mxu1 %vm785_vm3, %v3397_v53 }
 0x106   : > { %3197 = vmatprep.mubr.msk.bf16.mxu0 %vm3492_vm1, %v3491_v0 }
 0x10d   : > { %3198 = vmatmul.mubr.msk.bf16.gmra.mrb[96].mxu0 %vm785_vm3, %v3398_v54 }
 0x120   : > { %v974_v56 = vpop.f32.mrb[0].mxu0  ;;  %v1174_v57 = vpop.f32.mrb[0].mxu1 }
 0x121   : > { %v1669_v58 = vadd.f32 %v3820_v55, %v974_v56  ;;  %v3103_v59 = vpop.f32.mrb[1].mxu0  ;;  %v1719_v60 = vadd.f32 %v3820_v55, %v1174_v57  ;;  %v3203_v61 = vpop.f32.mrb[1].mxu1 }
 0x122   : > { %v977_v62 = vpop.f32.mrb[2].mxu0  ;;  %v1177_v63 = vpop.f32.mrb[2].mxu1 }
 0x123   : > { %v1670_v1 = vadd.f32 %v3820_v55, %v977_v62  ;;  %v3104_v2 = vpop.f32.mrb[3].mxu0  ;;  %v1817_v0 = vmax.f32 %v1719_v60, 0.0  ;;  %v1720_v3 = vadd.f32 %v3820_v55, %v1177_v63  ;;  %v3204_v4 = vpop.f32.mrb[3].mxu1  ;;  %v1767_v5 = vmax.f32 %v1669_v58, 0.0 }
 0x125   : > { %v1768_v6 = vmax.f32 %v1670_v1, 0.0  ;;  %v1818_v7 = vmax.f32 %v1720_v3, 0.0 }
 0x127   : > { %v2759_v8 = vpack.c.bf16 %v1768_v6, %v1767_v5  ;;  %v2884_v9 = vpack.c.bf16 %v1818_v7, %v1817_v0 }
 0x128   : > { %v982_v10 = vpop.f32.mrb[4].mxu0  ;;  %v1182_v11 = vpop.f32.mrb[4].mxu1 }
 0x129   : > { %2760 = vst [vmem:[%s3831_s30] sm:$0xff] %v2759_v8   ;;  %3025 = vst [vmem:[%s3831_s30 + $0xc8] sm:$0xff] %v2884_v9   ;;  %v1671_v12 = vadd.f32 %v3820_v55, %v982_v10  ;;  %v3107_v13 = vpop.f32.mrb[5].mxu0  ;;  %v1721_v14 = vadd.f32 %v3820_v55, %v1182_v11  ;;  %v3207_v15 = vpop.f32.mrb[5].mxu1 }
 0x12a   : > { %v985_v16 = vpop.f32.mrb[6].mxu0  ;;  %v1185_v17 = vpop.f32.mrb[6].mxu1 }
 0x12b   : > { %v1672_v18 = vadd.f32 %v3820_v55, %v985_v16  ;;  %v3108_v19 = vpop.f32.mrb[7].mxu0  ;;  %v1819_v20 = vmax.f32 %v1721_v14, 0.0  ;;  %v1722_v21 = vadd.f32 %v3820_v55, %v1185_v17  ;;  %v3208_v22 = vpop.f32.mrb[7].mxu1  ;;  %v1769_v23 = vmax.f32 %v1671_v12, 0.0 }
 0x12d   : > { %v1770_v24 = vmax.f32 %v1672_v18, 0.0  ;;  %v1820_v25 = vmax.f32 %v1722_v21, 0.0 }
 0x12f   : > { %v2764_v26 = vpack.c.bf16 %v1770_v24, %v1769_v23  ;;  %v2889_v27 = vpack.c.bf16 %v1820_v25, %v1819_v20 }
 0x130   : > { %v990_v28 = vpop.f32.mrb[8].mxu0  ;;  %v1190_v29 = vpop.f32.mrb[8].mxu1 }
 0x131   : > { %3001 = vst [vmem:[%s3831_s30 + $0x8] sm:$0xff] %v2764_v26   ;;  %3026 = vst [vmem:[%s3831_s30 + $0xd0] sm:$0xff] %v2889_v27   ;;  %v1673_v30 = vadd.f32 %v3820_v55, %v990_v28  ;;  %v3111_v31 = vpop.f32.mrb[9].mxu0  ;;  %v1723_v32 = vadd.f32 %v3820_v55, %v1190_v29  ;;  %v3211_v33 = vpop.f32.mrb[9].mxu1 }
 0x132   : > { %v993_v34 = vpop.f32.mrb[10].mxu0  ;;  %v1193_v35 = vpop.f32.mrb[10].mxu1 }
 0x133   : > { %v1674_v36 = vadd.f32 %v3820_v55, %v993_v34  ;;  %v3112_v37 = vpop.f32.mrb[11].mxu0  ;;  %v1821_v38 = vmax.f32 %v1723_v32, 0.0  ;;  %v1724_v39 = vadd.f32 %v3820_v55, %v1193_v35  ;;  %v3212_v40 = vpop.f32.mrb[11].mxu1  ;;  %v1771_v41 = vmax.f32 %v1673_v30, 0.0 }
 0x135   : > { %v1772_v42 = vmax.f32 %v1674_v36, 0.0  ;;  %v1822_v43 = vmax.f32 %v1724_v39, 0.0 }
 0x137   : > { %v2769_v44 = vpack.c.bf16 %v1772_v42, %v1771_v41  ;;  %v2894_v45 = vpack.c.bf16 %v1822_v43, %v1821_v38 }
 0x138   : > { %v998_v46 = vpop.f32.mrb[12].mxu0  ;;  %v1198_v47 = vpop.f32.mrb[12].mxu1 }
 0x139   : > { %3002 = vst [vmem:[%s3831_s30 + $0x10] sm:$0xff] %v2769_v44   ;;  %3027 = vst [vmem:[%s3831_s30 + $0xd8] sm:$0xff] %v2894_v45   ;;  %v1675_v48 = vadd.f32 %v3820_v55, %v998_v46  ;;  %v3115_v49 = vpop.f32.mrb[13].mxu0  ;;  %v1725_v50 = vadd.f32 %v3820_v55, %v1198_v47  ;;  %v3215_v51 = vpop.f32.mrb[13].mxu1 }
 0x13a   : > { %v1001_v52 = vpop.f32.mrb[14].mxu0  ;;  %v1201_v53 = vpop.f32.mrb[14].mxu1 }
 0x13b   : > { %v1676_v54 = vadd.f32 %v3820_v55, %v1001_v52  ;;  %v3116_v56 = vpop.f32.mrb[15].mxu0  ;;  %v1823_v57 = vmax.f32 %v1725_v50, 0.0  ;;  %v1726_v58 = vadd.f32 %v3820_v55, %v1201_v53  ;;  %v3216_v59 = vpop.f32.mrb[15].mxu1  ;;  %v1773_v60 = vmax.f32 %v1675_v48, 0.0 }
 0x13d   : > { %v1774_v61 = vmax.f32 %v1676_v54, 0.0  ;;  %v1824_v62 = vmax.f32 %v1726_v58, 0.0 }
 0x13f   : > { %v2774_v63 = vpack.c.bf16 %v1774_v61, %v1773_v60  ;;  %v2899_v1 = vpack.c.bf16 %v1824_v62, %v1823_v57 }
 0x140   : > { %v1006_v2 = vpop.f32.mrb[16].mxu0  ;;  %v1206_v0 = vpop.f32.mrb[16].mxu1 }
 0x141   : > { %3003 = vst [vmem:[%s3831_s30 + $0x18] sm:$0xff] %v2774_v63   ;;  %3028 = vst [vmem:[%s3831_s30 + $0xe0] sm:$0xff] %v2899_v1   ;;  %v1677_v3 = vadd.f32 %v3820_v55, %v1006_v2  ;;  %v3119_v4 = vpop.f32.mrb[17].mxu0  ;;  %v1727_v5 = vadd.f32 %v3820_v55, %v1206_v0  ;;  %v3219_v6 = vpop.f32.mrb[17].mxu1 }
 0x142   : > { %v1009_v7 = vpop.f32.mrb[18].mxu0  ;;  %v1209_v8 = vpop.f32.mrb[18].mxu1 }
 0x143   : > { %v1678_v9 = vadd.f32 %v3820_v55, %v1009_v7  ;;  %v3120_v10 = vpop.f32.mrb[19].mxu0  ;;  %v1825_v11 = vmax.f32 %v1727_v5, 0.0  ;;  %v1728_v12 = vadd.f32 %v3820_v55, %v1209_v8  ;;  %v3220_v13 = vpop.f32.mrb[19].mxu1  ;;  %v1775_v14 = vmax.f32 %v1677_v3, 0.0 }
 0x145   : > { %v1776_v15 = vmax.f32 %v1678_v9, 0.0  ;;  %v1826_v16 = vmax.f32 %v1728_v12, 0.0 }
 0x147   : > { %v2779_v17 = vpack.c.bf16 %v1776_v15, %v1775_v14  ;;  %v2904_v18 = vpack.c.bf16 %v1826_v16, %v1825_v11 }
 0x148   : > { %v1014_v19 = vpop.f32.mrb[20].mxu0  ;;  %v1214_v20 = vpop.f32.mrb[20].mxu1 }
 0x149   : > { %3004 = vst [vmem:[%s3831_s30 + $0x20] sm:$0xff] %v2779_v17   ;;  %3029 = vst [vmem:[%s3831_s30 + $0xe8] sm:$0xff] %v2904_v18   ;;  %v1679_v21 = vadd.f32 %v3820_v55, %v1014_v19  ;;  %v3123_v22 = vpop.f32.mrb[21].mxu0  ;;  %v1729_v23 = vadd.f32 %v3820_v55, %v1214_v20  ;;  %v3223_v24 = vpop.f32.mrb[21].mxu1 }
 0x14a   : > { %v1017_v25 = vpop.f32.mrb[22].mxu0  ;;  %v1217_v26 = vpop.f32.mrb[22].mxu1 }
 0x14b   : > { %v1680_v27 = vadd.f32 %v3820_v55, %v1017_v25  ;;  %v3124_v28 = vpop.f32.mrb[23].mxu0  ;;  %v1827_v29 = vmax.f32 %v1729_v23, 0.0  ;;  %v1730_v30 = vadd.f32 %v3820_v55, %v1217_v26  ;;  %v3224_v31 = vpop.f32.mrb[23].mxu1  ;;  %v1777_v32 = vmax.f32 %v1679_v21, 0.0 }
 0x14d   : > { %v1778_v33 = vmax.f32 %v1680_v27, 0.0  ;;  %v1828_v34 = vmax.f32 %v1730_v30, 0.0 }
 0x14f   : > { %v2784_v35 = vpack.c.bf16 %v1778_v33, %v1777_v32  ;;  %v2909_v36 = vpack.c.bf16 %v1828_v34, %v1827_v29 }
 0x150   : > { %v1022_v37 = vpop.f32.mrb[24].mxu0  ;;  %v1222_v38 = vpop.f32.mrb[24].mxu1 }
 0x151   : > { %3005 = vst [vmem:[%s3831_s30 + $0x28] sm:$0xff] %v2784_v35   ;;  %3030 = vst [vmem:[%s3831_s30 + $0xf0] sm:$0xff] %v2909_v36   ;;  %v1681_v39 = vadd.f32 %v3820_v55, %v1022_v37  ;;  %v3127_v40 = vpop.f32.mrb[25].mxu0  ;;  %v1731_v41 = vadd.f32 %v3820_v55, %v1222_v38  ;;  %v3227_v42 = vpop.f32.mrb[25].mxu1 }
 0x152   : > { %v1025_v43 = vpop.f32.mrb[26].mxu0  ;;  %v1225_v44 = vpop.f32.mrb[26].mxu1 }
 0x153   : > { %v1682_v45 = vadd.f32 %v3820_v55, %v1025_v43  ;;  %v3128_v46 = vpop.f32.mrb[27].mxu0  ;;  %v1829_v47 = vmax.f32 %v1731_v41, 0.0  ;;  %v1732_v48 = vadd.f32 %v3820_v55, %v1225_v44  ;;  %v3228_v49 = vpop.f32.mrb[27].mxu1  ;;  %v1779_v50 = vmax.f32 %v1681_v39, 0.0 }
 0x155   : > { %v1780_v51 = vmax.f32 %v1682_v45, 0.0  ;;  %v1830_v52 = vmax.f32 %v1732_v48, 0.0 }
 0x157   : > { %v2789_v53 = vpack.c.bf16 %v1780_v51, %v1779_v50  ;;  %v2914_v54 = vpack.c.bf16 %v1830_v52, %v1829_v47 }
 0x158   : > { %v1030_v56 = vpop.f32.mrb[28].mxu0  ;;  %v1230_v57 = vpop.f32.mrb[28].mxu1 }
 0x159   : > { %3006 = vst [vmem:[%s3831_s30 + $0x30] sm:$0xff] %v2789_v53   ;;  %3031 = vst [vmem:[%s3831_s30 + $0xf8] sm:$0xff] %v2914_v54   ;;  %v1683_v58 = vadd.f32 %v3820_v55, %v1030_v56  ;;  %v3131_v59 = vpop.f32.mrb[29].mxu0  ;;  %v1733_v60 = vadd.f32 %v3820_v55, %v1230_v57  ;;  %v3231_v61 = vpop.f32.mrb[29].mxu1 }
 0x15a   : > { %v1033_v62 = vpop.f32.mrb[30].mxu0  ;;  %v1233_v63 = vpop.f32.mrb[30].mxu1 }
 0x15b   : > { %v1684_v1 = vadd.f32 %v3820_v55, %v1033_v62  ;;  %v3132_v2 = vpop.f32.mrb[31].mxu0  ;;  %v1831_v0 = vmax.f32 %v1733_v60, 0.0  ;;  %v1734_v3 = vadd.f32 %v3820_v55, %v1233_v63  ;;  %v3232_v4 = vpop.f32.mrb[31].mxu1  ;;  %v1781_v5 = vmax.f32 %v1683_v58, 0.0 }
 0x15d   : > { %v1782_v6 = vmax.f32 %v1684_v1, 0.0  ;;  %v1832_v7 = vmax.f32 %v1734_v3, 0.0 }
 0x15f   : > { %v2794_v8 = vpack.c.bf16 %v1782_v6, %v1781_v5  ;;  %v2919_v9 = vpack.c.bf16 %v1832_v7, %v1831_v0 }
 0x160   : > { %v1038_v10 = vpop.f32.mrb[32].mxu0  ;;  %v1238_v11 = vpop.f32.mrb[32].mxu1 }
 0x161   : > { %3007 = vst [vmem:[%s3831_s30 + $0x38] sm:$0xff] %v2794_v8   ;;  %3032 = vst [vmem:[%s3831_s30 + $0x100] sm:$0xff] %v2919_v9   ;;  %v1685_v12 = vadd.f32 %v3820_v55, %v1038_v10  ;;  %v3135_v13 = vpop.f32.mrb[33].mxu0  ;;  %v1735_v14 = vadd.f32 %v3820_v55, %v1238_v11  ;;  %v3235_v15 = vpop.f32.mrb[33].mxu1 }
 0x162   : > { %v1041_v16 = vpop.f32.mrb[34].mxu0  ;;  %v1241_v17 = vpop.f32.mrb[34].mxu1 }
 0x163   : > { %v1686_v18 = vadd.f32 %v3820_v55, %v1041_v16  ;;  %v3136_v19 = vpop.f32.mrb[35].mxu0  ;;  %v1833_v20 = vmax.f32 %v1735_v14, 0.0  ;;  %v1736_v21 = vadd.f32 %v3820_v55, %v1241_v17  ;;  %v3236_v22 = vpop.f32.mrb[35].mxu1  ;;  %v1783_v23 = vmax.f32 %v1685_v12, 0.0 }
 0x165   : > { %v1784_v24 = vmax.f32 %v1686_v18, 0.0  ;;  %v1834_v25 = vmax.f32 %v1736_v21, 0.0 }
 0x167   : > { %v2799_v26 = vpack.c.bf16 %v1784_v24, %v1783_v23  ;;  %v2924_v27 = vpack.c.bf16 %v1834_v25, %v1833_v20 }
 0x168   : > { %v1046_v28 = vpop.f32.mrb[36].mxu0  ;;  %v1246_v29 = vpop.f32.mrb[36].mxu1 }
 0x169   : > { %3008 = vst [vmem:[%s3831_s30 + $0x40] sm:$0xff] %v2799_v26   ;;  %3033 = vst [vmem:[%s3831_s30 + $0x108] sm:$0xff] %v2924_v27   ;;  %v1687_v30 = vadd.f32 %v3820_v55, %v1046_v28  ;;  %v3139_v31 = vpop.f32.mrb[37].mxu0  ;;  %v1737_v32 = vadd.f32 %v3820_v55, %v1246_v29  ;;  %v3239_v33 = vpop.f32.mrb[37].mxu1 }
 0x16a   : > { %v1049_v34 = vpop.f32.mrb[38].mxu0  ;;  %v1249_v35 = vpop.f32.mrb[38].mxu1 }
 0x16b   : > { %v1688_v36 = vadd.f32 %v3820_v55, %v1049_v34  ;;  %v3140_v37 = vpop.f32.mrb[39].mxu0  ;;  %v1835_v38 = vmax.f32 %v1737_v32, 0.0  ;;  %v1738_v39 = vadd.f32 %v3820_v55, %v1249_v35  ;;  %v3240_v40 = vpop.f32.mrb[39].mxu1  ;;  %v1785_v41 = vmax.f32 %v1687_v30, 0.0 }
 0x16d   : > { %v1786_v42 = vmax.f32 %v1688_v36, 0.0  ;;  %v1836_v43 = vmax.f32 %v1738_v39, 0.0 }
 0x16f   : > { %v2804_v44 = vpack.c.bf16 %v1786_v42, %v1785_v41  ;;  %v2929_v45 = vpack.c.bf16 %v1836_v43, %v1835_v38 }
 0x170   : > { %v1054_v46 = vpop.f32.mrb[40].mxu0  ;;  %v1254_v47 = vpop.f32.mrb[40].mxu1 }
 0x171   : > { %3009 = vst [vmem:[%s3831_s30 + $0x48] sm:$0xff] %v2804_v44   ;;  %3034 = vst [vmem:[%s3831_s30 + $0x110] sm:$0xff] %v2929_v45   ;;  %v1689_v48 = vadd.f32 %v3820_v55, %v1054_v46  ;;  %v3143_v49 = vpop.f32.mrb[41].mxu0  ;;  %v1739_v50 = vadd.f32 %v3820_v55, %v1254_v47  ;;  %v3243_v51 = vpop.f32.mrb[41].mxu1 }
 0x172   : > { %v1057_v52 = vpop.f32.mrb[42].mxu0  ;;  %v1257_v53 = vpop.f32.mrb[42].mxu1 }
 0x173   : > { %v1690_v54 = vadd.f32 %v3820_v55, %v1057_v52  ;;  %v3144_v56 = vpop.f32.mrb[43].mxu0  ;;  %v1837_v57 = vmax.f32 %v1739_v50, 0.0  ;;  %v1740_v58 = vadd.f32 %v3820_v55, %v1257_v53  ;;  %v3244_v59 = vpop.f32.mrb[43].mxu1  ;;  %v1787_v60 = vmax.f32 %v1689_v48, 0.0 }
 0x175   : > { %v1788_v61 = vmax.f32 %v1690_v54, 0.0  ;;  %v1838_v62 = vmax.f32 %v1740_v58, 0.0 }
 0x177   : > { %v2809_v63 = vpack.c.bf16 %v1788_v61, %v1787_v60  ;;  %v2934_v1 = vpack.c.bf16 %v1838_v62, %v1837_v57 }
 0x178   : > { %v1062_v2 = vpop.f32.mrb[44].mxu0  ;;  %v1262_v0 = vpop.f32.mrb[44].mxu1 }
 0x179   : > { %3010 = vst [vmem:[%s3831_s30 + $0x50] sm:$0xff] %v2809_v63   ;;  %3035 = vst [vmem:[%s3831_s30 + $0x118] sm:$0xff] %v2934_v1   ;;  %v1691_v3 = vadd.f32 %v3820_v55, %v1062_v2  ;;  %v3147_v4 = vpop.f32.mrb[45].mxu0  ;;  %v1741_v5 = vadd.f32 %v3820_v55, %v1262_v0  ;;  %v3247_v6 = vpop.f32.mrb[45].mxu1 }
 0x17a   : > { %v1065_v7 = vpop.f32.mrb[46].mxu0  ;;  %v1265_v8 = vpop.f32.mrb[46].mxu1 }
 0x17b   : > { %v1692_v9 = vadd.f32 %v3820_v55, %v1065_v7  ;;  %v3148_v10 = vpop.f32.mrb[47].mxu0  ;;  %v1839_v11 = vmax.f32 %v1741_v5, 0.0  ;;  %v1742_v12 = vadd.f32 %v3820_v55, %v1265_v8  ;;  %v3248_v13 = vpop.f32.mrb[47].mxu1  ;;  %v1789_v14 = vmax.f32 %v1691_v3, 0.0 }
 0x17d   : > { %v1790_v15 = vmax.f32 %v1692_v9, 0.0  ;;  %v1840_v16 = vmax.f32 %v1742_v12, 0.0 }
 0x17f   : > { %v2814_v17 = vpack.c.bf16 %v1790_v15, %v1789_v14  ;;  %v2939_v18 = vpack.c.bf16 %v1840_v16, %v1839_v11 }
 0x180   : > { %v1070_v19 = vpop.f32.mrb[48].mxu0  ;;  %v1270_v20 = vpop.f32.mrb[48].mxu1 }
 0x181   : > { %3011 = vst [vmem:[%s3831_s30 + $0x58] sm:$0xff] %v2814_v17   ;;  %3036 = vst [vmem:[%s3831_s30 + $0x120] sm:$0xff] %v2939_v18   ;;  %v1693_v21 = vadd.f32 %v3820_v55, %v1070_v19  ;;  %v3151_v22 = vpop.f32.mrb[49].mxu0  ;;  %v1743_v23 = vadd.f32 %v3820_v55, %v1270_v20  ;;  %v3251_v24 = vpop.f32.mrb[49].mxu1 }
 0x182   : > { %v1073_v25 = vpop.f32.mrb[50].mxu0  ;;  %v1273_v26 = vpop.f32.mrb[50].mxu1 }
 0x183   : > { %v1694_v27 = vadd.f32 %v3820_v55, %v1073_v25  ;;  %v3152_v28 = vpop.f32.mrb[51].mxu0  ;;  %v1841_v29 = vmax.f32 %v1743_v23, 0.0  ;;  %v1744_v30 = vadd.f32 %v3820_v55, %v1273_v26  ;;  %v3252_v31 = vpop.f32.mrb[51].mxu1  ;;  %v1791_v32 = vmax.f32 %v1693_v21, 0.0 }
 0x185   : > { %v1792_v33 = vmax.f32 %v1694_v27, 0.0  ;;  %v1842_v34 = vmax.f32 %v1744_v30, 0.0 }
 0x187   : > { %v2819_v35 = vpack.c.bf16 %v1792_v33, %v1791_v32  ;;  %v2944_v36 = vpack.c.bf16 %v1842_v34, %v1841_v29 }
 0x188   : > { %v1078_v37 = vpop.f32.mrb[52].mxu0  ;;  %v1278_v38 = vpop.f32.mrb[52].mxu1 }
 0x189   : > { %3012 = vst [vmem:[%s3831_s30 + $0x60] sm:$0xff] %v2819_v35   ;;  %3037 = vst [vmem:[%s3831_s30 + $0x128] sm:$0xff] %v2944_v36   ;;  %v1695_v39 = vadd.f32 %v3820_v55, %v1078_v37  ;;  %v3155_v40 = vpop.f32.mrb[53].mxu0  ;;  %v1745_v41 = vadd.f32 %v3820_v55, %v1278_v38  ;;  %v3255_v42 = vpop.f32.mrb[53].mxu1 }
 0x18a   : > { %v1081_v43 = vpop.f32.mrb[54].mxu0  ;;  %v1281_v44 = vpop.f32.mrb[54].mxu1 }
 0x18b   : > { %v1696_v45 = vadd.f32 %v3820_v55, %v1081_v43  ;;  %v3156_v46 = vpop.f32.mrb[55].mxu0  ;;  %v1843_v47 = vmax.f32 %v1745_v41, 0.0  ;;  %v1746_v48 = vadd.f32 %v3820_v55, %v1281_v44  ;;  %v3256_v49 = vpop.f32.mrb[55].mxu1  ;;  %v1793_v50 = vmax.f32 %v1695_v39, 0.0 }
 0x18d   : > { %v1794_v51 = vmax.f32 %v1696_v45, 0.0  ;;  %v1844_v52 = vmax.f32 %v1746_v48, 0.0 }
 0x18f   : > { %v2824_v53 = vpack.c.bf16 %v1794_v51, %v1793_v50  ;;  %v2949_v54 = vpack.c.bf16 %v1844_v52, %v1843_v47 }
 0x190   : > { %v1086_v56 = vpop.f32.mrb[56].mxu0  ;;  %v1286_v57 = vpop.f32.mrb[56].mxu1 }
 0x191   : > { %3013 = vst [vmem:[%s3831_s30 + $0x68] sm:$0xff] %v2824_v53   ;;  %3038 = vst [vmem:[%s3831_s30 + $0x130] sm:$0xff] %v2949_v54   ;;  %v1697_v58 = vadd.f32 %v3820_v55, %v1086_v56  ;;  %v3159_v59 = vpop.f32.mrb[57].mxu0  ;;  %v1747_v60 = vadd.f32 %v3820_v55, %v1286_v57  ;;  %v3259_v61 = vpop.f32.mrb[57].mxu1 }
 0x192   : > { %v1089_v62 = vpop.f32.mrb[58].mxu0  ;;  %v1289_v63 = vpop.f32.mrb[58].mxu1 }
 0x193   : > { %v1698_v1 = vadd.f32 %v3820_v55, %v1089_v62  ;;  %v3160_v2 = vpop.f32.mrb[59].mxu0  ;;  %v1845_v0 = vmax.f32 %v1747_v60, 0.0  ;;  %v1748_v3 = vadd.f32 %v3820_v55, %v1289_v63  ;;  %v3260_v4 = vpop.f32.mrb[59].mxu1  ;;  %v1795_v5 = vmax.f32 %v1697_v58, 0.0 }
 0x195   : > { %v1796_v6 = vmax.f32 %v1698_v1, 0.0  ;;  %v1846_v7 = vmax.f32 %v1748_v3, 0.0 }
 0x197   : > { %v2829_v8 = vpack.c.bf16 %v1796_v6, %v1795_v5  ;;  %v2954_v9 = vpack.c.bf16 %v1846_v7, %v1845_v0 }
 0x198   : > { %v1094_v10 = vpop.f32.mrb[60].mxu0  ;;  %v1294_v11 = vpop.f32.mrb[60].mxu1 }
 0x199   : > { %3014 = vst [vmem:[%s3831_s30 + $0x70] sm:$0xff] %v2829_v8   ;;  %3039 = vst [vmem:[%s3831_s30 + $0x138] sm:$0xff] %v2954_v9   ;;  %v1699_v12 = vadd.f32 %v3820_v55, %v1094_v10  ;;  %v3163_v13 = vpop.f32.mrb[61].mxu0  ;;  %v1749_v14 = vadd.f32 %v3820_v55, %v1294_v11  ;;  %v3263_v15 = vpop.f32.mrb[61].mxu1 }
 0x19a   : > { %v1097_v16 = vpop.f32.mrb[62].mxu0  ;;  %v1297_v17 = vpop.f32.mrb[62].mxu1 }
 0x19b   : > { %v1700_v18 = vadd.f32 %v3820_v55, %v1097_v16  ;;  %v3164_v19 = vpop.f32.mrb[63].mxu0  ;;  %v1847_v20 = vmax.f32 %v1749_v14, 0.0  ;;  %v1750_v21 = vadd.f32 %v3820_v55, %v1297_v17  ;;  %v3264_v22 = vpop.f32.mrb[63].mxu1  ;;  %v1797_v23 = vmax.f32 %v1699_v12, 0.0 }
 0x19d   : > { %v1798_v24 = vmax.f32 %v1700_v18, 0.0  ;;  %v1848_v25 = vmax.f32 %v1750_v21, 0.0 }
 0x19f   : > { %v2834_v26 = vpack.c.bf16 %v1798_v24, %v1797_v23  ;;  %v2959_v27 = vpack.c.bf16 %v1848_v25, %v1847_v20 }
 0x1a0   : > { %v1102_v28 = vpop.f32.mrb[64].mxu0  ;;  %v1302_v29 = vpop.f32.mrb[64].mxu1 }
 0x1a1   : > { %3015 = vst [vmem:[%s3831_s30 + $0x78] sm:$0xff] %v2834_v26   ;;  %3040 = vst [vmem:[%s3831_s30 + $0x140] sm:$0xff] %v2959_v27   ;;  %v1701_v30 = vadd.f32 %v3820_v55, %v1102_v28  ;;  %v3167_v31 = vpop.f32.mrb[65].mxu0  ;;  %v1751_v32 = vadd.f32 %v3820_v55, %v1302_v29  ;;  %v3267_v33 = vpop.f32.mrb[65].mxu1 }
 0x1a2   : > { %v1105_v34 = vpop.f32.mrb[66].mxu0  ;;  %v1305_v35 = vpop.f32.mrb[66].mxu1 }
 0x1a3   : > { %v1702_v36 = vadd.f32 %v3820_v55, %v1105_v34  ;;  %v3168_v37 = vpop.f32.mrb[67].mxu0  ;;  %v1849_v38 = vmax.f32 %v1751_v32, 0.0  ;;  %v1752_v39 = vadd.f32 %v3820_v55, %v1305_v35  ;;  %v3268_v40 = vpop.f32.mrb[67].mxu1  ;;  %v1799_v41 = vmax.f32 %v1701_v30, 0.0 }
 0x1a5   : > { %v1800_v42 = vmax.f32 %v1702_v36, 0.0  ;;  %v1850_v43 = vmax.f32 %v1752_v39, 0.0 }
 0x1a7   : > { %v2839_v44 = vpack.c.bf16 %v1800_v42, %v1799_v41  ;;  %v2964_v45 = vpack.c.bf16 %v1850_v43, %v1849_v38 }
 0x1a8   : > { %v1110_v46 = vpop.f32.mrb[68].mxu0  ;;  %v1310_v47 = vpop.f32.mrb[68].mxu1 }
 0x1a9   : > { %3016 = vst [vmem:[%s3831_s30 + $0x80] sm:$0xff] %v2839_v44   ;;  %3041 = vst [vmem:[%s3831_s30 + $0x148] sm:$0xff] %v2964_v45   ;;  %v1703_v48 = vadd.f32 %v3820_v55, %v1110_v46  ;;  %v3171_v49 = vpop.f32.mrb[69].mxu0  ;;  %v1753_v50 = vadd.f32 %v3820_v55, %v1310_v47  ;;  %v3271_v51 = vpop.f32.mrb[69].mxu1 }
 0x1aa   : > { %v1113_v52 = vpop.f32.mrb[70].mxu0  ;;  %v1313_v53 = vpop.f32.mrb[70].mxu1 }
 0x1ab   : > { %v1704_v54 = vadd.f32 %v3820_v55, %v1113_v52  ;;  %v3172_v56 = vpop.f32.mrb[71].mxu0  ;;  %v1851_v57 = vmax.f32 %v1753_v50, 0.0  ;;  %v1754_v58 = vadd.f32 %v3820_v55, %v1313_v53  ;;  %v3272_v59 = vpop.f32.mrb[71].mxu1  ;;  %v1801_v60 = vmax.f32 %v1703_v48, 0.0 }
 0x1ad   : > { %v1802_v61 = vmax.f32 %v1704_v54, 0.0  ;;  %v1852_v62 = vmax.f32 %v1754_v58, 0.0 }
 0x1af   : > { %v2844_v63 = vpack.c.bf16 %v1802_v61, %v1801_v60  ;;  %v2969_v1 = vpack.c.bf16 %v1852_v62, %v1851_v57 }
 0x1b0   : > { %v1118_v2 = vpop.f32.mrb[72].mxu0  ;;  %v1318_v0 = vpop.f32.mrb[72].mxu1 }
 0x1b1   : > { %3017 = vst [vmem:[%s3831_s30 + $0x88] sm:$0xff] %v2844_v63   ;;  %3042 = vst [vmem:[%s3831_s30 + $0x150] sm:$0xff] %v2969_v1   ;;  %v1705_v3 = vadd.f32 %v3820_v55, %v1118_v2  ;;  %v3175_v4 = vpop.f32.mrb[73].mxu0  ;;  %v1755_v5 = vadd.f32 %v3820_v55, %v1318_v0  ;;  %v3275_v6 = vpop.f32.mrb[73].mxu1 }
 0x1b2   : > { %v1121_v7 = vpop.f32.mrb[74].mxu0  ;;  %v1321_v8 = vpop.f32.mrb[74].mxu1 }
 0x1b3   : > { %v1706_v9 = vadd.f32 %v3820_v55, %v1121_v7  ;;  %v3176_v10 = vpop.f32.mrb[75].mxu0  ;;  %v1853_v11 = vmax.f32 %v1755_v5, 0.0  ;;  %v1756_v12 = vadd.f32 %v3820_v55, %v1321_v8  ;;  %v3276_v13 = vpop.f32.mrb[75].mxu1  ;;  %v1803_v14 = vmax.f32 %v1705_v3, 0.0 }
 0x1b5   : > { %v1804_v15 = vmax.f32 %v1706_v9, 0.0  ;;  %v1854_v16 = vmax.f32 %v1756_v12, 0.0 }
 0x1b7   : > { %v2849_v17 = vpack.c.bf16 %v1804_v15, %v1803_v14  ;;  %v2974_v18 = vpack.c.bf16 %v1854_v16, %v1853_v11 }
 0x1b8   : > { %v1126_v19 = vpop.f32.mrb[76].mxu0  ;;  %v1326_v20 = vpop.f32.mrb[76].mxu1 }
 0x1b9   : > { %3018 = vst [vmem:[%s3831_s30 + $0x90] sm:$0xff] %v2849_v17   ;;  %3043 = vst [vmem:[%s3831_s30 + $0x158] sm:$0xff] %v2974_v18   ;;  %v1707_v21 = vadd.f32 %v3820_v55, %v1126_v19  ;;  %v3179_v22 = vpop.f32.mrb[77].mxu0  ;;  %v1757_v23 = vadd.f32 %v3820_v55, %v1326_v20  ;;  %v3279_v24 = vpop.f32.mrb[77].mxu1 }
 0x1ba   : > { %v1129_v25 = vpop.f32.mrb[78].mxu0  ;;  %v1329_v26 = vpop.f32.mrb[78].mxu1 }
 0x1bb   : > { %v1708_v27 = vadd.f32 %v3820_v55, %v1129_v25  ;;  %v3180_v28 = vpop.f32.mrb[79].mxu0  ;;  %v1855_v29 = vmax.f32 %v1757_v23, 0.0  ;;  %v1758_v30 = vadd.f32 %v3820_v55, %v1329_v26  ;;  %v3280_v31 = vpop.f32.mrb[79].mxu1  ;;  %v1805_v32 = vmax.f32 %v1707_v21, 0.0 }
 0x1bd   : > { %v1806_v33 = vmax.f32 %v1708_v27, 0.0  ;;  %v1856_v34 = vmax.f32 %v1758_v30, 0.0 }
 0x1bf   : > { %v2854_v35 = vpack.c.bf16 %v1806_v33, %v1805_v32  ;;  %v2979_v36 = vpack.c.bf16 %v1856_v34, %v1855_v29 }
 0x1c0   : > { %v1134_v37 = vpop.f32.mrb[80].mxu0  ;;  %v1334_v38 = vpop.f32.mrb[80].mxu1 }
 0x1c1   : > { %3019 = vst [vmem:[%s3831_s30 + $0x98] sm:$0xff] %v2854_v35   ;;  %3044 = vst [vmem:[%s3831_s30 + $0x160] sm:$0xff] %v2979_v36   ;;  %v1709_v39 = vadd.f32 %v3820_v55, %v1134_v37  ;;  %v3183_v40 = vpop.f32.mrb[81].mxu0  ;;  %v1759_v41 = vadd.f32 %v3820_v55, %v1334_v38  ;;  %v3283_v42 = vpop.f32.mrb[81].mxu1 }
 0x1c2   : > { %v1137_v43 = vpop.f32.mrb[82].mxu0  ;;  %v1337_v44 = vpop.f32.mrb[82].mxu1 }
 0x1c3   : > { %v1710_v45 = vadd.f32 %v3820_v55, %v1137_v43  ;;  %v3184_v46 = vpop.f32.mrb[83].mxu0  ;;  %v1857_v47 = vmax.f32 %v1759_v41, 0.0  ;;  %v1760_v48 = vadd.f32 %v3820_v55, %v1337_v44  ;;  %v3284_v49 = vpop.f32.mrb[83].mxu1  ;;  %v1807_v50 = vmax.f32 %v1709_v39, 0.0 }
 0x1c5   : > { %v1808_v51 = vmax.f32 %v1710_v45, 0.0  ;;  %v1858_v52 = vmax.f32 %v1760_v48, 0.0 }
 0x1c7   : > { %v2859_v53 = vpack.c.bf16 %v1808_v51, %v1807_v50  ;;  %v2984_v54 = vpack.c.bf16 %v1858_v52, %v1857_v47 }
 0x1c8   : > { %v1142_v56 = vpop.f32.mrb[84].mxu0  ;;  %v1342_v57 = vpop.f32.mrb[84].mxu1 }
 0x1c9   : > { %3020 = vst [vmem:[%s3831_s30 + $0xa0] sm:$0xff] %v2859_v53   ;;  %3045 = vst [vmem:[%s3831_s30 + $0x168] sm:$0xff] %v2984_v54   ;;  %v1711_v58 = vadd.f32 %v3820_v55, %v1142_v56  ;;  %v3187_v59 = vpop.f32.mrb[85].mxu0  ;;  %v1761_v60 = vadd.f32 %v3820_v55, %v1342_v57  ;;  %v3287_v61 = vpop.f32.mrb[85].mxu1 }
 0x1ca   : > { %v1145_v62 = vpop.f32.mrb[86].mxu0  ;;  %v1345_v63 = vpop.f32.mrb[86].mxu1 }
 0x1cb   : > { %v1712_v1 = vadd.f32 %v3820_v55, %v1145_v62  ;;  %v3188_v2 = vpop.f32.mrb[87].mxu0  ;;  %v1859_v0 = vmax.f32 %v1761_v60, 0.0  ;;  %v1762_v3 = vadd.f32 %v3820_v55, %v1345_v63  ;;  %v3288_v4 = vpop.f32.mrb[87].mxu1  ;;  %v1809_v5 = vmax.f32 %v1711_v58, 0.0 }
 0x1cd   : > { %v1810_v6 = vmax.f32 %v1712_v1, 0.0  ;;  %v1860_v7 = vmax.f32 %v1762_v3, 0.0 }
 0x1cf   : > { %v2864_v8 = vpack.c.bf16 %v1810_v6, %v1809_v5  ;;  %v2989_v9 = vpack.c.bf16 %v1860_v7, %v1859_v0 }
 0x1d0   : > { %v1150_v10 = vpop.f32.mrb[88].mxu0  ;;  %v1350_v11 = vpop.f32.mrb[88].mxu1 }
 0x1d1   : > { %3021 = vst [vmem:[%s3831_s30 + $0xa8] sm:$0xff] %v2864_v8   ;;  %3046 = vst [vmem:[%s3831_s30 + $0x170] sm:$0xff] %v2989_v9   ;;  %v1713_v12 = vadd.f32 %v3820_v55, %v1150_v10  ;;  %v3191_v13 = vpop.f32.mrb[89].mxu0  ;;  %v1763_v14 = vadd.f32 %v3820_v55, %v1350_v11  ;;  %v3291_v15 = vpop.f32.mrb[89].mxu1 }
 0x1d2   : > { %v1153_v16 = vpop.f32.mrb[90].mxu0  ;;  %v1353_v17 = vpop.f32.mrb[90].mxu1 }
 0x1d3   : > { %v1714_v18 = vadd.f32 %v3820_v55, %v1153_v16  ;;  %v3192_v19 = vpop.f32.mrb[91].mxu0  ;;  %v1861_v20 = vmax.f32 %v1763_v14, 0.0  ;;  %v1764_v21 = vadd.f32 %v3820_v55, %v1353_v17  ;;  %v3292_v22 = vpop.f32.mrb[91].mxu1  ;;  %v1811_v23 = vmax.f32 %v1713_v12, 0.0 }
 0x1d5   : > { %v1812_v24 = vmax.f32 %v1714_v18, 0.0  ;;  %v1862_v25 = vmax.f32 %v1764_v21, 0.0 }
 0x1d7   : > { %v2869_v26 = vpack.c.bf16 %v1812_v24, %v1811_v23  ;;  %v2994_v27 = vpack.c.bf16 %v1862_v25, %v1861_v20 }
 0x1d8   : > { %v1158_v28 = vpop.f32.mrb[92].mxu0  ;;  %v1358_v29 = vpop.f32.mrb[92].mxu1 }
 0x1d9   : > { %3022 = vst [vmem:[%s3831_s30 + $0xb0] sm:$0xff] %v2869_v26   ;;  %3047 = vst [vmem:[%s3831_s30 + $0x178] sm:$0xff] %v2994_v27   ;;  %v1715_v30 = vadd.f32 %v3820_v55, %v1158_v28  ;;  %v3195_v31 = vpop.f32.mrb[93].mxu0  ;;  %v1765_v32 = vadd.f32 %v3820_v55, %v1358_v29  ;;  %v3295_v33 = vpop.f32.mrb[93].mxu1 }
 0x1da   : > { %v1161_v34 = vpop.f32.mrb[94].mxu0  ;;  %v1361_v35 = vpop.f32.mrb[94].mxu1 }
 0x1db   : > { %v1716_v36 = vadd.f32 %v3820_v55, %v1161_v34  ;;  %v3196_v37 = vpop.f32.mrb[95].mxu0  ;;  %v1863_v38 = vmax.f32 %v1765_v32, 0.0  ;;  %v1766_v39 = vadd.f32 %v3820_v55, %v1361_v35  ;;  %v3296_v40 = vpop.f32.mrb[95].mxu1  ;;  %v1813_v41 = vmax.f32 %v1715_v30, 0.0 }
 0x1dd   : > { %v1814_v42 = vmax.f32 %v1716_v36, 0.0  ;;  %v1864_v43 = vmax.f32 %v1766_v39, 0.0 }
 0x1df   : > { %v2874_v44 = vpack.c.bf16 %v1814_v42, %v1813_v41  ;;  %v2999_v45 = vpack.c.bf16 %v1864_v43, %v1863_v38 }
 0x1e0   : > { %v1166_v46 = vpop.f32.mrb[96].mxu0 }
 0x1e1   : > { %3023 = vst [vmem:[%s3831_s30 + $0xb8] sm:$0xff] %v2874_v44   ;;  %3048 = vst [vmem:[%s3831_s30 + $0x180] sm:$0xff] %v2999_v45   ;;  %v1717_v47 = vadd.f32 %v3820_v55, %v1166_v46  ;;  %v3199_v48 = vpop.f32.mrb[97].mxu0 }
 0x1e2   : > { %v1169_v49 = vpop.f32.mrb[98].mxu0 }
 0x1e3   : > { %v1718_v50 = vadd.f32 %v3820_v55, %v1169_v49  ;;  %v3200_v51 = vpop.f32.mrb[99].mxu0  ;;  %v1815_v52 = vmax.f32 %v1717_v47, 0.0 }
 0x1e5   : > { %v1816_v53 = vmax.f32 %v1718_v50, 0.0 }
 0x1e7   : > { %v2879_v54 = vpack.c.bf16 %v1816_v53, %v1815_v52 }
 0x1e9   : > { %3024 = vst [vmem:[%s3831_s30 + $0xc0] sm:$0xff] %v2879_v54  }
 0x1ea PF: > { %s15_s14 = sadd.s32 1, %s3485_s14   ;;  %s3997_s12 = smov %s3481_s13 }
 0x1eb   : > { %p12_p3 = scmp.ge.s32.totalorder %s15_s14, 4   ;;  %s3998_s13 = smov %s4000_s16 }
 0x1ed   :  { %14 = sbr.rel (!%p12_p3) target bundleno = 3 (0x3), region = 80 }
 0x1f4   :  { %2377 = vsyncpa [#allocation4], 1 }
 0x1f5   :  { %2379 = vsyncpa [#allocation4 + $0x1], 1 }
 0x1f6   :  { %2380 = vsyncpa [#allocation6], 1 }

// kernel: feature_network.7
= control target key start
LH: loop header
LB: loop body
LE: loop exit
PB: predicated region body
PF: predicated region fallthrough
CT: control target
= control target key end

     0   :  { %s542_s6 = smov 0   ;;  %s675_s0 = inlined_call_operand.vmem [shape: bf16[2,9,81,128], index: 0, kind: input, shape index: {}]   ;;  %s676_s1 = inlined_call_operand.vmem [shape: bf16[2,81,128], index: 1, kind: output, shape index: {}]  }
   0x1 LB: > { %s383_s7 = sadd.s32 4294967295, %s530_s6   ;;  %p387_p0 = scmp.ge.s32.totalorder %s530_s6, 1  ;;  %s530_s6 = sphi %s542_s6, %s11_s6  }
   0x2   : > { %p87_p1 = scmp.lt.s32.totalorder %s530_s6, 3 }
   0x4   : > { %p88_p2 = pnand %p387_p0, %p87_p1 }
   0x5   : > { %p107_p3 = scmp.lt.s32.totalorder (!%p88_p2), %s383_s7, 1  ;;  %vm322_vm0 = vcmask (!%p88_p2), 1040384   ;;  %vm323_vm1 = vsmask.f32 (!%p88_p2), 256 }
   0x6   : > { %91 = sbr.rel (%p88_p2) target bundleno = 64 (0x40), region = 24  ;;  %vm324_vm2 = vmand (!%p88_p2), %vm322_vm0, %vm323_vm1 }
   0xd   : > { %s678_s7 = smov (!%p107_p3, %s383_s7), 1 }
   0xe   : > { %s514_s8 = smul.u32 396, %s678_s7 }
   0xf   : > { %s515_s12 = smul.u32 44, %s678_s7 }
  0x10   : > { %s556_s11 = scalar_lea.vmem %s675_s0, %s514_s8 }
  0x11   : > { %v117_v0 = vld [vmem:[%s556_s11] sm:$0xf]  ;;  %v118_v1 = vld [vmem:[%s556_s11 + $0x4] sm:$0xf]  ;;  %v390_v2 = vld [vmem:[%s556_s11 + $0x2c] sm:$0xf]  ;;  %s615_s15 = scalar_lea.vmem %s676_s1, %s515_s12 }
  0x12   : > { %v391_v3 = vld [vmem:[%s556_s11 + $0x30] sm:$0xf]  ;;  %v140_v4 = vmax.bf16 %v390_v2, %v117_v0  ;;  %v401_v5 = vld [vmem:[%s556_s11 + $0x58] sm:$0xf]  ;;  %v402_v6 = vld [vmem:[%s556_s11 + $0x5c] sm:$0xf] }
  0x13   : > { %v141_v7 = vmax.bf16 %v391_v3, %v118_v1  ;;  %v412_v8 = vld [vmem:[%s556_s11 + $0x84] sm:$0xf]  ;;  %v413_v10 = vld [vmem:[%s556_s11 + $0x88] sm:$0xf]  ;;  %v423_v12 = vld [vmem:[%s556_s11 + $0xb0] sm:$0xf] }
  0x14   : > { %v163_v9 = vmax.bf16 %v401_v5, %v140_v4  ;;  %v424_v14 = vld [vmem:[%s556_s11 + $0xb4] sm:$0xf]  ;;  %v434_v15 = vld [vmem:[%s556_s11 + $0xdc] sm:$0xf]  ;;  %v435_v16 = vld [vmem:[%s556_s11 + $0xe0] sm:$0xf] }
  0x15   : > { %v164_v11 = vmax.bf16 %v402_v6, %v141_v7  ;;  %v119_v18 = vld [vmem:[%s556_s11 + $0x8] sm:$0xf]  ;;  %v120_v19 = vld [vmem:[%s556_s11 + $0xc] sm:$0xf]  ;;  %v392_v20 = vld [vmem:[%s556_s11 + $0x34] sm:$0xf] }
  0x16   : > { %v186_v13 = vmax.bf16 %v412_v8, %v163_v9  ;;  %v393_v22 = vld [vmem:[%s556_s11 + $0x38] sm:$0xf]  ;;  %v142_v23 = vmax.bf16 %v392_v20, %v119_v18  ;;  %v403_v24 = vld [vmem:[%s556_s11 + $0x60] sm:$0xf]  ;;  %v404_v25 = vld [vmem:[%s556_s11 + $0x64] sm:$0xf] }
  0x17   : > { %v187_v17 = vmax.bf16 %v413_v10, %v164_v11  ;;  %v445_v27 = vld [vmem:[%s556_s11 + $0x108] sm:$0xf]  ;;  %v143_v28 = vmax.bf16 %v393_v22, %v120_v19  ;;  %v414_v29 = vld [vmem:[%s556_s11 + $0x8c] sm:$0xf]  ;;  %v456_v32 = vld [vmem:[%s556_s11 + $0x134] sm:$0xf] }
  0x18   : > { %v209_v21 = vmax.bf16 %v423_v12, %v186_v13  ;;  %v446_v31 = vld [vmem:[%s556_s11 + $0x10c] sm:$0xf]  ;;  %v165_v33 = vmax.bf16 %v403_v24, %v142_v23  ;;  %v415_v34 = vld [vmem:[%s556_s11 + $0x90] sm:$0xf]  ;;  %v457_v36 = vld [vmem:[%s556_s11 + $0x138] sm:$0xf] }
  0x19   : > { %v210_v26 = vmax.bf16 %v424_v14, %v187_v17  ;;  %v467_v37 = vld [vmem:[%s556_s11 + $0x160] sm:$0xf]  ;;  %v166_v38 = vmax.bf16 %v404_v25, %v143_v28  ;;  %v425_v39 = vld [vmem:[%s556_s11 + $0xb8] sm:$0xf]  ;;  %v468_v41 = vld [vmem:[%s556_s11 + $0x164] sm:$0xf] }
  0x1a   : > { %v232_v30 = vmax.bf16 %v434_v15, %v209_v21  ;;  %v188_v42 = vmax.bf16 %v414_v29, %v165_v33  ;;  %v426_v43 = vld [vmem:[%s556_s11 + $0xbc] sm:$0xf]  ;;  %v436_v44 = vld [vmem:[%s556_s11 + $0xe4] sm:$0xf]  ;;  %v437_v45 = vld [vmem:[%s556_s11 + $0xe8] sm:$0xf] }
  0x1b   : > { %v233_v35 = vmax.bf16 %v435_v16, %v210_v26  ;;  %v189_v47 = vmax.bf16 %v415_v34, %v166_v38  ;;  %v121_v48 = vld [vmem:[%s556_s11 + $0x10] sm:$0xf]  ;;  %v122_v49 = vld [vmem:[%s556_s11 + $0x14] sm:$0xf]  ;;  %v394_v50 = vld [vmem:[%s556_s11 + $0x3c] sm:$0xf] }
  0x1c   : > { %v255_v40 = vmax.bf16 %v445_v27, %v232_v30  ;;  %v211_v52 = vmax.bf16 %v425_v39, %v188_v42  ;;  %v395_v53 = vld [vmem:[%s556_s11 + $0x40] sm:$0xf]  ;;  %v144_v54 = vmax.bf16 %v394_v50, %v121_v48  ;;  %v405_v55 = vld [vmem:[%s556_s11 + $0x68] sm:$0xf]  ;;  %v406_v56 = vld [vmem:[%s556_s11 + $0x6c] sm:$0xf] }
  0x1d   : > { %v256_v46 = vmax.bf16 %v446_v31, %v233_v35  ;;  %v212_v58 = vmax.bf16 %v426_v43, %v189_v47  ;;  %v447_v59 = vld [vmem:[%s556_s11 + $0x110] sm:$0xf]  ;;  %v145_v60 = vmax.bf16 %v395_v53, %v122_v49  ;;  %v416_v61 = vld [vmem:[%s556_s11 + $0x94] sm:$0xf]  ;;  %v458_v1 = vld [vmem:[%s556_s11 + $0x13c] sm:$0xf] }
  0x1e   : > { %v278_v51 = vmax.bf16 %v456_v32, %v255_v40  ;;  %v234_v63 = vmax.bf16 %v436_v44, %v211_v52  ;;  %v448_v0 = vld [vmem:[%s556_s11 + $0x114] sm:$0xf]  ;;  %v167_v2 = vmax.bf16 %v405_v55, %v144_v54  ;;  %v417_v3 = vld [vmem:[%s556_s11 + $0x98] sm:$0xf]  ;;  %v459_v6 = vld [vmem:[%s556_s11 + $0x140] sm:$0xf] }
  0x1f   : > { %v279_v57 = vmax.bf16 %v457_v36, %v256_v46  ;;  %v235_v5 = vmax.bf16 %v437_v45, %v212_v58  ;;  %v469_v7 = vld [vmem:[%s556_s11 + $0x168] sm:$0xf]  ;;  %v168_v8 = vmax.bf16 %v406_v56, %v145_v60  ;;  %v427_v9 = vld [vmem:[%s556_s11 + $0xc0] sm:$0xf]  ;;  %v470_v11 = vld [vmem:[%s556_s11 + $0x16c] sm:$0xf] }
  0x20   : > { %v301_v62 = vmax.bf16 %v467_v37, %v278_v51  ;;  %v257_v10 = vmax.bf16 %v447_v59, %v234_v63  ;;  %v190_v12 = vmax.bf16 %v416_v61, %v167_v2  ;;  %v428_v13 = vld [vmem:[%s556_s11 + $0xc4] sm:$0xf]  ;;  %v438_v14 = vld [vmem:[%s556_s11 + $0xec] sm:$0xf]  ;;  %v439_v15 = vld [vmem:[%s556_s11 + $0xf0] sm:$0xf] }
  0x21   : > { %v302_v4 = vmax.bf16 %v468_v41, %v279_v57  ;;  %v258_v17 = vmax.bf16 %v448_v0, %v235_v5  ;;  %v191_v18 = vmax.bf16 %v417_v3, %v168_v8  ;;  %v123_v19 = vld [vmem:[%s556_s11 + $0x18] sm:$0xf]  ;;  %v124_v20 = vld [vmem:[%s556_s11 + $0x1c] sm:$0xf]  ;;  %v396_v21 = vld [vmem:[%s556_s11 + $0x44] sm:$0xf] }
  0x22   : > { %v280_v22 = vmax.bf16 %v458_v1, %v257_v10  ;;  %v213_v23 = vmax.bf16 %v427_v9, %v190_v12  ;;  %v397_v24 = vld [vmem:[%s556_s11 + $0x48] sm:$0xf]  ;;  %v146_v25 = vmax.bf16 %v396_v21, %v123_v19  ;;  %v407_v26 = vld [vmem:[%s556_s11 + $0x70] sm:$0xf]  ;;  %v408_v27 = vld [vmem:[%s556_s11 + $0x74] sm:$0xf] }
  0x23   : > { %v505_v16 = vcombine.low %v301_v62, %v302_v4  ;;  %v281_v28 = vmax.bf16 %v459_v6, %v258_v17  ;;  %v214_v29 = vmax.bf16 %v428_v13, %v191_v18  ;;  %v449_v30 = vld [vmem:[%s556_s11 + $0x118] sm:$0xf]  ;;  %v147_v31 = vmax.bf16 %v397_v24, %v124_v20  ;;  %v418_v32 = vld [vmem:[%s556_s11 + $0x9c] sm:$0xf]  ;;  %v460_v36 = vld [vmem:[%s556_s11 + $0x144] sm:$0xf] }
  0x24   : > { %v303_v33 = vmax.bf16 %v469_v7, %v280_v22  ;;  %v236_v34 = vmax.bf16 %v438_v14, %v213_v23  ;;  %v450_v35 = vld [vmem:[%s556_s11 + $0x11c] sm:$0xf]  ;;  %v169_v37 = vmax.bf16 %v407_v26, %v146_v25  ;;  %v419_v38 = vld [vmem:[%s556_s11 + $0xa0] sm:$0xf]  ;;  %v461_v41 = vld [vmem:[%s556_s11 + $0x148] sm:$0xf] }
  0x25   : > { %484 = vst [vmem:[%s615_s15] sm:$0xff] %v505_v16   ;;  %v304_v39 = vmax.bf16 %v470_v11, %v281_v28  ;;  %v237_v40 = vmax.bf16 %v439_v15, %v214_v29  ;;  %v471_v42 = vld [vmem:[%s556_s11 + $0x170] sm:$0xf]  ;;  %v170_v43 = vmax.bf16 %v408_v27, %v147_v31  ;;  %v429_v44 = vld [vmem:[%s556_s11 + $0xc8] sm:$0xf]  ;;  %v472_v46 = vld [vmem:[%s556_s11 + $0x174] sm:$0xf] }
  0x26   : > { %v259_v45 = vmax.bf16 %v449_v30, %v236_v34  ;;  %v192_v47 = vmax.bf16 %v418_v32, %v169_v37  ;;  %v430_v48 = vld [vmem:[%s556_s11 + $0xcc] sm:$0xf]  ;;  %v440_v49 = vld [vmem:[%s556_s11 + $0xf4] sm:$0xf]  ;;  %v441_v50 = vld [vmem:[%s556_s11 + $0xf8] sm:$0xf] }
  0x27   : > { %v506_v51 = vcombine.low %v303_v33, %v304_v39  ;;  %v260_v52 = vmax.bf16 %v450_v35, %v237_v40  ;;  %v193_v53 = vmax.bf16 %v419_v38, %v170_v43  ;;  %v125_v54 = vld [vmem:[%s556_s11 + $0x20] sm:$0xf]  ;;  %v126_v55 = vld [vmem:[%s556_s11 + $0x24] sm:$0xf]  ;;  %v398_v56 = vld [vmem:[%s556_s11 + $0x4c] sm:$0xf] }
  0x28   : > { %v282_v57 = vmax.bf16 %v460_v36, %v259_v45  ;;  %v215_v58 = vmax.bf16 %v429_v44, %v192_v47  ;;  %v399_v59 = vld [vmem:[%s556_s11 + $0x50] sm:$0xf]  ;;  %v148_v60 = vmax.bf16 %v398_v56, %v125_v54  ;;  %v409_v61 = vld [vmem:[%s556_s11 + $0x78] sm:$0xf]  ;;  %v410_v62 = vld [vmem:[%s556_s11 + $0x7c] sm:$0xf] }
  0x29   : > { %507 = vst [vmem:[%s615_s15 + $0x8] sm:$0xff] %v506_v51   ;;  %v283_v63 = vmax.bf16 %v461_v41, %v260_v52  ;;  %v216_v0 = vmax.bf16 %v430_v48, %v193_v53  ;;  %v451_v1 = vld [vmem:[%s556_s11 + $0x120] sm:$0xf]  ;;  %v149_v2 = vmax.bf16 %v399_v59, %v126_v55  ;;  %v420_v3 = vld [vmem:[%s556_s11 + $0xa4] sm:$0xf] }
  0x2a   : > { %v305_v4 = vmax.bf16 %v471_v42, %v282_v57  ;;  %v238_v5 = vmax.bf16 %v440_v49, %v215_v58  ;;  %v452_v6 = vld [vmem:[%s556_s11 + $0x124] sm:$0xf]  ;;  %v171_v7 = vmax.bf16 %v409_v61, %v148_v60  ;;  %v421_v8 = vld [vmem:[%s556_s11 + $0xa8] sm:$0xf]  ;;  %v462_v11 = vld [vmem:[%s556_s11 + $0x14c] sm:$0xf] }
  0x2b   : > { %v306_v9 = vmax.bf16 %v472_v46, %v283_v63  ;;  %v239_v10 = vmax.bf16 %v441_v50, %v216_v0  ;;  %v463_v12 = vld [vmem:[%s556_s11 + $0x150] sm:$0xf]  ;;  %v172_v13 = vmax.bf16 %v410_v62, %v149_v2  ;;  %v473_v16 = vld [vmem:[%s556_s11 + $0x178] sm:$0xf]  ;;  %v432_v18 = vld [vmem:[%s556_s11 + $0xd4] sm:$0xf] }
  0x2c   : > { %v431_v14 = vld [vmem:[%s556_s11 + $0xd0] sm:$0xf]  ;;  %v261_v15 = vmax.bf16 %v451_v1, %v238_v5  ;;  %v194_v17 = vmax.bf16 %v420_v3, %v171_v7  ;;  %v442_v19 = vld [vmem:[%s556_s11 + $0xfc] sm:$0xf]  ;;  %v127_v23 = vld [vmem:[%s556_s11 + $0x28] sm:$0x1] }
  0x2d   : > { %v508_v20 = vcombine.low %v305_v4, %v306_v9  ;;  %v262_v21 = vmax.bf16 %v452_v6, %v239_v10  ;;  %v195_v22 = vmax.bf16 %v421_v8, %v172_v13  ;;  %v400_v24 = vld [vmem:[%s556_s11 + $0x54] sm:$0x1]  ;;  %v411_v25 = vld [vmem:[%s556_s11 + $0x80] sm:$0x1]  ;;  %v474_v27 = vld [vmem:[%s556_s11 + $0x17c] sm:$0xf] }
  0x2e   : > { %v284_v26 = vmax.bf16 %v462_v11, %v261_v15  ;;  %v217_v28 = vmax.bf16 %v431_v14, %v194_v17  ;;  %v443_v29 = vld [vmem:[%s556_s11 + $0x100] sm:$0xf]  ;;  %v150_v30 = vmax.bf16 %v400_v24, %v127_v23  ;;  %v453_v33 = vld [vmem:[%s556_s11 + $0x128] sm:$0xf]  ;;  %v422_v34 = vld [vmem:[%s556_s11 + $0xac] sm:$0x1] }
  0x2f   : > { %509 = vst [vmem:[%s615_s15 + $0x10] sm:$0xff] %v508_v20   ;;  %v285_v31 = vmax.bf16 %v463_v12, %v262_v21  ;;  %v218_v32 = vmax.bf16 %v432_v18, %v195_v22  ;;  %v454_v37 = vld [vmem:[%s556_s11 + $0x12c] sm:$0xf]  ;;  %v464_v41 = vld [vmem:[%s556_s11 + $0x154] sm:$0xf] }
  0x30   : > { %v307_v35 = vmax.bf16 %v473_v16, %v284_v26  ;;  %v240_v36 = vmax.bf16 %v442_v19, %v217_v28  ;;  %v173_v38 = vmax.bf16 %v411_v25, %v150_v30  ;;  %v433_v42 = vld [vmem:[%s556_s11 + $0xd8] sm:$0x1]  ;;  %v475_v48 = vld [vmem:[%s556_s11 + $0x180] sm:$0xf]  ;;  %v444_v49 = vld [vmem:[%s556_s11 + $0x104] sm:$0x1] }
  0x31   : > { %v308_v39 = vmax.bf16 %v474_v27, %v285_v31  ;;  %v241_v40 = vmax.bf16 %v443_v29, %v218_v32  ;;  %v465_v44 = vld [vmem:[%s556_s11 + $0x158] sm:$0xf]  ;;  %v476_v51 = vld [vmem:[%s556_s11 + $0x184] sm:$0xf]  ;;  %v455_v54 = vld [vmem:[%s556_s11 + $0x130] sm:$0x1] }
  0x32   : > { %v263_v43 = vmax.bf16 %v453_v33, %v240_v36  ;;  %v196_v45 = vmax.bf16 %v422_v34, %v173_v38  ;;  %v466_v58 = vld [vmem:[%s556_s11 + $0x15c] sm:$0x1]  ;;  %v477_v61 = vld [vmem:[%s556_s11 + $0x188] sm:$0x1] }
  0x33   : > { %v510_v46 = vcombine.low %v307_v35, %v308_v39  ;;  %v264_v47 = vmax.bf16 %v454_v37, %v241_v40  ;;  %v325_v63 = vld [vmem:[%s615_s15 + $0x28] sm:$0x1] }
  0x34   : > { %v286_v50 = vmax.bf16 %v464_v41, %v263_v43  ;;  %v219_v52 = vmax.bf16 %v433_v42, %v196_v45 }
  0x35   : > { %511 = vst [vmem:[%s615_s15 + $0x18] sm:$0xff] %v510_v46   ;;  %v287_v53 = vmax.bf16 %v465_v44, %v264_v47 }
  0x36   : > { %v309_v55 = vmax.bf16 %v475_v48, %v286_v50  ;;  %v242_v56 = vmax.bf16 %v444_v49, %v219_v52 }
  0x37   : > { %v310_v57 = vmax.bf16 %v476_v51, %v287_v53 }
  0x38   : > { %v265_v59 = vmax.bf16 %v455_v54, %v242_v56 }
  0x39   : > { %v512_v60 = vcombine.low %v309_v55, %v310_v57 }
  0x3a   : > { %v288_v62 = vmax.bf16 %v466_v58, %v265_v59 }
  0x3b   : > { %513 = vst [vmem:[%s615_s15 + $0x20] sm:$0xff] %v512_v60  }
  0x3c   : > { %v311_v0 = vmax.bf16 %v477_v61, %v288_v62 }
  0x3e   : > { %v326_v1 = vsel %vm324_vm2, %v311_v0, %v325_v63 }
  0x3f   : > { %327 = vst [vmem:[%s615_s15 + $0x28] sm:$0x1] %v326_v1 }
  0x40 PF: > { %s11_s6 = sadd.s32 1, %s530_s6  }
  0x41   : > { %p8_p4 = scmp.ge.s32.totalorder %s11_s6, 4  }
  0x43   :  { %10 = sbr.rel (!%p8_p4) target bundleno = 1 (0x1), region = 62 }

// kernel: feature_network.8
= control target key start
LH: loop header
LB: loop body
LE: loop exit
PB: predicated region body
PF: predicated region fallthrough
CT: control target
= control target key end

     0   :  { %v2968_v1 = vmov 0.0   ;;  %vm2969_vm0 = vmmov 0   ;;  %s3707_s1 = inlined_call_operand.vmem [shape: bf16[1152,128], index: 1, kind: input, shape index: {}]   ;;  %s3708_s0 = inlined_call_operand.vmem [shape: bf16[162,1152], index: 0, kind: input, shape index: {}]   ;;  %s3709_s2 = inlined_call_operand.vmem [shape: f32[1,128], index: 2, kind: input, shape index: {}]   ;;  %s3710_s3 = inlined_call_operand.vmem [shape: bf16[162,128], index: 3, kind: output, shape index: {}]  }
   0x1   :  { %v2757_v0 = vld [vmem:[%s3707_s1 + $0x40] sm:$0xff]   ;;  %39 = vst [vmem:[#allocation2 + $0xa0] sm:$0x3] %v2968_v1  ;;  %v2759_v3 = vld [vmem:[%s3707_s1 + $0x48] sm:$0xff]   ;;  %v2761_v5 = vld [vmem:[%s3707_s1 + $0x50] sm:$0xff]  }
   0x2   :  { %v2758_v2 = vld [vmem:[%s3707_s1] sm:$0xff]   ;;  %2332 = vmatprep.subr.bf16.mxu0 %v2757_v0  ;;  %2739 = vmatprep.subr.bf16.mxu1 %v2757_v0  ;;  %v2760_v4 = vld [vmem:[%s3707_s1 + $0x8] sm:$0xff]   ;;  %v2762_v6 = vld [vmem:[%s3707_s1 + $0x10] sm:$0xff]  }
   0x3   :  { %2333 = vmatpush3.bf16.msra.mxu0 %v2758_v2  ;;  %2747 = vmatpush3.bf16.msra.mxu1 %v2758_v2  ;;  %v2763_v7 = vld [vmem:[%s3707_s1 + $0x58] sm:$0xff]   ;;  %v2765_v9 = vld [vmem:[%s3707_s1 + $0x60] sm:$0xff]   ;;  %v2767_v11 = vld [vmem:[%s3707_s1 + $0x68] sm:$0xff]  }
   0x4   :  { %2334 = vmatprep.subr.bf16.mxu0 %v2759_v3  ;;  %2740 = vmatprep.subr.bf16.mxu1 %v2759_v3  ;;  %v2764_v8 = vld [vmem:[%s3707_s1 + $0x18] sm:$0xff]   ;;  %v2766_v10 = vld [vmem:[%s3707_s1 + $0x20] sm:$0xff]   ;;  %v2768_v14 = vld [vmem:[%s3707_s1 + $0x28] sm:$0xff]  }
   0x5   :  { %v2775_v12 = vld [vmem:[%s3708_s0 + $0x4] ss:$36 sps:$4 sm:$0xff]   ;;  %v2778_v13 = vld [vmem:[%s3708_s0 + $0x1b4] ss:$36 sps:$4 sm:$0xff]   ;;  %v2784_v26 = vld [vmem:[%s3708_s0 + $0x4c] ss:$36 sps:$4 sm:$0xff]  }
   0x6   :  { %v2769_v15 = vld [vmem:[%s3707_s1 + $0x70] sm:$0xff]   ;;  %1266 = vmatprep.mubr.bf16.mxu0 %v2775_v12  ;;  %1314 = vmatprep.mubr.bf16.mxu1 %v2778_v13  ;;  %v2771_v17 = vld [vmem:[%s3707_s1 + $0x78] sm:$0xff]   ;;  %v2779_v19 = vld [vmem:[%s3707_s1 + $0x140] sm:$0xff]  }
   0x7   :  { %2335 = vmatpush3.bf16.msra.mxu0 %v2760_v4  ;;  %2748 = vmatpush3.bf16.msra.mxu1 %v2760_v4  ;;  %v2770_v16 = vld [vmem:[%s3707_s1 + $0x30] sm:$0xff]   ;;  %v2772_v18 = vld [vmem:[%s3707_s1 + $0x38] sm:$0xff]   ;;  %v2773_v20 = vld [vmem:[%s3708_s0] ss:$36 sps:$4 sm:$0xff]  }
   0x8   :  { %2336 = vmatprep.subr.bf16.mxu0 %v2761_v5  ;;  %2741 = vmatprep.subr.bf16.mxu1 %v2761_v5  ;;  %v2776_v21 = vld [vmem:[%s3708_s0 + $0x1b0] ss:$36 sps:$4 sm:$0xff]   ;;  %v2781_v22 = vld [vmem:[%s3707_s1 + $0xc0] sm:$0xff]   ;;  %v2783_v25 = vld [vmem:[%s3707_s1 + $0x148] sm:$0xff]  }
   0x9   :  { %v2780_v23 = vld [vmem:[%s3707_s1 + $0x100] sm:$0xff]   ;;  %v2791_v28 = vld [vmem:[%s3707_s1 + $0xc8] sm:$0xff]   ;;  %v2793_v31 = vld [vmem:[%s3707_s1 + $0x150] sm:$0xff]  }
   0xa   :  { %v2782_v24 = vld [vmem:[%s3707_s1 + $0x80] sm:$0xff]   ;;  %v2788_v29 = vld [vmem:[%s3707_s1 + $0x108] sm:$0xff]   ;;  %v2790_v33 = vld [vmem:[%s3708_s0 + $0x1f8] ss:$36 sps:$4 sm:$0xff]  }
   0xb   :  { %2337 = vmatpush3.bf16.msra.mxu0 %v2762_v6  ;;  %2749 = vmatpush3.bf16.msra.mxu1 %v2762_v6  ;;  %v2786_v27 = vld [vmem:[%s3708_s0 + $0x1fc] ss:$36 sps:$4 sm:$0xff]   ;;  %v2792_v30 = vld [vmem:[%s3707_s1 + $0x88] sm:$0xff]   ;;  %v2794_v34 = vld [vmem:[%s3707_s1 + $0xd0] sm:$0xff]  }
   0xc   :  { %2338 = vmatprep.subr.bf16.mxu0 %v2763_v7  ;;  %2742 = vmatprep.subr.bf16.mxu1 %v2763_v7  ;;  %v2789_v32 = vld [vmem:[%s3708_s0 + $0x48] ss:$36 sps:$4 sm:$0xff]   ;;  %v2795_v35 = vld [vmem:[%s3707_s1 + $0x110] sm:$0xff]   ;;  %v2803_v39 = vld [vmem:[%s3707_s1 + $0xd8] sm:$0xff]  }
   0xd   :  { %v2796_v36 = vld [vmem:[%s3707_s1 + $0x90] sm:$0xff]   ;;  %v2799_v38 = vld [vmem:[%s3708_s0 + $0x244] ss:$36 sps:$4 sm:$0xff]   ;;  %v2804_v40 = vld [vmem:[%s3707_s1 + $0x158] sm:$0xff]  }
   0xe   :  { %v2797_v37 = vld [vmem:[%s3708_s0 + $0x94] ss:$36 sps:$4 sm:$0xff]   ;;  %v2802_v44 = vld [vmem:[%s3708_s0 + $0x240] ss:$36 sps:$4 sm:$0xff]   ;;  %v2809_v47 = vld [vmem:[%s3708_s0 + $0x28c] ss:$36 sps:$4 sm:$0xff]  }
   0xf   :  { %2339 = vmatpush3.bf16.msra.mxu0 %v2764_v8  ;;  %2750 = vmatpush3.bf16.msra.mxu1 %v2764_v8  ;;  %v2805_v41 = vld [vmem:[%s3707_s1 + $0x98] sm:$0xff]   ;;  %v2801_v43 = vld [vmem:[%s3708_s0 + $0x90] ss:$36 sps:$4 sm:$0xff]   ;;  %v2811_v45 = vld [vmem:[%s3707_s1 + $0xe0] sm:$0xff]  }
  0x10   :  { %2340 = vmatprep.subr.bf16.mxu0 %v2765_v9  ;;  %2743 = vmatprep.subr.bf16.mxu1 %v2765_v9  ;;  %v2806_v42 = vld [vmem:[%s3707_s1 + $0x118] sm:$0xff]   ;;  %v2815_v48 = vld [vmem:[%s3707_s1 + $0x160] sm:$0xff]   ;;  %v2817_v51 = vld [vmem:[%s3707_s1 + $0xe8] sm:$0xff]  }
  0x11   :  { %v2807_v46 = vld [vmem:[%s3708_s0 + $0xdc] ss:$36 sps:$4 sm:$0xff]   ;;  %v2819_v52 = vld [vmem:[%s3707_s1 + $0x168] sm:$0xff]   ;;  %v161_v54 = vld [vmem:[%s3708_s0 + $0x2d0] sm:$0x11] }
  0x12   :  { %v2814_v49 = vld [vmem:[%s3707_s1 + $0xa0] sm:$0xff]   ;;  %v2818_v53 = vld [vmem:[%s3707_s1 + $0xa8] sm:$0xff]   ;;  %v2812_v55 = vld [vmem:[%s3708_s0 + $0xd8] ss:$36 sps:$4 sm:$0xff]   ;;  %v2150_v60 = vcombine.high %v161_v54, %v161_v54  ;;  %v2149_v7 = vcombine.low %v161_v54, %v161_v54 }
  0x13   :  { %2341 = vmatpush3.bf16.msra.mxu0 %v2766_v10  ;;  %2751 = vmatpush3.bf16.msra.mxu1 %v2766_v10  ;;  %v2816_v50 = vld [vmem:[%s3707_s1 + $0x120] sm:$0xff]   ;;  %v2813_v56 = vld [vmem:[%s3708_s0 + $0x288] ss:$36 sps:$4 sm:$0xff]   ;;  %v2826_v58 = vld [vmem:[%s3707_s1 + $0xf0] sm:$0xff]  }
  0x14   :  { %2342 = vmatprep.subr.bf16.mxu0 %v2767_v11  ;;  %2744 = vmatprep.subr.bf16.mxu1 %v2767_v11  ;;  %v2823_v57 = vld [vmem:[%s3707_s1 + $0x128] sm:$0xff]   ;;  %v2827_v61 = vld [vmem:[%s3707_s1 + $0xb0] sm:$0xff]   ;;  %v2828_v63 = vld [vmem:[%s3707_s1 + $0xf8] sm:$0xff]  }
  0x15   :  { %v2820_v59 = vld [vmem:[%s3708_s0 + $0x124] ss:$36 sps:$4 sm:$0xff]   ;;  %v2829_v62 = vld [vmem:[%s3707_s1 + $0x170] sm:$0xff]   ;;  %v2830_v3 = vld [vmem:[%s3707_s1 + $0xb8] sm:$0xff]  }
  0x16   :  { %v2831_v0 = vld [vmem:[%s3707_s1 + $0x130] sm:$0xff]   ;;  %v2824_v2 = vld [vmem:[%s3708_s0 + $0x120] ss:$36 sps:$4 sm:$0xff]   ;;  %v2838_v6 = vld [vmem:[%s3707_s1 + $0x178] sm:$0xff]  }
  0x17   :  { %2343 = vmatpush3.bf16.msra.mxu0 %v2768_v14  ;;  %2752 = vmatpush3.bf16.msra.mxu1 %v2768_v14  ;;  %v2832_v4 = vld [vmem:[%s3708_s0 + $0x16c] ss:$36 sps:$4 sm:$0xff]   ;;  %v2839_v8 = vld [vmem:[%s3707_s1 + $0x138] sm:$0xff]   ;;  %v2840_v9 = vld [vmem:[%s3707_s1 + $0x1c0] sm:$0xff]  }
  0x18   :  { %2344 = vmatprep.subr.bf16.mxu0 %v2769_v15  ;;  %2745 = vmatprep.subr.bf16.mxu1 %v2769_v15  ;;  %v2836_v5 = vld [vmem:[%s3708_s0 + $0xc] ss:$36 sps:$4 sm:$0xff]   ;;  %v2841_v12 = vld [vmem:[%s3707_s1 + $0x180] sm:$0xff]   ;;  %v2842_v13 = vld [vmem:[%s3708_s0 + $0x54] ss:$36 sps:$4 sm:$0xff]  }
  0x19   :  { %v2834_v10 = vld [vmem:[%s3708_s0 + $0x8] ss:$36 sps:$4 sm:$0xff]   ;;  %v2846_v14 = vld [vmem:[%s3708_s0 + $0x14] ss:$36 sps:$4 sm:$0xff]  }
  0x1a   :  { %v2837_v11 = vld [vmem:[%s3708_s0 + $0x168] ss:$36 sps:$4 sm:$0xff]   ;;  %v2920_v54 = vld [vmem:[%s3707_s1 + $0x1f8] sm:$0xff]  }
  0x1b   :  { %2345 = vmatpush3.bf16.msra.mxu0 %v2770_v16  ;;  %2753 = vmatpush3.bf16.msra.mxu1 %v2770_v16  ;;  %v2849_v15 = vld [vmem:[%s3707_s1 + $0x1c8] sm:$0xff]  }
  0x1c   :  { %2346 = vmatprep.subr.bf16.mxu0 %v2771_v17  ;;  %2746 = vmatprep.subr.bf16.mxu1 %v2771_v17  ;;  %v2854_v16 = vld [vmem:[%s3707_s1 + $0x188] sm:$0xff]   ;;  %v2844_v17 = vld [vmem:[%s3708_s0 + $0x10] ss:$36 sps:$4 sm:$0xff]  }
  0x1f   :  { %2347 = vmatpush3.bf16.msra.mxu0 %v2772_v18  ;;  %2754 = vmatpush3.bf16.msra.mxu1 %v2772_v18  ;;  %v2847_v18 = vld [vmem:[%s3708_s0 + $0x50] ss:$36 sps:$4 sm:$0xff]  }
  0x20   :  { %2496 = vmatprep.subr.bf16.mxu0 %v2779_v19  ;;  %2414 = vmatprep.subr.bf16.mxu1 %v2781_v22  ;;  %v2864_v19 = vld [vmem:[%s3707_s1 + $0x1d0] sm:$0xff]   ;;  %v2852_v22 = vld [vmem:[%s3708_s0 + $0x5c] ss:$36 sps:$4 sm:$0xff]  }
  0x22   :  { %1267 = vmatmul.mubr.bf16.vlgmr.msra.gmra.mrb[0].mxu0 %v2773_v20  ;;  %1315 = vmatmul.mubr.bf16.vlgmr.msra.gmra.mrb[0].mxu1 %v2776_v21  ;;  %v2848_v20 = vld [vmem:[%s3707_s1 + $0x200] sm:$0xff]  }
  0x23   :  { %2497 = vmatpush3.bf16.msra.mxu0 %v2780_v23  ;;  %2415 = vmatpush3.bf16.msra.mxu1 %v2782_v24  ;;  %v2850_v21 = vld [vmem:[%s3708_s0 + $0x9c] ss:$36 sps:$4 sm:$0xff]   ;;  %v2865_v23 = vld [vmem:[%s3707_s1 + $0x190] sm:$0xff]   ;;  %v2857_v24 = vld [vmem:[%s3707_s1 + $0x208] sm:$0xff]  }
  0x24   :  { %2498 = vmatprep.subr.bf16.mxu0 %v2783_v25  ;;  %1274 = vmatprep.mubr.bf16.mxu0 %v2784_v26  ;;  %v2873_v25 = vld [vmem:[%s3707_s1 + $0x1d8] sm:$0xff]  }
  0x25   :  { %1322 = vmatprep.mubr.bf16.mxu1 %v2786_v27  ;;  %2416 = vmatprep.subr.bf16.mxu1 %v2791_v28  ;;  %v2855_v26 = vld [vmem:[%s3708_s0 + $0x98] ss:$36 sps:$4 sm:$0xff]  }
  0x26   :  { %v2874_v27 = vld [vmem:[%s3707_s1 + $0x198] sm:$0xff]  }
  0x27   :  { %2499 = vmatpush3.bf16.msra.mxu0 %v2788_v29  ;;  %2417 = vmatpush3.bf16.msra.mxu1 %v2792_v30  ;;  %v2856_v28 = vld [vmem:[%s3708_s0 + $0x58] ss:$36 sps:$4 sm:$0xff]   ;;  %v2858_v29 = vld [vmem:[%s3708_s0 + $0xe4] ss:$36 sps:$4 sm:$0xff]  }
  0x28   :  { %2500 = vmatprep.subr.bf16.mxu0 %v2793_v31  ;;  %2418 = vmatprep.subr.bf16.mxu1 %v2794_v34  ;;  %v2860_v30 = vld [vmem:[%s3708_s0 + $0xa4] ss:$36 sps:$4 sm:$0xff]   ;;  %v2870_v31 = vld [vmem:[%s3707_s1 + $0x210] sm:$0xff]  }
  0x29   :  { %v2862_v34 = vld [vmem:[%s3708_s0 + $0xe0] ss:$36 sps:$4 sm:$0xff]  }
  0x2a   :  { %1275 = vmatmul.mubr.bf16.gmra.mrb[4].mxu0 %v2789_v32  ;;  %1323 = vmatmul.mubr.bf16.gmra.mrb[4].mxu1 %v2790_v33  ;;  %v2881_v32 = vld [vmem:[%s3707_s1 + $0x218] sm:$0xff]   ;;  %v2886_v33 = vld [vmem:[%s3707_s1 + $0x1e0] sm:$0xff]  }
  0x2b   :  { %2501 = vmatpush3.bf16.msra.mxu0 %v2795_v35  ;;  %2419 = vmatpush3.bf16.msra.mxu1 %v2796_v36  ;;  %v2889_v35 = vld [vmem:[%s3707_s1 + $0x1a0] sm:$0xff]  }
  0x2c   :  { %1282 = vmatprep.mubr.bf16.mxu0 %v2797_v37  ;;  %1330 = vmatprep.mubr.bf16.mxu1 %v2799_v38  ;;  %v2863_v36 = vld [vmem:[%s3708_s0 + $0xa0] ss:$36 sps:$4 sm:$0xff]   ;;  %v2866_v37 = vld [vmem:[%s3708_s0 + $0x12c] ss:$36 sps:$4 sm:$0xff]  }
  0x2d   :  { %2420 = vmatprep.subr.bf16.mxu1 %v2803_v39  ;;  %2502 = vmatprep.subr.bf16.mxu0 %v2804_v40  ;;  %v2868_v38 = vld [vmem:[%s3708_s0 + $0xec] ss:$36 sps:$4 sm:$0xff]   ;;  %v2890_v39 = vld [vmem:[%s3707_s1 + $0x220] sm:$0xff]  }
  0x2e   :  { %v2897_v40 = vld [vmem:[%s3707_s1 + $0x1e8] sm:$0xff]  }
  0x2f   :  { %2421 = vmatpush3.bf16.msra.mxu1 %v2805_v41  ;;  %2503 = vmatpush3.bf16.msra.mxu0 %v2806_v42  ;;  %v2898_v41 = vld [vmem:[%s3707_s1 + $0x1a8] sm:$0xff]  }
  0x30   :  { %2422 = vmatprep.subr.bf16.mxu1 %v2811_v45  ;;  %2504 = vmatprep.subr.bf16.mxu0 %v2815_v48  ;;  %v2871_v42 = vld [vmem:[%s3708_s0 + $0x128] ss:$36 sps:$4 sm:$0xff]   ;;  %v2877_v45 = vld [vmem:[%s3708_s0 + $0x134] ss:$36 sps:$4 sm:$0xff]  }
  0x31   :  { %v2907_v48 = vld [vmem:[%s3707_s1 + $0x1b0] sm:$0xff]  }
  0x32   :  { %1283 = vmatmul.mubr.bf16.gmra.mrb[8].mxu0 %v2801_v43  ;;  %1331 = vmatmul.mubr.bf16.gmra.mrb[8].mxu1 %v2802_v44  ;;  %v2872_v43 = vld [vmem:[%s3708_s0 + $0xe8] ss:$36 sps:$4 sm:$0xff]   ;;  %v2875_v44 = vld [vmem:[%s3708_s0 + $0x174] ss:$36 sps:$4 sm:$0xff]  }
  0x33   :  { %1290 = vmatprep.mubr.bf16.mxu0 %v2807_v46  ;;  %1338 = vmatprep.mubr.bf16.mxu1 %v2809_v47  ;;  %v2905_v46 = vld [vmem:[%s3707_s1 + $0x228] sm:$0xff]   ;;  %v2906_v47 = vld [vmem:[%s3707_s1 + $0x1f0] sm:$0xff]  }
  0x34   :  { %2423 = vmatpush3.bf16.msra.mxu1 %v2814_v49  ;;  %2505 = vmatpush3.bf16.msra.mxu0 %v2816_v50  ;;  %v2914_v49 = vld [vmem:[%s3707_s1 + $0x230] sm:$0xff]  }
  0x35   :  { %2424 = vmatprep.subr.bf16.mxu1 %v2817_v51  ;;  %2506 = vmatprep.subr.bf16.mxu0 %v2819_v52  ;;  %v2879_v50 = vld [vmem:[%s3708_s0 + $0x170] ss:$36 sps:$4 sm:$0xff]   ;;  %v2882_v52 = vld [vmem:[%s3708_s0 + $0x1bc] ss:$36 sps:$4 sm:$0xff]  }
  0x36   :  { %v2880_v51 = vld [vmem:[%s3708_s0 + $0x130] ss:$36 sps:$4 sm:$0xff]  }
  0x38   :  { %2425 = vmatpush3.bf16.msra.mxu1 %v2818_v53  ;;  %2507 = vmatpush3.bf16.msra.mxu0 %v2823_v57  ;;  %v2884_v53 = vld [vmem:[%s3708_s0 + $0x17c] ss:$36 sps:$4 sm:$0xff]  }
  0x39   :  { %2426 = vmatprep.subr.bf16.mxu1 %v2826_v58  ;;  %2508 = vmatprep.subr.bf16.mxu0 %v2829_v62  ;;  %v2887_v57 = vld [vmem:[%s3708_s0 + $0x1b8] ss:$36 sps:$4 sm:$0xff]   ;;  %v2896_v62 = vld [vmem:[%s3708_s0 + $0x1c0] ss:$36 sps:$4 sm:$0xff]  }
  0x3a   :  { %1291 = vmatmul.mubr.bf16.gmra.mrb[12].mxu0 %v2812_v55  ;;  %1339 = vmatmul.mubr.bf16.gmra.mrb[12].mxu1 %v2813_v56  ;;  %v2921_v55 = vld [vmem:[%s3707_s1 + $0x1b8] sm:$0xff]  }
  0x3b   :  { %1298 = vmatprep.mubr.bf16.mxu0 %v2820_v59  ;;  %1346 = vmatprep.mubr.bf16.mxu1 %v2150_v60  ;;  %v2922_v56 = vld [vmem:[%s3707_s1 + $0x238] sm:$0xff]   ;;  %v2891_v59 = vld [vmem:[%s3708_s0 + $0x204] ss:$36 sps:$4 sm:$0xff]  }
  0x3c   :  { %2427 = vmatpush3.bf16.msra.mxu1 %v2827_v61  ;;  %2509 = vmatpush3.bf16.msra.mxu0 %v2831_v0  ;;  %v2888_v58 = vld [vmem:[%s3708_s0 + $0x178] ss:$36 sps:$4 sm:$0xff]   ;;  %v2893_v60 = vld [vmem:[%s3708_s0 + $0x1c4] ss:$36 sps:$4 sm:$0xff]   ;;  %v2901_v0 = vld [vmem:[%s3708_s0 + $0x20c] ss:$36 sps:$4 sm:$0xff]  }
  0x3d   :  { %2428 = vmatprep.subr.bf16.mxu1 %v2828_v63  ;;  %2510 = vmatprep.subr.bf16.mxu0 %v2838_v6  ;;  %v2895_v61 = vld [vmem:[%s3708_s0 + $0x200] ss:$36 sps:$4 sm:$0xff]   ;;  %v2899_v63 = vld [vmem:[%s3708_s0 + $0x24c] ss:$36 sps:$4 sm:$0xff]   ;;  %v162_v6 = vld [vmem:[%s3708_s0 + $0x2d8] sm:$0x11] }
  0x40   :  { %2429 = vmatpush3.bf16.msra.mxu1 %v2830_v3  ;;  %2511 = vmatpush3.bf16.msra.mxu0 %v2839_v8  ;;  %v2904_v3 = vld [vmem:[%s3708_s0 + $0x208] ss:$36 sps:$4 sm:$0xff]   ;;  %v2913_v8 = vld [vmem:[%s3708_s0 + $0x250] ss:$36 sps:$4 sm:$0xff]  }
  0x41   :  { %2578 = vmatprep.subr.bf16.mxu1 %v2840_v9  ;;  %2679 = vmatprep.subr.bf16.mxu0 %v2968_v1  ;;  %v2152_v9 = vcombine.high %v162_v6, %v162_v6 }
  0x42   :  { %1299 = vmatmul.mubr.bf16.gmra.mrb[16].mxu0 %v2824_v2  ;;  %1347 = vmatmul.mubr.bf16.gmra.mrb[16].mxu1 %v2149_v7  ;;  %v2903_v2 = vld [vmem:[%s3708_s0 + $0x248] ss:$36 sps:$4 sm:$0xff]   ;;  %v2912_v7 = vld [vmem:[%s3708_s0 + $0x290] ss:$36 sps:$4 sm:$0xff]  }
  0x43   :  { %1306 = vmatprep.mubr.bf16.mxu0 %v2832_v4  ;;  %1386 = vmatprep.mubr.bf16.mxu1 %v2836_v5  ;;  %v2908_v4 = vld [vmem:[%s3708_s0 + $0x294] ss:$36 sps:$4 sm:$0xff]  }
  0x44   :  { %v2910_v5 = vld [vmem:[%s3708_s0 + $0x254] ss:$36 sps:$4 sm:$0xff]  }
  0x4a   :  { %1307 = vmatmul.mubr.bf16.gmra.mrb[20].mxu0 %v2837_v11  ;;  %1387 = vmatmul.mubr.bf16.vlgmr.msra.gmra.mrb[20].mxu1 %v2834_v10  ;;  %v2916_v10 = vld [vmem:[%s3708_s0 + $0x29c] ss:$36 sps:$4 sm:$0xff]  }
  0x4b   :  { %2579 = vmatpush3.bf16.msra.mxu1 %v2841_v12  ;;  %1394 = vmatprep.mubr.bf16.mxu1 %v2842_v13  ;;  %v163_v11 = vld [vmem:[%s3708_s0 + $0x2e0] sm:$0x11]  ;;  %v2151_v12 = vcombine.low %v162_v6, %v162_v6  ;;  %v2919_v13 = vld [vmem:[%s3708_s0 + $0x298] ss:$36 sps:$4 sm:$0xff]  }
  0x4c   :  { %1506 = vmatprep.mubr.bf16.mxu0 %v2846_v14  ;;  %2580 = vmatprep.subr.bf16.mxu1 %v2849_v15  ;;  %v2154_v14 = vcombine.high %v163_v11, %v163_v11  ;;  %v2926_v15 = vld [vmem:[%s3708_s0 + $0x1c] ss:$36 sps:$4 sm:$0xff]  }
  0x4f   :  { %2581 = vmatpush3.bf16.msra.mxu1 %v2854_v16  ;;  %v2924_v16 = vld [vmem:[%s3708_s0 + $0x18] ss:$36 sps:$4 sm:$0xff]  }
  0x50   :  { %2582 = vmatprep.subr.bf16.mxu1 %v2864_v19  ;;  %v2930_v19 = vld [vmem:[%s3708_s0 + $0x60] ss:$36 sps:$4 sm:$0xff]  }
  0x52   :  { %1395 = vmatmul.mubr.bf16.gmra.mrb[24].mxu1 %v2847_v18  ;;  %1507 = vmatmul.mubr.bf16.vlgmr.msra.gmra.mrb[24].mxu0 %v2844_v17  ;;  %v2153_v17 = vcombine.low %v163_v11, %v163_v11  ;;  %v2928_v18 = vld [vmem:[%s3708_s0 + $0x64] ss:$36 sps:$4 sm:$0xff]  }
  0x53   :  { %2680 = vmatpush3.bf16.msra.mxu0 %v2848_v20  ;;  %1402 = vmatprep.mubr.bf16.mxu1 %v2850_v21  ;;  %v2931_v20 = vld [vmem:[%s3708_s0 + $0x20] ss:$36 sps:$4 sm:$0xff]   ;;  %v2932_v21 = vld [vmem:[%s3708_s0 + $0xac] ss:$36 sps:$4 sm:$0xff]  }
  0x54   :  { %1514 = vmatprep.mubr.bf16.mxu0 %v2852_v22  ;;  %2681 = vmatprep.subr.bf16.mxu0 %v2968_v1  ;;  %v2934_v22 = vld [vmem:[%s3708_s0 + $0xa8] ss:$36 sps:$4 sm:$0xff]  }
  0x55   :  { %2583 = vmatpush3.bf16.msra.mxu1 %v2865_v23  ;;  %v2935_v23 = vld [vmem:[%s3708_s0 + $0x68] ss:$36 sps:$4 sm:$0xff]  }
  0x56   :  { %2584 = vmatprep.subr.bf16.mxu1 %v2873_v25  ;;  %v2938_v25 = vld [vmem:[%s3708_s0 + $0xf0] ss:$36 sps:$4 sm:$0xff]  }
  0x57   :  { %2682 = vmatpush3.bf16.msra.mxu0 %v2857_v24  ;;  %v2936_v24 = vld [vmem:[%s3708_s0 + $0xf4] ss:$36 sps:$4 sm:$0xff]  }
  0x58   :  { %2683 = vmatprep.subr.bf16.mxu0 %v2968_v1 }
  0x59   :  { %2585 = vmatpush3.bf16.msra.mxu1 %v2874_v27  ;;  %v2940_v27 = vld [vmem:[%s3708_s0 + $0x13c] ss:$36 sps:$4 sm:$0xff]  }
  0x5a   :  { %1403 = vmatmul.mubr.bf16.gmra.mrb[28].mxu1 %v2855_v26  ;;  %1515 = vmatmul.mubr.bf16.gmra.mrb[28].mxu0 %v2856_v28  ;;  %v2939_v26 = vld [vmem:[%s3708_s0 + $0xb0] ss:$36 sps:$4 sm:$0xff]   ;;  %v2942_v28 = vld [vmem:[%s3708_s0 + $0x138] ss:$36 sps:$4 sm:$0xff]  }
  0x5b   :  { %1410 = vmatprep.mubr.bf16.mxu1 %v2858_v29  ;;  %1522 = vmatprep.mubr.bf16.mxu0 %v2860_v30  ;;  %v2943_v29 = vld [vmem:[%s3708_s0 + $0xf8] ss:$36 sps:$4 sm:$0xff]   ;;  %v2944_v30 = vld [vmem:[%s3708_s0 + $0x184] ss:$36 sps:$4 sm:$0xff]  }
  0x5c   :  { %2684 = vmatpush3.bf16.msra.mxu0 %v2870_v31  ;;  %2586 = vmatprep.subr.bf16.mxu1 %v2886_v33  ;;  %v2946_v31 = vld [vmem:[%s3708_s0 + $0x180] ss:$36 sps:$4 sm:$0xff]   ;;  %v2948_v33 = vld [vmem:[%s3708_s0 + $0x1cc] ss:$36 sps:$4 sm:$0xff]  }
  0x5d   :  { %2685 = vmatprep.subr.bf16.mxu0 %v2968_v1  ;;  %2587 = vmatpush3.bf16.msra.mxu1 %v2889_v35  ;;  %v2951_v35 = vld [vmem:[%s3708_s0 + $0x188] ss:$36 sps:$4 sm:$0xff]  }
  0x5e   :  { %2588 = vmatprep.subr.bf16.mxu1 %v2897_v40  ;;  %v2958_v40 = vld [vmem:[%s3708_s0 + $0x258] ss:$36 sps:$4 sm:$0xff]  }
  0x60   :  { %2686 = vmatpush3.bf16.msra.mxu0 %v2881_v32  ;;  %v2947_v32 = vld [vmem:[%s3708_s0 + $0x140] ss:$36 sps:$4 sm:$0xff]  }
  0x61   :  { %2687 = vmatprep.subr.bf16.mxu0 %v2968_v1  ;;  %2589 = vmatpush3.bf16.msra.mxu1 %v2898_v41  ;;  %v2959_v41 = vld [vmem:[%s3708_s0 + $0x218] ss:$36 sps:$4 sm:$0xff]  }
  0x62   :  { %1411 = vmatmul.mubr.bf16.gmra.mrb[32].mxu1 %v2862_v34  ;;  %1523 = vmatmul.mubr.bf16.gmra.mrb[32].mxu0 %v2863_v36  ;;  %v2950_v34 = vld [vmem:[%s3708_s0 + $0x1c8] ss:$36 sps:$4 sm:$0xff]   ;;  %v2952_v36 = vld [vmem:[%s3708_s0 + $0x214] ss:$36 sps:$4 sm:$0xff]  }
  0x63   :  { %1418 = vmatprep.mubr.bf16.mxu1 %v2866_v37  ;;  %1530 = vmatprep.mubr.bf16.mxu0 %v2868_v38  ;;  %v2954_v37 = vld [vmem:[%s3708_s0 + $0x210] ss:$36 sps:$4 sm:$0xff]  }
  0x64   :  { %2688 = vmatpush3.bf16.msra.mxu0 %v2890_v39  ;;  %2590 = vmatprep.subr.bf16.mxu1 %v2906_v47  ;;  %v2955_v38 = vld [vmem:[%s3708_s0 + $0x1d0] ss:$36 sps:$4 sm:$0xff]   ;;  %v2956_v39 = vld [vmem:[%s3708_s0 + $0x25c] ss:$36 sps:$4 sm:$0xff]  }
  0x65   :  { %2689 = vmatprep.subr.bf16.mxu0 %v2968_v1  ;;  %2591 = vmatpush3.bf16.msra.mxu1 %v2907_v48  ;;  %v2966_v48 = vld [vmem:[%s3708_s0 + $0x2a8] ss:$36 sps:$4 sm:$0xff]  }
  0x66   :  { %2592 = vmatprep.subr.bf16.mxu1 %v2920_v54 }
  0x68   :  { %2690 = vmatpush3.bf16.msra.mxu0 %v2905_v46 }
  0x69   :  { %2691 = vmatprep.subr.bf16.mxu0 %v2968_v1  ;;  %2593 = vmatpush3.bf16.msra.mxu1 %v2921_v55 }
  0x6a   :  { %1419 = vmatmul.mubr.bf16.gmra.mrb[36].mxu1 %v2871_v42  ;;  %1531 = vmatmul.mubr.bf16.gmra.mrb[36].mxu0 %v2872_v43  ;;  %v2960_v42 = vld [vmem:[%s3708_s0 + $0x2a4] ss:$36 sps:$4 sm:$0xff]  }
  0x6b   :  { %1426 = vmatprep.mubr.bf16.mxu1 %v2875_v44  ;;  %1538 = vmatprep.mubr.bf16.mxu0 %v2877_v45  ;;  %v164_v43 = vld [vmem:[%s3708_s0 + $0x2e8] sm:$0x11]  ;;  %v2962_v44 = vld [vmem:[%s3708_s0 + $0x2a0] ss:$36 sps:$4 sm:$0xff]  }
  0x6c   :  { %2692 = vmatpush3.bf16.msra.mxu0 %v2914_v49  ;;  %v2963_v45 = vld [vmem:[%s3708_s0 + $0x260] ss:$36 sps:$4 sm:$0xff]   ;;  %v2156_v46 = vcombine.high %v164_v43, %v164_v43  ;;  %v2155_v47 = vcombine.low %v164_v43, %v164_v43 }
  0x6d   :  { %2693 = vmatprep.subr.bf16.mxu0 %v2968_v1 }
  0x70   :  { %2694 = vmatpush3.bf16.msra.mxu0 %v2922_v56 }
  0x72   :  { %1427 = vmatmul.mubr.bf16.gmra.mrb[40].mxu1 %v2879_v50  ;;  %1539 = vmatmul.mubr.bf16.gmra.mrb[40].mxu0 %v2880_v51 }
  0x73   :  { %1434 = vmatprep.mubr.bf16.mxu1 %v2882_v52  ;;  %1546 = vmatprep.mubr.bf16.mxu0 %v2884_v53  ;;  %v2967_v53 = vld [vmem:[%s3708_s0 + $0x2f0] ss:$0 sps:$4 sm:$0x11]  }
  0x7a   :  { %1435 = vmatmul.mubr.bf16.gmra.mrb[44].mxu1 %v2887_v57  ;;  %1547 = vmatmul.mubr.bf16.gmra.mrb[44].mxu0 %v2888_v58 }
  0x7b   :  { %1442 = vmatprep.mubr.bf16.mxu1 %v2891_v59  ;;  %1554 = vmatprep.mubr.bf16.mxu0 %v2893_v60 }
  0x82   :  { %1443 = vmatmul.mubr.bf16.gmra.mrb[48].mxu1 %v2895_v61  ;;  %1555 = vmatmul.mubr.bf16.gmra.mrb[48].mxu0 %v2896_v62 }
  0x83   :  { %1450 = vmatprep.mubr.bf16.mxu1 %v2899_v63  ;;  %1562 = vmatprep.mubr.bf16.mxu0 %v2901_v0 }
  0x8a   :  { %1451 = vmatmul.mubr.bf16.gmra.mrb[52].mxu1 %v2903_v2  ;;  %1563 = vmatmul.mubr.bf16.gmra.mrb[52].mxu0 %v2904_v3 }
  0x8b   :  { %1458 = vmatprep.mubr.bf16.mxu1 %v2908_v4  ;;  %1570 = vmatprep.mubr.bf16.mxu0 %v2910_v5 }
  0x92   :  { %1459 = vmatmul.mubr.bf16.gmra.mrb[56].mxu1 %v2912_v7  ;;  %1571 = vmatmul.mubr.bf16.gmra.mrb[56].mxu0 %v2913_v8 }
  0x93   :  { %1466 = vmatprep.mubr.bf16.mxu1 %v2152_v9  ;;  %1578 = vmatprep.mubr.bf16.mxu0 %v2916_v10 }
  0x9a   :  { %1467 = vmatmul.mubr.bf16.gmra.mrb[60].mxu1 %v2151_v12  ;;  %1579 = vmatmul.mubr.bf16.gmra.mrb[60].mxu0 %v2919_v13 }
  0x9b   :  { %1586 = vmatprep.mubr.bf16.mxu0 %v2154_v14  ;;  %1626 = vmatprep.mubr.bf16.mxu1 %v2926_v15 }
  0xa2   :  { %1587 = vmatmul.mubr.bf16.gmra.mrb[64].mxu0 %v2153_v17  ;;  %1627 = vmatmul.mubr.bf16.vlgmr.msra.gmra.mrb[64].mxu1 %v2924_v16 }
  0xa3   :  { %1634 = vmatprep.mubr.bf16.mxu1 %v2928_v18  ;;  %2695 = vmatprep.mubr.msk.bf16.mxu0 %vm2969_vm0, %v2968_v1 }
  0xaa   :  { %1635 = vmatmul.mubr.bf16.gmra.mrb[68].mxu1 %v2930_v19  ;;  %2696 = vmatmul.mubr.bf16.vlgmr.msra.gmra.mrb[68].mxu0 %v2931_v20 }
  0xab   :  { %1642 = vmatprep.mubr.bf16.mxu1 %v2932_v21  ;;  %2699 = vmatprep.mubr.msk.bf16.mxu0 %vm2969_vm0, %v2968_v1 }
  0xb2   :  { %1643 = vmatmul.mubr.bf16.gmra.mrb[72].mxu1 %v2934_v22  ;;  %2700 = vmatmul.mubr.bf16.gmra.mrb[72].mxu0 %v2935_v23 }
  0xb3   :  { %1650 = vmatprep.mubr.bf16.mxu1 %v2936_v24  ;;  %2703 = vmatprep.mubr.msk.bf16.mxu0 %vm2969_vm0, %v2968_v1 }
  0xba   :  { %1651 = vmatmul.mubr.bf16.gmra.mrb[76].mxu1 %v2938_v25  ;;  %2704 = vmatmul.mubr.bf16.gmra.mrb[76].mxu0 %v2939_v26 }
  0xbb   :  { %1658 = vmatprep.mubr.bf16.mxu1 %v2940_v27  ;;  %2707 = vmatprep.mubr.msk.bf16.mxu0 %vm2969_vm0, %v2968_v1 }
  0xc2   :  { %1659 = vmatmul.mubr.bf16.gmra.mrb[80].mxu1 %v2942_v28  ;;  %2708 = vmatmul.mubr.bf16.gmra.mrb[80].mxu0 %v2943_v29 }
  0xc3   :  { %1666 = vmatprep.mubr.bf16.mxu1 %v2944_v30  ;;  %2711 = vmatprep.mubr.msk.bf16.mxu0 %vm2969_vm0, %v2968_v1 }
  0xca   :  { %1667 = vmatmul.mubr.bf16.gmra.mrb[84].mxu1 %v2946_v31  ;;  %2712 = vmatmul.mubr.bf16.gmra.mrb[84].mxu0 %v2947_v32 }
  0xcb   :  { %1674 = vmatprep.mubr.bf16.mxu1 %v2948_v33  ;;  %2715 = vmatprep.mubr.msk.bf16.mxu0 %vm2969_vm0, %v2968_v1 }
  0xd2   :  { %1675 = vmatmul.mubr.bf16.gmra.mrb[88].mxu1 %v2950_v34  ;;  %2716 = vmatmul.mubr.bf16.gmra.mrb[88].mxu0 %v2951_v35 }
  0xd3   :  { %1682 = vmatprep.mubr.bf16.mxu1 %v2952_v36  ;;  %2719 = vmatprep.mubr.msk.bf16.mxu0 %vm2969_vm0, %v2968_v1 }
  0xda   :  { %1683 = vmatmul.mubr.bf16.gmra.mrb[92].mxu1 %v2954_v37  ;;  %2720 = vmatmul.mubr.bf16.gmra.mrb[92].mxu0 %v2955_v38 }
  0xdb   :  { %1690 = vmatprep.mubr.bf16.mxu1 %v2956_v39  ;;  %2723 = vmatprep.mubr.msk.bf16.mxu0 %vm2969_vm0, %v2968_v1 }
  0xe2   :  { %1691 = vmatmul.mubr.bf16.gmra.mrb[96].mxu1 %v2958_v40  ;;  %2724 = vmatmul.mubr.bf16.gmra.mrb[96].mxu0 %v2959_v41 }
  0xe3   :  { %1698 = vmatprep.mubr.bf16.mxu1 %v2960_v42  ;;  %2727 = vmatprep.mubr.msk.bf16.mxu0 %vm2969_vm0, %v2968_v1 }
  0xea   :  { %1699 = vmatmul.mubr.bf16.gmra.mrb[100].mxu1 %v2962_v44  ;;  %2728 = vmatmul.mubr.bf16.gmra.mrb[100].mxu0 %v2963_v45 }
  0xeb   :  { %1706 = vmatprep.mubr.bf16.mxu1 %v2156_v46  ;;  %2731 = vmatprep.mubr.msk.bf16.mxu0 %vm2969_vm0, %v2968_v1 }
  0xf2   :  { %1707 = vmatmul.mubr.bf16.gmra.mrb[104].mxu1 %v2155_v47  ;;  %2732 = vmatmul.mubr.bf16.gmra.mrb[104].mxu0 %v2966_v48 }
  0xf3   :  { %2735 = vmatprep.mubr.msk.bf16.mxu0 %vm2969_vm0, %v2968_v1 }
  0xf5   :  { %v2348_v49 = vpop.f32.mrb[0].mxu0  ;;  %v2384_v50 = vpop.f32.mrb[0].mxu1 }
  0xf6   :  { %v2349_v51 = vpop.f32.mrb[1].mxu0  ;;  %v2385_v52 = vpop.f32.mrb[1].mxu1 }
  0xf7   :  { %v3522_v54 = vadd.f32 %v2349_v51, %v2348_v49  ;;  %v2351_v55 = vpop.f32.mrb[2].mxu0  ;;  %v3524_v56 = vadd.f32 %v2385_v52, %v2384_v50  ;;  %v2387_v57 = vpop.f32.mrb[2].mxu1 }
  0xf8   :  { %v2352_v58 = vpop.f32.mrb[3].mxu0  ;;  %v2388_v59 = vpop.f32.mrb[3].mxu1 }
  0xf9   :  { %v3526_v60 = vadd.f32 %v2352_v58, %v2351_v55  ;;  %v3528_v61 = vadd.f32 %v2388_v59, %v2387_v57 }
  0xfa   :  { %2736 = vmatmul.mubr.bf16.gmra.mrb[108].mxu0 %v2967_v53 }
  0xfd   :  { %v2354_v1 = vpop.f32.mrb[4].mxu0  ;;  %v2390_v62 = vpop.f32.mrb[4].mxu1 }
  0xfe   :  { %v2355_v63 = vpop.f32.mrb[5].mxu0  ;;  %v2391_v0 = vpop.f32.mrb[5].mxu1 }
  0xff   :  { %v3530_v2 = vadd.f32 %v2355_v63, %v2354_v1  ;;  %v2357_v3 = vpop.f32.mrb[6].mxu0  ;;  %v3532_v4 = vadd.f32 %v2391_v0, %v2390_v62  ;;  %v2393_v5 = vpop.f32.mrb[6].mxu1 }
 0x100   :  { %v2358_v6 = vpop.f32.mrb[7].mxu0  ;;  %v2394_v7 = vpop.f32.mrb[7].mxu1 }
 0x101   :  { %v3534_v8 = vadd.f32 %v2358_v6, %v2357_v3  ;;  %v3536_v9 = vadd.f32 %v2394_v7, %v2393_v5 }
 0x105   :  { %v2360_v10 = vpop.f32.mrb[8].mxu0  ;;  %v2396_v11 = vpop.f32.mrb[8].mxu1 }
 0x106   :  { %v2361_v12 = vpop.f32.mrb[9].mxu0  ;;  %v2397_v13 = vpop.f32.mrb[9].mxu1 }
 0x107   :  { %v3538_v14 = vadd.f32 %v2361_v12, %v2360_v10  ;;  %v2363_v15 = vpop.f32.mrb[10].mxu0  ;;  %v3540_v16 = vadd.f32 %v2397_v13, %v2396_v11  ;;  %v2399_v17 = vpop.f32.mrb[10].mxu1 }
 0x108   :  { %v2364_v18 = vpop.f32.mrb[11].mxu0  ;;  %v2400_v19 = vpop.f32.mrb[11].mxu1 }
 0x109   :  { %v3542_v20 = vadd.f32 %v2364_v18, %v2363_v15  ;;  %v3544_v21 = vadd.f32 %v2400_v19, %v2399_v17 }
 0x10d   :  { %v2366_v22 = vpop.f32.mrb[12].mxu0  ;;  %v2402_v23 = vpop.f32.mrb[12].mxu1 }
 0x10e   :  { %v2367_v24 = vpop.f32.mrb[13].mxu0  ;;  %v2403_v25 = vpop.f32.mrb[13].mxu1 }
 0x10f   :  { %v3546_v26 = vadd.f32 %v2367_v24, %v2366_v22  ;;  %v2369_v27 = vpop.f32.mrb[14].mxu0  ;;  %v3548_v28 = vadd.f32 %v2403_v25, %v2402_v23  ;;  %v2405_v29 = vpop.f32.mrb[14].mxu1 }
 0x110   :  { %v2370_v30 = vpop.f32.mrb[15].mxu0  ;;  %v2406_v31 = vpop.f32.mrb[15].mxu1 }
 0x111   :  { %v3550_v32 = vadd.f32 %v2370_v30, %v2369_v27  ;;  %v3552_v33 = vadd.f32 %v2406_v31, %v2405_v29 }
 0x115   :  { %v2372_v34 = vpop.f32.mrb[16].mxu0  ;;  %v2408_v35 = vpop.f32.mrb[16].mxu1 }
 0x116   :  { %v2373_v36 = vpop.f32.mrb[17].mxu0  ;;  %v2409_v37 = vpop.f32.mrb[17].mxu1 }
 0x117   :  { %v3554_v38 = vadd.f32 %v2373_v36, %v2372_v34  ;;  %v2375_v39 = vpop.f32.mrb[18].mxu0  ;;  %v3556_v40 = vadd.f32 %v2409_v37, %v2408_v35  ;;  %v2411_v41 = vpop.f32.mrb[18].mxu1 }
 0x118   :  { %v2376_v42 = vpop.f32.mrb[19].mxu0  ;;  %v2412_v43 = vpop.f32.mrb[19].mxu1 }
 0x119   :  { %v3558_v44 = vadd.f32 %v2376_v42, %v2375_v39 }
 0x11d   :  { %v2378_v45 = vpop.f32.mrb[20].mxu0  ;;  %v2430_v46 = vpop.f32.mrb[20].mxu1 }
 0x11e   :  { %v2379_v47 = vpop.f32.mrb[21].mxu0  ;;  %v2431_v48 = vpop.f32.mrb[21].mxu1 }
 0x11f   :  { %v3560_v49 = vadd.f32 %v2379_v47, %v2378_v45  ;;  %v2432_v50 = vadd.f32 %v2431_v48, %v2430_v46  ;;  %v2381_v51 = vpop.f32.mrb[22].mxu0  ;;  %v2433_v52 = vpop.f32.mrb[22].mxu1 }
 0x120   :  { %v2382_v53 = vpop.f32.mrb[23].mxu0  ;;  %v2434_v55 = vpop.f32.mrb[23].mxu1 }
 0x121   :  { %v1389_v57 = vadd.f32 %v2432_v50, %v3522_v54  ;;  %v3563_v58 = vadd.f32 %v2382_v53, %v2381_v51  ;;  %v2435_v59 = vadd.f32 %v2434_v55, %v2433_v52 }
 0x123   :  { %v1392_v1 = vadd.f32 %v2435_v59, %v3526_v60 }
 0x125   :  { %v2436_v62 = vpop.f32.mrb[24].mxu1  ;;  %v2512_v63 = vpop.f32.mrb[24].mxu0 }
 0x126   :  { %v2437_v0 = vpop.f32.mrb[25].mxu1  ;;  %v2513_v3 = vpop.f32.mrb[25].mxu0 }
 0x127   :  { %v2438_v5 = vadd.f32 %v2437_v0, %v2436_v62  ;;  %v2514_v6 = vadd.f32 %v2513_v3, %v2512_v63  ;;  %v2439_v7 = vpop.f32.mrb[26].mxu1  ;;  %v2515_v10 = vpop.f32.mrb[26].mxu0 }
 0x128   :  { %v2440_v11 = vpop.f32.mrb[27].mxu1  ;;  %v2516_v12 = vpop.f32.mrb[27].mxu0 }
 0x129   :  { %v1397_v13 = vadd.f32 %v2438_v5, %v3530_v2  ;;  %v3567_v15 = vadd.f32 %v2514_v6, %v1389_v57  ;;  %v2441_v54 = vadd.f32 %v2440_v11, %v2439_v7  ;;  %v2517_v17 = vadd.f32 %v2516_v12, %v2515_v10 }
 0x12b   :  { %v1400_v18 = vadd.f32 %v2441_v54, %v3534_v8  ;;  %v3570_v19 = vadd.f32 %v2517_v17, %v1392_v1 }
 0x12d   :  { %v2442_v60 = vpop.f32.mrb[28].mxu1  ;;  %v2518_v22 = vpop.f32.mrb[28].mxu0 }
 0x12e   :  { %v2443_v23 = vpop.f32.mrb[29].mxu1  ;;  %v2519_v24 = vpop.f32.mrb[29].mxu0 }
 0x12f   :  { %v2444_v25 = vadd.f32 %v2443_v23, %v2442_v60  ;;  %v2520_v27 = vadd.f32 %v2519_v24, %v2518_v22  ;;  %v2445_v29 = vpop.f32.mrb[30].mxu1  ;;  %v2521_v30 = vpop.f32.mrb[30].mxu0 }
 0x130   :  { %v2446_v31 = vpop.f32.mrb[31].mxu1  ;;  %v2522_v34 = vpop.f32.mrb[31].mxu0 }
 0x131   :  { %v1405_v2 = vadd.f32 %v2444_v25, %v3538_v14  ;;  %v3573_v35 = vadd.f32 %v2520_v27, %v1397_v13  ;;  %v2447_v36 = vadd.f32 %v2446_v31, %v2445_v29  ;;  %v2523_v37 = vadd.f32 %v2522_v34, %v2521_v30 }
 0x133   :  { %v1408_v8 = vadd.f32 %v2447_v36, %v3542_v20  ;;  %v3576_v39 = vadd.f32 %v2523_v37, %v1400_v18 }
 0x135   :  { %v2448_v41 = vpop.f32.mrb[32].mxu1  ;;  %v2524_v42 = vpop.f32.mrb[32].mxu0 }
 0x136   :  { %v2449_v43 = vpop.f32.mrb[33].mxu1  ;;  %v2525_v45 = vpop.f32.mrb[33].mxu0 }
 0x137   :  { %v2450_v46 = vadd.f32 %v2449_v43, %v2448_v41  ;;  %v2526_v47 = vadd.f32 %v2525_v45, %v2524_v42  ;;  %v2451_v48 = vpop.f32.mrb[34].mxu1  ;;  %v2527_v50 = vpop.f32.mrb[34].mxu0 }
 0x138   :  { %v2452_v51 = vpop.f32.mrb[35].mxu1  ;;  %v2528_v52 = vpop.f32.mrb[35].mxu0 }
 0x139   :  { %v1413_v14 = vadd.f32 %v2450_v46, %v3546_v26  ;;  %v3579_v53 = vadd.f32 %v2526_v47, %v1405_v2  ;;  %v2453_v55 = vadd.f32 %v2452_v51, %v2451_v48  ;;  %v2529_v57 = vadd.f32 %v2528_v52, %v2527_v50 }
 0x13b   :  { %v1416_v20 = vadd.f32 %v2453_v55, %v3550_v32  ;;  %v3582_v59 = vadd.f32 %v2529_v57, %v1408_v8 }
 0x13d   :  { %v2454_v1 = vpop.f32.mrb[36].mxu1  ;;  %v2530_v62 = vpop.f32.mrb[36].mxu0 }
 0x13e   :  { %v2455_v63 = vpop.f32.mrb[37].mxu1  ;;  %v2531_v0 = vpop.f32.mrb[37].mxu0 }
 0x13f   :  { %v2456_v3 = vadd.f32 %v2455_v63, %v2454_v1  ;;  %v2532_v5 = vadd.f32 %v2531_v0, %v2530_v62  ;;  %v2457_v6 = vpop.f32.mrb[38].mxu1  ;;  %v2533_v7 = vpop.f32.mrb[38].mxu0 }
 0x140   :  { %v2458_v10 = vpop.f32.mrb[39].mxu1  ;;  %v2534_v11 = vpop.f32.mrb[39].mxu0 }
 0x141   :  { %v1421_v26 = vadd.f32 %v2456_v3, %v3554_v38  ;;  %v3585_v12 = vadd.f32 %v2532_v5, %v1413_v14  ;;  %v2459_v13 = vadd.f32 %v2458_v10, %v2457_v6  ;;  %v2535_v54 = vadd.f32 %v2534_v11, %v2533_v7 }
 0x143   :  { %v1424_v32 = vadd.f32 %v2459_v13, %v3558_v44  ;;  %v3588_v17 = vadd.f32 %v2535_v54, %v1416_v20 }
 0x145   :  { %v2460_v18 = vpop.f32.mrb[40].mxu1  ;;  %v2536_v60 = vpop.f32.mrb[40].mxu0 }
 0x146   :  { %v2461_v22 = vpop.f32.mrb[41].mxu1  ;;  %v2537_v23 = vpop.f32.mrb[41].mxu0 }
 0x147   :  { %v2462_v24 = vadd.f32 %v2461_v22, %v2460_v18  ;;  %v2538_v25 = vadd.f32 %v2537_v23, %v2536_v60  ;;  %v2463_v27 = vpop.f32.mrb[42].mxu1  ;;  %v2539_v29 = vpop.f32.mrb[42].mxu0 }
 0x148   :  { %v2464_v30 = vpop.f32.mrb[43].mxu1  ;;  %v2540_v31 = vpop.f32.mrb[43].mxu0 }
 0x149   :  { %v1429_v38 = vadd.f32 %v2462_v24, %v3560_v49  ;;  %v3591_v34 = vadd.f32 %v2538_v25, %v1421_v26  ;;  %v2465_v2 = vadd.f32 %v2464_v30, %v2463_v27  ;;  %v2541_v36 = vadd.f32 %v2540_v31, %v2539_v29 }
 0x14b   :  { %v1432_v44 = vadd.f32 %v2465_v2, %v3563_v58  ;;  %v3594_v37 = vadd.f32 %v2541_v36, %v1424_v32 }
 0x14d   :  { %v2466_v8 = vpop.f32.mrb[44].mxu1  ;;  %v2542_v41 = vpop.f32.mrb[44].mxu0 }
 0x14e   :  { %v2467_v42 = vpop.f32.mrb[45].mxu1  ;;  %v2543_v43 = vpop.f32.mrb[45].mxu0 }
 0x14f   :  { %v2468_v45 = vadd.f32 %v2467_v42, %v2466_v8  ;;  %v2544_v46 = vadd.f32 %v2543_v43, %v2542_v41  ;;  %v2469_v47 = vpop.f32.mrb[46].mxu1  ;;  %v2545_v48 = vpop.f32.mrb[46].mxu0 }
 0x150   :  { %v2470_v50 = vpop.f32.mrb[47].mxu1  ;;  %v2546_v51 = vpop.f32.mrb[47].mxu0 }
 0x151   :  { %v1437_v49 = vadd.f32 %v2468_v45, %v3524_v56  ;;  %v3597_v52 = vadd.f32 %v2544_v46, %v1429_v38  ;;  %v2471_v14 = vadd.f32 %v2470_v50, %v2469_v47  ;;  %v2547_v55 = vadd.f32 %v2546_v51, %v2545_v48 }
 0x153   :  { %v1440_v58 = vadd.f32 %v2471_v14, %v3528_v61  ;;  %v3600_v57 = vadd.f32 %v2547_v55, %v1432_v44 }
 0x155   :  { %v2472_v20 = vpop.f32.mrb[48].mxu1  ;;  %v2548_v1 = vpop.f32.mrb[48].mxu0 }
 0x156   :  { %v2473_v62 = vpop.f32.mrb[49].mxu1  ;;  %v2549_v63 = vpop.f32.mrb[49].mxu0 }
 0x157   :  { %v2474_v0 = vadd.f32 %v2473_v62, %v2472_v20  ;;  %v2550_v3 = vadd.f32 %v2549_v63, %v2548_v1  ;;  %v2475_v5 = vpop.f32.mrb[50].mxu1  ;;  %v2551_v6 = vpop.f32.mrb[50].mxu0 }
 0x158   :  { %v2476_v7 = vpop.f32.mrb[51].mxu1  ;;  %v2552_v10 = vpop.f32.mrb[51].mxu0 }
 0x159   :  { %v1445_v56 = vadd.f32 %v2474_v0, %v3532_v4  ;;  %v3603_v11 = vadd.f32 %v2550_v3, %v1437_v49  ;;  %v2477_v26 = vadd.f32 %v2476_v7, %v2475_v5  ;;  %v2553_v13 = vadd.f32 %v2552_v10, %v2551_v6 }
 0x15b   :  { %v1448_v61 = vadd.f32 %v2477_v26, %v3536_v9  ;;  %v3606_v54 = vadd.f32 %v2553_v13, %v1440_v58 }
 0x15d   :  { %v2478_v32 = vpop.f32.mrb[52].mxu1  ;;  %v2554_v18 = vpop.f32.mrb[52].mxu0 }
 0x15e   :  { %v2479_v60 = vpop.f32.mrb[53].mxu1  ;;  %v2555_v22 = vpop.f32.mrb[53].mxu0 }
 0x15f   :  { %v2480_v23 = vadd.f32 %v2479_v60, %v2478_v32  ;;  %v2556_v24 = vadd.f32 %v2555_v22, %v2554_v18  ;;  %v2481_v25 = vpop.f32.mrb[54].mxu1  ;;  %v2557_v27 = vpop.f32.mrb[54].mxu0 }
 0x160   :  { %v2482_v29 = vpop.f32.mrb[55].mxu1  ;;  %v2558_v30 = vpop.f32.mrb[55].mxu0 }
 0x161   :  { %v1453_v4 = vadd.f32 %v2480_v23, %v3540_v16  ;;  %v3609_v31 = vadd.f32 %v2556_v24, %v1445_v56  ;;  %v2483_v38 = vadd.f32 %v2482_v29, %v2481_v25  ;;  %v2559_v2 = vadd.f32 %v2558_v30, %v2557_v27 }
 0x163   :  { %v1456_v9 = vadd.f32 %v2483_v38, %v3544_v21  ;;  %v3612_v36 = vadd.f32 %v2559_v2, %v1448_v61 }
 0x165   :  { %v2484_v44 = vpop.f32.mrb[56].mxu1  ;;  %v2560_v8 = vpop.f32.mrb[56].mxu0 }
 0x166   :  { %v2485_v41 = vpop.f32.mrb[57].mxu1  ;;  %v2561_v42 = vpop.f32.mrb[57].mxu0 }
 0x167   :  { %v2486_v43 = vadd.f32 %v2485_v41, %v2484_v44  ;;  %v2562_v45 = vadd.f32 %v2561_v42, %v2560_v8  ;;  %v2487_v46 = vpop.f32.mrb[58].mxu1  ;;  %v2563_v47 = vpop.f32.mrb[58].mxu0  ;;  %v3632_v8 = vld [vmem:[%s3709_s2] ss:$0 sm:$0xff] }
 0x168   :  { %v2488_v48 = vpop.f32.mrb[59].mxu1  ;;  %v2564_v50 = vpop.f32.mrb[59].mxu0 }
 0x169   :  { %v1461_v16 = vadd.f32 %v2486_v43, %v3548_v28  ;;  %v3615_v51 = vadd.f32 %v2562_v45, %v1453_v4  ;;  %v2489_v49 = vadd.f32 %v2488_v48, %v2487_v46  ;;  %v2565_v14 = vadd.f32 %v2564_v50, %v2563_v47 }
 0x16b   :  { %v1464_v21 = vadd.f32 %v2489_v49, %v3552_v33  ;;  %v3618_v55 = vadd.f32 %v2565_v14, %v1456_v9 }
 0x16d   :  { %v2490_v58 = vpop.f32.mrb[60].mxu1  ;;  %v2566_v20 = vpop.f32.mrb[60].mxu0 }
 0x16e   :  { %v2491_v1 = vpop.f32.mrb[61].mxu1  ;;  %v2567_v62 = vpop.f32.mrb[61].mxu0 }
 0x16f   :  { %v2492_v63 = vadd.f32 %v2491_v1, %v2490_v58  ;;  %v2568_v0 = vadd.f32 %v2567_v62, %v2566_v20  ;;  %v2569_v3 = vpop.f32.mrb[62].mxu0  ;;  %v2493_v5 = vpop.f32.mrb[62].mxu1 }
 0x170   :  { %v2570_v6 = vpop.f32.mrb[63].mxu0  ;;  %v2494_v7 = vpop.f32.mrb[63].mxu1 }
 0x171   :  { %v1469_v28 = vadd.f32 %v2492_v63, %v3556_v40  ;;  %v3621_v10 = vadd.f32 %v2568_v0, %v1461_v16  ;;  %v2571_v56 = vadd.f32 %v2570_v6, %v2569_v3 }
 0x173   :  { %v3623_v26 = vadd.f32 %v2571_v56, %v1464_v21 }
 0x175   :  { %v2572_v33 = vpop.f32.mrb[64].mxu0  ;;  %v2594_v13 = vpop.f32.mrb[64].mxu1 }
 0x176   :  { %v2573_v61 = vpop.f32.mrb[65].mxu0  ;;  %v2595_v32 = vpop.f32.mrb[65].mxu1 }
 0x177   :  { %v2574_v18 = vadd.f32 %v2573_v61, %v2572_v33  ;;  %v2596_v60 = vadd.f32 %v2595_v32, %v2594_v13  ;;  %v2575_v22 = vpop.f32.mrb[66].mxu0  ;;  %v2597_v23 = vpop.f32.mrb[66].mxu1 }
 0x178   :  { %v2576_v24 = vpop.f32.mrb[67].mxu0  ;;  %v2598_v25 = vpop.f32.mrb[67].mxu1 }
 0x179   :  { %v3625_v27 = vadd.f32 %v2574_v18, %v1469_v28  ;;  %v2599_v29 = vadd.f32 %v2598_v25, %v2597_v23  ;;  %v1629_v40 = vadd.f32 %v2596_v60, %v3567_v15 }
 0x17b   :  { %v1632_v30 = vadd.f32 %v2599_v29, %v3570_v19 }
 0x17d   :  { %v2600_v4 = vpop.f32.mrb[68].mxu1  ;;  %v1748_v38 = vpop.f32.mrb[68].mxu0 }
 0x17e   :  { %v1749_v2 = vadd.f32 %v1748_v38, %v1629_v40  ;;  %v2601_v9 = vpop.f32.mrb[69].mxu1  ;;  %v2697_v44 = vpop.f32.mrb[69].mxu0 }
 0x17f   :  { %v2602_v41 = vadd.f32 %v2601_v9, %v2600_v4  ;;  %v2603_v42 = vpop.f32.mrb[70].mxu1  ;;  %v1751_v43 = vpop.f32.mrb[70].mxu0 }
 0x180   :  { %v1752_v45 = vadd.f32 %v1751_v43, %v1632_v30  ;;  %v2604_v46 = vpop.f32.mrb[71].mxu1  ;;  %v2698_v47 = vpop.f32.mrb[71].mxu0  ;;  %v1907_v19 = vadd.f32 %v3632_v8, %v1749_v2 }
 0x181   :  { %v2605_v48 = vadd.f32 %v2604_v46, %v2603_v42  ;;  %v1637_v15 = vadd.f32 %v2602_v41, %v3573_v35 }
 0x182   :  { %v1908_v16 = vadd.f32 %v3632_v8, %v1752_v45  ;;  %v1928_v21 = vmax.f32 %v1907_v19, 0.0 }
 0x183   :  { %v1640_v50 = vadd.f32 %v2605_v48, %v3576_v39 }
 0x184   :  { %v1929_v58 = vmax.f32 %v1908_v16, 0.0 }
 0x185   :  { %v2606_v49 = vpop.f32.mrb[72].mxu1  ;;  %v1756_v14 = vpop.f32.mrb[72].mxu0 }
 0x186   :  { %v1757_v20 = vadd.f32 %v1756_v14, %v1637_v15  ;;  %v2607_v1 = vpop.f32.mrb[73].mxu1  ;;  %v2701_v62 = vpop.f32.mrb[73].mxu0  ;;  %v2276_v5 = vpack.c.bf16 %v1929_v58, %v1928_v21 }
 0x187   :  { %v2608_v63 = vadd.f32 %v2607_v1, %v2606_v49  ;;  %v2609_v0 = vpop.f32.mrb[74].mxu1  ;;  %v1759_v3 = vpop.f32.mrb[74].mxu0 }
 0x188   :  { %v1760_v6 = vadd.f32 %v1759_v3, %v1640_v50  ;;  %v2610_v7 = vpop.f32.mrb[75].mxu1  ;;  %v2702_v35 = vpop.f32.mrb[75].mxu0  ;;  %2277 = vst [vmem:[%s3710_s3] sm:$0xff] %v2276_v5   ;;  %v1909_v39 = vadd.f32 %v3632_v8, %v1757_v20 }
 0x189   :  { %v2611_v28 = vadd.f32 %v2610_v7, %v2609_v0  ;;  %v1645_v56 = vadd.f32 %v2608_v63, %v3579_v53 }
 0x18a   :  { %v1910_v13 = vadd.f32 %v3632_v8, %v1760_v6  ;;  %v1930_v18 = vmax.f32 %v1909_v39, 0.0 }
 0x18b   :  { %v1648_v33 = vadd.f32 %v2611_v28, %v3582_v59 }
 0x18c   :  { %v1931_v60 = vmax.f32 %v1910_v13, 0.0 }
 0x18d   :  { %v2612_v61 = vpop.f32.mrb[76].mxu1  ;;  %v1764_v32 = vpop.f32.mrb[76].mxu0 }
 0x18e   :  { %v1765_v22 = vadd.f32 %v1764_v32, %v1645_v56  ;;  %v2613_v23 = vpop.f32.mrb[77].mxu1  ;;  %v2705_v24 = vpop.f32.mrb[77].mxu0  ;;  %v2281_v40 = vpack.c.bf16 %v1931_v60, %v1930_v18 }
 0x18f   :  { %v2614_v25 = vadd.f32 %v2613_v23, %v2612_v61  ;;  %v2615_v29 = vpop.f32.mrb[78].mxu1  ;;  %v1767_v53 = vpop.f32.mrb[78].mxu0 }
 0x190   :  { %v1768_v30 = vadd.f32 %v1767_v53, %v1648_v33  ;;  %v2616_v4 = vpop.f32.mrb[79].mxu1  ;;  %v2706_v38 = vpop.f32.mrb[79].mxu0  ;;  %2323 = vst [vmem:[%s3710_s3 + $0x8] sm:$0xff] %v2281_v40   ;;  %v1911_v59 = vadd.f32 %v3632_v8, %v1765_v22 }
 0x191   :  { %v2617_v2 = vadd.f32 %v2616_v4, %v2615_v29  ;;  %v1653_v9 = vadd.f32 %v2614_v25, %v3585_v12 }
 0x192   :  { %v1912_v41 = vadd.f32 %v3632_v8, %v1768_v30  ;;  %v1932_v45 = vmax.f32 %v1911_v59, 0.0 }
 0x193   :  { %v1656_v44 = vadd.f32 %v2617_v2, %v3588_v17 }
 0x194   :  { %v1933_v46 = vmax.f32 %v1912_v41, 0.0 }
 0x195   :  { %v2618_v42 = vpop.f32.mrb[80].mxu1  ;;  %v1772_v43 = vpop.f32.mrb[80].mxu0 }
 0x196   :  { %v1773_v47 = vadd.f32 %v1772_v43, %v1653_v9  ;;  %v2619_v48 = vpop.f32.mrb[81].mxu1  ;;  %v2709_v15 = vpop.f32.mrb[81].mxu0  ;;  %v2286_v16 = vpack.c.bf16 %v1933_v46, %v1932_v45 }
 0x197   :  { %v2620_v19 = vadd.f32 %v2619_v48, %v2618_v42  ;;  %v2621_v50 = vpop.f32.mrb[82].mxu1  ;;  %v1775_v12 = vpop.f32.mrb[82].mxu0 }
 0x198   :  { %v1776_v49 = vadd.f32 %v1775_v12, %v1656_v44  ;;  %v2622_v14 = vpop.f32.mrb[83].mxu1  ;;  %v2710_v21 = vpop.f32.mrb[83].mxu0  ;;  %2324 = vst [vmem:[%s3710_s3 + $0x10] sm:$0xff] %v2286_v16   ;;  %v1913_v17 = vadd.f32 %v3632_v8, %v1773_v47 }
 0x199   :  { %v2623_v58 = vadd.f32 %v2622_v14, %v2621_v50  ;;  %v1661_v20 = vadd.f32 %v2620_v19, %v3591_v34 }
 0x19a   :  { %v1914_v62 = vadd.f32 %v3632_v8, %v1776_v49  ;;  %v1934_v3 = vmax.f32 %v1913_v17, 0.0 }
 0x19b   :  { %v1664_v1 = vadd.f32 %v2623_v58, %v3594_v37 }
 0x19c   :  { %v1935_v5 = vmax.f32 %v1914_v62, 0.0 }
 0x19d   :  { %v2624_v63 = vpop.f32.mrb[84].mxu1  ;;  %v1780_v0 = vpop.f32.mrb[84].mxu0 }
 0x19e   :  { %v1781_v6 = vadd.f32 %v1780_v0, %v1661_v20  ;;  %v2625_v7 = vpop.f32.mrb[85].mxu1  ;;  %v2713_v35 = vpop.f32.mrb[85].mxu0  ;;  %v2291_v39 = vpack.c.bf16 %v1935_v5, %v1934_v3 }
 0x19f   :  { %v2626_v28 = vadd.f32 %v2625_v7, %v2624_v63  ;;  %v2627_v56 = vpop.f32.mrb[86].mxu1  ;;  %v1783_v34 = vpop.f32.mrb[86].mxu0 }
 0x1a0   :  { %v1784_v33 = vadd.f32 %v1783_v34, %v1664_v1  ;;  %v2628_v13 = vpop.f32.mrb[87].mxu1  ;;  %v2714_v61 = vpop.f32.mrb[87].mxu0  ;;  %2325 = vst [vmem:[%s3710_s3 + $0x18] sm:$0xff] %v2291_v39   ;;  %v1915_v37 = vadd.f32 %v3632_v8, %v1781_v6 }
 0x1a1   :  { %v2629_v32 = vadd.f32 %v2628_v13, %v2627_v56  ;;  %v1669_v18 = vadd.f32 %v2626_v28, %v3597_v52 }
 0x1a2   :  { %v1916_v22 = vadd.f32 %v3632_v8, %v1784_v33  ;;  %v1936_v25 = vmax.f32 %v1915_v37, 0.0 }
 0x1a3   :  { %v1672_v60 = vadd.f32 %v2629_v32, %v3600_v57 }
 0x1a4   :  { %v1937_v29 = vmax.f32 %v1916_v22, 0.0 }
 0x1a5   :  { %v2630_v23 = vpop.f32.mrb[88].mxu1  ;;  %v1788_v24 = vpop.f32.mrb[88].mxu0 }
 0x1a6   :  { %v1789_v53 = vadd.f32 %v1788_v24, %v1669_v18  ;;  %v2631_v40 = vpop.f32.mrb[89].mxu1  ;;  %v2717_v30 = vpop.f32.mrb[89].mxu0  ;;  %v2296_v2 = vpack.c.bf16 %v1937_v29, %v1936_v25 }
 0x1a7   :  { %v2632_v4 = vadd.f32 %v2631_v40, %v2630_v23  ;;  %v2633_v38 = vpop.f32.mrb[90].mxu1  ;;  %v1791_v52 = vpop.f32.mrb[90].mxu0 }
 0x1a8   :  { %v1792_v9 = vadd.f32 %v1791_v52, %v1672_v60  ;;  %v2634_v59 = vpop.f32.mrb[91].mxu1  ;;  %v2718_v44 = vpop.f32.mrb[91].mxu0  ;;  %2326 = vst [vmem:[%s3710_s3 + $0x20] sm:$0xff] %v2296_v2   ;;  %v1917_v57 = vadd.f32 %v3632_v8, %v1789_v53 }
 0x1a9   :  { %v2635_v41 = vadd.f32 %v2634_v59, %v2633_v38  ;;  %v1677_v42 = vadd.f32 %v2632_v4, %v3603_v11 }
 0x1aa   :  { %v1918_v45 = vadd.f32 %v3632_v8, %v1792_v9  ;;  %v1938_v48 = vmax.f32 %v1917_v57, 0.0 }
 0x1ab   :  { %v1680_v43 = vadd.f32 %v2635_v41, %v3606_v54 }
 0x1ac   :  { %v1939_v15 = vmax.f32 %v1918_v45, 0.0 }
 0x1ad   :  { %v2636_v46 = vpop.f32.mrb[92].mxu1  ;;  %v1796_v47 = vpop.f32.mrb[92].mxu0 }
 0x1ae   :  { %v1797_v19 = vadd.f32 %v1796_v47, %v1677_v42  ;;  %v2637_v50 = vpop.f32.mrb[93].mxu1  ;;  %v2721_v12 = vpop.f32.mrb[93].mxu0  ;;  %v2301_v14 = vpack.c.bf16 %v1939_v15, %v1938_v48 }
 0x1af   :  { %v2638_v16 = vadd.f32 %v2637_v50, %v2636_v46  ;;  %v2639_v49 = vpop.f32.mrb[94].mxu1  ;;  %v1799_v11 = vpop.f32.mrb[94].mxu0 }
 0x1b0   :  { %v1800_v21 = vadd.f32 %v1799_v11, %v1680_v43  ;;  %v2640_v58 = vpop.f32.mrb[95].mxu1  ;;  %v2722_v20 = vpop.f32.mrb[95].mxu0  ;;  %2327 = vst [vmem:[%s3710_s3 + $0x28] sm:$0xff] %v2301_v14   ;;  %v1919_v54 = vadd.f32 %v3632_v8, %v1797_v19 }
 0x1b1   :  { %v2641_v17 = vadd.f32 %v2640_v58, %v2639_v49  ;;  %v1685_v1 = vadd.f32 %v2638_v16, %v3609_v31  ;;  %v60_v58 = vld [vmem:[#allocation2 + $0xa0] sm:$0x3] }
 0x1b2   :  { %v1920_v63 = vadd.f32 %v3632_v8, %v1800_v21  ;;  %v1940_v5 = vmax.f32 %v1919_v54, 0.0 }
 0x1b3   :  { %v1688_v62 = vadd.f32 %v2641_v17, %v3612_v36 }
 0x1b4   :  { %v1941_v6 = vmax.f32 %v1920_v63, 0.0 }
 0x1b5   :  { %v2642_v0 = vpop.f32.mrb[96].mxu1  ;;  %v1804_v3 = vpop.f32.mrb[96].mxu0 }
 0x1b6   :  { %v1805_v7 = vadd.f32 %v1804_v3, %v1685_v1  ;;  %v2643_v35 = vpop.f32.mrb[97].mxu1  ;;  %v2725_v28 = vpop.f32.mrb[97].mxu0  ;;  %v2306_v39 = vpack.c.bf16 %v1941_v6, %v1940_v5 }
 0x1b7   :  { %v2644_v56 = vadd.f32 %v2643_v35, %v2642_v0  ;;  %v2645_v34 = vpop.f32.mrb[98].mxu1  ;;  %v1807_v31 = vpop.f32.mrb[98].mxu0 }
 0x1b8   :  { %v1808_v33 = vadd.f32 %v1807_v31, %v1688_v62  ;;  %v2646_v13 = vpop.f32.mrb[99].mxu1  ;;  %v2726_v61 = vpop.f32.mrb[99].mxu0  ;;  %2328 = vst [vmem:[%s3710_s3 + $0x30] sm:$0xff] %v2306_v39   ;;  %v1921_v36 = vadd.f32 %v3632_v8, %v1805_v7 }
 0x1b9   :  { %v2647_v32 = vadd.f32 %v2646_v13, %v2645_v34  ;;  %v1693_v18 = vadd.f32 %v2644_v56, %v3615_v51 }
 0x1ba   :  { %v1922_v60 = vadd.f32 %v3632_v8, %v1808_v33  ;;  %v1942_v24 = vmax.f32 %v1921_v36, 0.0 }
 0x1bb   :  { %v1696_v37 = vadd.f32 %v2647_v32, %v3618_v55 }
 0x1bc   :  { %v1943_v25 = vmax.f32 %v1922_v60, 0.0 }
 0x1bd   :  { %v2648_v22 = vpop.f32.mrb[100].mxu1  ;;  %v1812_v23 = vpop.f32.mrb[100].mxu0 }
 0x1be   :  { %v1813_v29 = vadd.f32 %v1812_v23, %v1693_v18  ;;  %v2649_v53 = vpop.f32.mrb[101].mxu1  ;;  %v2729_v40 = vpop.f32.mrb[101].mxu0  ;;  %v2311_v38 = vpack.c.bf16 %v1943_v25, %v1942_v24 }
 0x1bf   :  { %v2650_v30 = vadd.f32 %v2649_v53, %v2648_v22  ;;  %v2651_v4 = vpop.f32.mrb[102].mxu1  ;;  %v1815_v51 = vpop.f32.mrb[102].mxu0 }
 0x1c0   :  { %v1816_v52 = vadd.f32 %v1815_v51, %v1696_v37  ;;  %v2652_v2 = vpop.f32.mrb[103].mxu1  ;;  %v2730_v9 = vpop.f32.mrb[103].mxu0  ;;  %2329 = vst [vmem:[%s3710_s3 + $0x38] sm:$0xff] %v2311_v38   ;;  %v1923_v55 = vadd.f32 %v3632_v8, %v1813_v29 }
 0x1c1   :  { %v2653_v59 = vadd.f32 %v2652_v2, %v2651_v4  ;;  %v1701_v44 = vadd.f32 %v2650_v30, %v3621_v10 }
 0x1c2   :  { %v1924_v42 = vadd.f32 %v3632_v8, %v1816_v52  ;;  %v1944_v45 = vmax.f32 %v1923_v55, 0.0 }
 0x1c3   :  { %v1704_v41 = vadd.f32 %v2653_v59, %v3623_v26 }
 0x1c4   :  { %v1945_v46 = vmax.f32 %v1924_v42, 0.0 }
 0x1c5   :  { %v2654_v57 = vpop.f32.mrb[104].mxu1  ;;  %v1820_v43 = vpop.f32.mrb[104].mxu0 }
 0x1c6   :  { %v1821_v47 = vadd.f32 %v1820_v43, %v1701_v44  ;;  %v2655_v48 = vpop.f32.mrb[105].mxu1  ;;  %v2733_v15 = vpop.f32.mrb[105].mxu0  ;;  %v2316_v12 = vpack.c.bf16 %v1945_v46, %v1944_v45 }
 0x1c7   :  { %v2656_v19 = vadd.f32 %v2655_v48, %v2654_v57  ;;  %v1823_v50 = vpop.f32.mrb[106].mxu0  ;;  %v2657_v10 = vpop.f32.mrb[106].mxu1 }
 0x1c8   :  { %v1824_v16 = vadd.f32 %v1823_v50, %v1704_v41  ;;  %v2734_v49 = vpop.f32.mrb[107].mxu0  ;;  %v2658_v11 = vpop.f32.mrb[107].mxu1  ;;  %2330 = vst [vmem:[%s3710_s3 + $0x40] sm:$0xff] %v2316_v12   ;;  %v1925_v26 = vadd.f32 %v3632_v8, %v1821_v47 }
 0x1c9   :  { %v1709_v14 = vadd.f32 %v2656_v19, %v3625_v27 }
 0x1ca   :  { %v1926_v21 = vadd.f32 %v3632_v8, %v1824_v16  ;;  %v1946_v17 = vmax.f32 %v1925_v26, 0.0 }
 0x1cc   :  { %v1947_v1 = vmax.f32 %v1926_v21, 0.0 }
 0x1cd   :  { %v1828_v20 = vpop.f32.mrb[108].mxu0 }
 0x1ce   :  { %v1829_v54 = vadd.f32 %v1828_v20, %v1709_v14  ;;  %v2737_v62 = vpop.f32.mrb[109].mxu0  ;;  %v2321_v0 = vpack.c.bf16 %v1947_v1, %v1946_v17 }
 0x1cf   :  { %v1831_v63 = vpop.f32.mrb[110].mxu0 }
 0x1d0   :  { %v1854_v3 = vadd.f32 %v1829_v54, %v60_v58  ;;  %v2738_v5 = vpop.f32.mrb[111].mxu0  ;;  %2331 = vst [vmem:[%s3710_s3 + $0x48] sm:$0xff] %v2321_v0  }
 0x1d2   :  { %1875 = vst [vmem:[#allocation2 + $0xa0] sm:$0x3] %v1854_v3 }
 0x1d9   :  { %v1899_v27 = vld [vmem:[#allocation2 + $0xa0] sm:$0x3] }
 0x1da   :  { %v1927_v6 = vadd.f32 %v3632_v8, %v1899_v27 }
 0x1dc   :  { %v1948_v7 = vmax.f32 %v1927_v6, 0.0 }
 0x1de   :  { %v2272_v35 = vpack.c.bf16 %v1948_v7, %v1948_v7 }
 0x1e0   :  { %2054 = vst [vmem:[%s3710_s3 + $0x50] sm:$0x1] %v2272_v35 }

// kernel: feature_network.11
= control target key start
LH: loop header
LB: loop body
LE: loop exit
PB: predicated region body
PF: predicated region fallthrough
CT: control target
= control target key end

     0   :  { %8 = vsyncpa [#allocation4], 0  ;;  %s3076_s12 = smov 0   ;;  %s3078_s13 = smov 0   ;;  %s3447_s0 = inlined_call_operand.vmem [shape: bf16[2,8192], index: 0, kind: input, shape index: {}]   ;;  %s3448_s1 = inlined_call_operand.vmem [shape: bf16[8192,512], index: 1, kind: input, shape index: {}]   ;;  %s3449_s2 = inlined_call_operand.vmem [shape: f32[1,512], index: 2, kind: input, shape index: {}]   ;;  %s3450_s3 = inlined_call_operand.hbm [shape: f32[2,512], index: 3, kind: output, shape index: {}]  }
   0x1   :  { %s3080_s14 = smov 0  }
   0x2 LB: > { %s2284_s15 = sadd.s32 4294967295, %s3050_s14   ;;  %s23_s16 = sadd.s32 1, %s3046_s13  ;;  %s3050_s14 = sphi %s3080_s14, %s14_s14   ;;  %s3046_s13 = sphi %s3078_s13, %s3453_s13   ;;  %s3042_s12 = sphi %s3076_s12, %s3452_s12  }
   0x3   : > { %p24_p0 = scmp.ge.s32.totalorder %s23_s16, 8  ;;  %p2287_p1 = scmp.ge.s32.totalorder %s3050_s14, 1 }
   0x4   : > { %p168_p2 = scmp.lt.s32.totalorder %s3050_s14, 9 }
   0x5   : > { %s3455_s16 = smov (%p24_p0, %s23_s16), 0 }
   0x6   : > { %p169_p3 = pnand %p2287_p1, %p168_p2 }
   0x7   : > { %s2288_s17 = sshll.u32 (!%p169_p3), %s3042_s12, 3  ;;  %s2289_s18 = sshll.u32 (!%p169_p3), %s3042_s12, 7 }
   0x8   : > { %172 = sbr.rel (%p169_p3) target bundleno = 540 (0x21c), region = 32  ;;  %p199_p4 = scmp.lt.s32.totalorder (!%p169_p3), %s2288_s17, 63 }
   0x9   : > { %p206_p5 = scmp.lt.s32.totalorder (!%p169_p3), %s2289_s18, 1023  ;;  %p2292_p6 = scmp.ne.s32.totalorder (!%p169_p3), %s3042_s12, 0 }
   0xf   : > { %s3457_s17 = smov (!%p199_p4, %s2288_s17), 63  ;;  %s3459_s18 = smov (!%p206_p5, %s2289_s18), 1023 }
  0x10   : > { %s203_s21 = scalar_lea.vmem %s3447_s0, %s3457_s17  ;;  %s2554_s22 = sshll.u32 %s3459_s18, 4  ;;  %v3052_v0 = vmov (!%p2292_p6), 0.0  }
  0x11   : > { %s3108_s25 = scalar_lea.vmem %s3448_s1, %s2554_s22  ;;  %215 = sbr.rel (%p2292_p6) target bundleno = 24 (0x18), region = 36  ;;  %216 = vst [vmem:[#allocation2] sm:$0xff] (!%p2292_p6), %v3052_v0 }
  0x18 PF: > { %v2613_v1 = vld [vmem:[%s3108_s25 + $0x4] ss:$16 sps:$4 sm:$0xff]   ;;  %v2615_v2 = vld [vmem:[%s3108_s25 + $0xc] ss:$16 sps:$4 sm:$0xff]   ;;  %v2617_v3 = vld [vmem:[%s3108_s25] ss:$16 sps:$4 sm:$0xff]   ;;  %v480_v39 = vlaneseq }
  0x19   : > { %1813 = vmatprep.subr.bf16.mxu0 %v2613_v1  ;;  %v2618_v4 = vld [vmem:[%s3108_s25 + $0x8] ss:$16 sps:$4 sm:$0xff]   ;;  %1977 = vmatprep.subr.bf16.mxu1 %v2615_v2  ;;  %v2619_v5 = vld [vmem:[%s3108_s25 + $0x24] ss:$16 sps:$4 sm:$0xff]   ;;  %v2621_v6 = vld [vmem:[%s3108_s25 + $0x2c] ss:$16 sps:$4 sm:$0xff]  }
  0x1a   : > { %1814 = vmatpush1.bf16.msra.mxu0 %v2617_v3  ;;  %1978 = vmatpush1.bf16.msra.mxu1 %v2618_v4  ;;  %v2623_v7 = vld [vmem:[%s3108_s25 + $0x20] ss:$16 sps:$4 sm:$0xff]   ;;  %v2624_v8 = vld [vmem:[%s3108_s25 + $0x28] ss:$16 sps:$4 sm:$0xff]   ;;  %v2625_v9 = vld [vmem:[%s3108_s25 + $0x44] ss:$16 sps:$4 sm:$0xff]  }
  0x1b   : > { %1815 = vmatprep.subr.bf16.mxu0 %v2619_v5  ;;  %1979 = vmatprep.subr.bf16.mxu1 %v2621_v6  ;;  %v2627_v10 = vld [vmem:[%s3108_s25 + $0x4c] ss:$16 sps:$4 sm:$0xff]   ;;  %v2629_v11 = vld [vmem:[%s3108_s25 + $0x40] ss:$16 sps:$4 sm:$0xff]   ;;  %v2630_v12 = vld [vmem:[%s3108_s25 + $0x48] ss:$16 sps:$4 sm:$0xff]  }
  0x1c   : > { %v2631_v13 = vld [vmem:[%s3108_s25 + $0x64] ss:$16 sps:$4 sm:$0xff]   ;;  %v2633_v14 = vld [vmem:[%s3108_s25 + $0x6c] ss:$16 sps:$4 sm:$0xff]   ;;  %v2635_v15 = vld [vmem:[%s3108_s25 + $0x60] ss:$16 sps:$4 sm:$0xff]  }
  0x1d   : > { %v2636_v16 = vld [vmem:[%s3108_s25 + $0x68] ss:$16 sps:$4 sm:$0xff]   ;;  %v2637_v17 = vld [vmem:[%s3108_s25 + $0x84] ss:$16 sps:$4 sm:$0xff]   ;;  %v2639_v18 = vld [vmem:[%s3108_s25 + $0x8c] ss:$16 sps:$4 sm:$0xff]  }
  0x1e   : > { %1816 = vmatpush1.bf16.msra.mxu0 %v2623_v7  ;;  %1980 = vmatpush1.bf16.msra.mxu1 %v2624_v8  ;;  %v2641_v19 = vld [vmem:[%s3108_s25 + $0x80] ss:$16 sps:$4 sm:$0xff]   ;;  %v2642_v20 = vld [vmem:[%s3108_s25 + $0x88] ss:$16 sps:$4 sm:$0xff]   ;;  %v2643_v21 = vld [vmem:[%s3108_s25 + $0xa4] ss:$16 sps:$4 sm:$0xff]  }
  0x1f   : > { %1817 = vmatprep.subr.bf16.mxu0 %v2625_v9  ;;  %1981 = vmatprep.subr.bf16.mxu1 %v2627_v10  ;;  %v2645_v22 = vld [vmem:[%s3108_s25 + $0xac] ss:$16 sps:$4 sm:$0xff]   ;;  %v2647_v23 = vld [vmem:[%s3108_s25 + $0xa0] ss:$16 sps:$4 sm:$0xff]   ;;  %v2648_v24 = vld [vmem:[%s3108_s25 + $0xa8] ss:$16 sps:$4 sm:$0xff]  }
  0x20   : > { %v2649_v25 = vld [vmem:[%s3108_s25 + $0xc4] ss:$16 sps:$4 sm:$0xff]   ;;  %v2651_v26 = vld [vmem:[%s3108_s25 + $0xcc] ss:$16 sps:$4 sm:$0xff]   ;;  %v2653_v27 = vld [vmem:[%s3108_s25 + $0xc0] ss:$16 sps:$4 sm:$0xff]  }
  0x21   : > { %v2654_v28 = vld [vmem:[%s3108_s25 + $0xc8] ss:$16 sps:$4 sm:$0xff]   ;;  %v2655_v29 = vld [vmem:[%s3108_s25 + $0xe4] ss:$16 sps:$4 sm:$0xff]   ;;  %v2657_v30 = vld [vmem:[%s3108_s25 + $0xec] ss:$16 sps:$4 sm:$0xff]  }
  0x22   : > { %1818 = vmatpush1.bf16.msra.mxu0 %v2629_v11  ;;  %1982 = vmatpush1.bf16.msra.mxu1 %v2630_v12  ;;  %v2659_v31 = vld [vmem:[%s3108_s25 + $0xe0] ss:$16 sps:$4 sm:$0xff]   ;;  %v2660_v32 = vld [vmem:[%s3108_s25 + $0xe8] ss:$16 sps:$4 sm:$0xff]   ;;  %v2661_v33 = vld [vmem:[%s3108_s25 + $0x104] ss:$16 sps:$4 sm:$0xff]  }
  0x23   : > { %1819 = vmatprep.subr.bf16.mxu0 %v2631_v13  ;;  %1983 = vmatprep.subr.bf16.mxu1 %v2633_v14  ;;  %v2663_v34 = vld [vmem:[%s3108_s25 + $0x10c] ss:$16 sps:$4 sm:$0xff]   ;;  %v2665_v35 = vld [vmem:[%s3108_s25 + $0x100] ss:$16 sps:$4 sm:$0xff]   ;;  %v2666_v36 = vld [vmem:[%s3108_s25 + $0x108] ss:$16 sps:$4 sm:$0xff]  }
  0x24   : > { %v3053_v37 = vmov 1966171168   ;;  %v2667_v40 = vld [vmem:[%s3108_s25 + $0x124] ss:$16 sps:$4 sm:$0xff]   ;;  %v2669_v41 = vld [vmem:[%s3108_s25 + $0x12c] ss:$16 sps:$4 sm:$0xff]  }
  0x25   : > { %v478_v38 = vunpack.c.l.s4 %v3053_v37  ;;  %v2671_v42 = vld [vmem:[%s3108_s25 + $0x120] ss:$16 sps:$4 sm:$0xff]   ;;  %v3150_v44 = vshrl.u32 %v480_v39, 7  ;;  %v2672_v45 = vld [vmem:[%s3108_s25 + $0x128] ss:$16 sps:$4 sm:$0xff]   ;;  %p2549_p7 = scmp.ne.s32.totalorder %s3042_s12, 7 }
  0x26   : > { %1820 = vmatpush1.bf16.msra.mxu0 %v2635_v15  ;;  %1984 = vmatpush1.bf16.msra.mxu1 %v2636_v16  ;;  %v2673_v46 = vld [vmem:[%s3108_s25 + $0x144] ss:$16 sps:$4 sm:$0xff]   ;;  %v2675_v47 = vld [vmem:[%s3108_s25 + $0x14c] ss:$16 sps:$4 sm:$0xff]   ;;  %v2677_v48 = vld [vmem:[%s3108_s25 + $0x140] ss:$16 sps:$4 sm:$0xff]  }
  0x27   : > { %1821 = vmatprep.subr.bf16.mxu0 %v2637_v17  ;;  %1985 = vmatprep.subr.bf16.mxu1 %v2639_v18  ;;  %v479_v43 = vunpack.c.0.s8 %v478_v38  ;;  %v2678_v49 = vld [vmem:[%s3108_s25 + $0x148] ss:$16 sps:$4 sm:$0xff]   ;;  %v2679_v51 = vld [vmem:[%s3108_s25 + $0x164] ss:$16 sps:$4 sm:$0xff]   ;;  %v2681_v52 = vld [vmem:[%s3108_s25 + $0x16c] ss:$16 sps:$4 sm:$0xff]  }
  0x28   : > { %v218_v53 = vld [vmem:[%s203_s21] sm:$0xff]  ;;  %v2684_v56 = vld [vmem:[%s3108_s25 + $0x168] ss:$16 sps:$4 sm:$0xff]   ;;  %v2687_v58 = vld [vmem:[%s3108_s25 + $0x18c] ss:$16 sps:$4 sm:$0xff]  }
  0x29   : > { %v3158_v50 = vsub.s32 %v479_v43, %v3150_v44  ;;  %v2683_v54 = vld [vmem:[%s3108_s25 + $0x160] ss:$16 sps:$4 sm:$0xff]   ;;  %v2685_v57 = vld [vmem:[%s3108_s25 + $0x184] ss:$16 sps:$4 sm:$0xff]   ;;  %v2690_v62 = vld [vmem:[%s3108_s25 + $0x188] ss:$16 sps:$4 sm:$0xff]   ;;  %v476_v10 = vcombine.high %v218_v53, %v218_v53 }
  0x2a   : > { %1822 = vmatpush1.bf16.msra.mxu0 %v2641_v19  ;;  %1986 = vmatpush1.bf16.msra.mxu1 %v2642_v20  ;;  %v2689_v60 = vld [vmem:[%s3108_s25 + $0x180] ss:$16 sps:$4 sm:$0xff]   ;;  %v2691_v63 = vld [vmem:[%s3108_s25 + $0x1a4] ss:$16 sps:$4 sm:$0xff]   ;;  %v2693_v0 = vld [vmem:[%s3108_s25 + $0x1ac] ss:$16 sps:$4 sm:$0xff]  }
  0x2b   : > { %1823 = vmatprep.subr.bf16.mxu0 %v2643_v21  ;;  %1987 = vmatprep.subr.bf16.mxu1 %v2645_v22  ;;  %v483_v55 = vrot.slane %v218_v53, %v3158_v50  ;;  %v2695_v1 = vld [vmem:[%s3108_s25 + $0x1a0] ss:$16 sps:$4 sm:$0xff]   ;;  %v2696_v2 = vld [vmem:[%s3108_s25 + $0x1a8] ss:$16 sps:$4 sm:$0xff]   ;;  %v2697_v3 = vld [vmem:[%s3108_s25 + $0x1c4] ss:$16 sps:$4 sm:$0xff]   ;;  %v490_v14 = vrot.slane %v476_v10, %v3158_v50 }
  0x2c   : > { %v2699_v4 = vld [vmem:[%s3108_s25 + $0x1cc] ss:$16 sps:$4 sm:$0xff]   ;;  %v2701_v5 = vld [vmem:[%s3108_s25 + $0x1c0] ss:$16 sps:$4 sm:$0xff]   ;;  %v2702_v6 = vld [vmem:[%s3108_s25 + $0x1c8] ss:$16 sps:$4 sm:$0xff]  }
  0x2d   : > { %v491_v59 = vcombine.high %v483_v55, %v483_v55  ;;  %v2703_v7 = vld [vmem:[%s3108_s25 + $0x1e4] ss:$16 sps:$4 sm:$0xff]   ;;  %v2705_v8 = vld [vmem:[%s3108_s25 + $0x1ec] ss:$16 sps:$4 sm:$0xff]   ;;  %v2707_v9 = vld [vmem:[%s3108_s25 + $0x1e0] ss:$16 sps:$4 sm:$0xff]   ;;  %v3192_v16 = vrot.slane %v483_v55, %v3158_v50  ;;  %v492_v17 = vcombine.high %v490_v14, %v490_v14  ;;  %v3201_v22 = vrot.slane %v490_v14, %v3158_v50 }
  0x2e   : > { %1824 = vmatpush1.bf16.msra.mxu0 %v2647_v23  ;;  %1988 = vmatpush1.bf16.msra.mxu1 %v2648_v24  ;;  %v2708_v11 = vld [vmem:[%s3108_s25 + $0x1e8] ss:$16 sps:$4 sm:$0xff]   ;;  %v2711_v12 = vld [vmem:[%s3108_s25 + $0x204] ss:$16 sps:$4 sm:$0xff]   ;;  %v2714_v13 = vld [vmem:[%s3108_s25 + $0x20c] ss:$16 sps:$4 sm:$0xff]  }
  0x2f   : > { %1825 = vmatprep.subr.bf16.mxu0 %v2649_v25  ;;  %1989 = vmatprep.subr.bf16.mxu1 %v2651_v26  ;;  %v513_v61 = vrot.slane %v491_v59, %v3158_v50  ;;  %v2709_v15 = vld [vmem:[%s3108_s25 + $0x200] ss:$16 sps:$4 sm:$0xff]   ;;  %v2712_v18 = vld [vmem:[%s3108_s25 + $0x208] ss:$16 sps:$4 sm:$0xff]   ;;  %v2717_v19 = vld [vmem:[%s3108_s25 + $0x224] ss:$16 sps:$4 sm:$0xff]   ;;  %v3198_v21 = vrot.slane %v492_v17, %v3158_v50 }
  0x30   : > { %v2720_v20 = vld [vmem:[%s3108_s25 + $0x22c] ss:$16 sps:$4 sm:$0xff]   ;;  %v2715_v24 = vld [vmem:[%s3108_s25 + $0x220] ss:$16 sps:$4 sm:$0xff]   ;;  %v2718_v25 = vld [vmem:[%s3108_s25 + $0x228] ss:$16 sps:$4 sm:$0xff]  }
  0x31   : > { %1845 = vmatprep.mubr.bf16.mxu0 %v513_v61  ;;  %2009 = vmatprep.mubr.bf16.mxu1 %v513_v61  ;;  %v523_v23 = vcombine.high %v513_v61, %v513_v61  ;;  %v2723_v26 = vld [vmem:[%s3108_s25 + $0x244] ss:$16 sps:$4 sm:$0xff]   ;;  %v2736_v37 = vld [vmem:[%s3108_s25 + $0x288] ss:$16 sps:$4 sm:$0xff]   ;;  %v2744_v39 = vld [vmem:[%s3108_s25 + $0x2ac] ss:$16 sps:$4 sm:$0xff]  }
  0x32   : > { %1826 = vmatpush1.bf16.msra.mxu0 %v2653_v27  ;;  %1990 = vmatpush1.bf16.msra.mxu1 %v2654_v28  ;;  %v2726_v27 = vld [vmem:[%s3108_s25 + $0x24c] ss:$16 sps:$4 sm:$0xff]   ;;  %v2721_v28 = vld [vmem:[%s3108_s25 + $0x240] ss:$16 sps:$4 sm:$0xff]   ;;  %v2741_v38 = vld [vmem:[%s3108_s25 + $0x2a4] ss:$16 sps:$4 sm:$0xff]  }
  0x33   : > { %1827 = vmatprep.subr.bf16.mxu0 %v2655_v29  ;;  %1991 = vmatprep.subr.bf16.mxu1 %v2657_v30  ;;  %v2724_v29 = vld [vmem:[%s3108_s25 + $0x248] ss:$16 sps:$4 sm:$0xff]   ;;  %v2729_v30 = vld [vmem:[%s3108_s25 + $0x264] ss:$16 sps:$4 sm:$0xff]   ;;  %v2750_v43 = vld [vmem:[%s3108_s25 + $0x2cc] ss:$16 sps:$4 sm:$0xff]  }
  0x34   : > { %v2754_v50 = vld [vmem:[%s3108_s25 + $0x2e8] ss:$16 sps:$4 sm:$0xff]   ;;  %v2757_v53 = vld [vmem:[%s3108_s25 + $0x300] ss:$16 sps:$4 sm:$0xff]   ;;  %v2765_v55 = vld [vmem:[%s3108_s25 + $0x324] ss:$16 sps:$4 sm:$0xff]  }
  0x35   : > { %v2771_v59 = vld [vmem:[%s3108_s25 + $0x344] ss:$16 sps:$4 sm:$0xff]   ;;  %v2769_v61 = vld [vmem:[%s3108_s25 + $0x340] ss:$16 sps:$4 sm:$0xff]   ;;  %v2790_v10 = vld [vmem:[%s3108_s25 + $0x3a8] ss:$16 sps:$4 sm:$0xff]  }
  0x36   : > { %1828 = vmatpush1.bf16.msra.mxu0 %v2659_v31  ;;  %1992 = vmatpush1.bf16.msra.mxu1 %v2660_v32  ;;  %v2732_v31 = vld [vmem:[%s3108_s25 + $0x26c] ss:$16 sps:$4 sm:$0xff]   ;;  %v2727_v32 = vld [vmem:[%s3108_s25 + $0x260] ss:$16 sps:$4 sm:$0xff]   ;;  %v2796_v14 = vld [vmem:[%s3108_s25 + $0x3c8] ss:$16 sps:$4 sm:$0xff]  }
  0x37   : > { %1829 = vmatprep.subr.bf16.mxu0 %v2661_v33  ;;  %1993 = vmatprep.subr.bf16.mxu1 %v2663_v34  ;;  %v2730_v33 = vld [vmem:[%s3108_s25 + $0x268] ss:$16 sps:$4 sm:$0xff]   ;;  %v2735_v34 = vld [vmem:[%s3108_s25 + $0x284] ss:$16 sps:$4 sm:$0xff]   ;;  %v2804_v17 = vld [vmem:[%s3108_s25 + $0x3ec] ss:$16 sps:$4 sm:$0xff]  }
  0x3a   : > { %1830 = vmatpush1.bf16.msra.mxu0 %v2665_v35  ;;  %1994 = vmatpush1.bf16.msra.mxu1 %v2666_v36  ;;  %v2738_v35 = vld [vmem:[%s3108_s25 + $0x28c] ss:$16 sps:$4 sm:$0xff]   ;;  %v2733_v36 = vld [vmem:[%s3108_s25 + $0x280] ss:$16 sps:$4 sm:$0xff]  }
  0x3b   : > { %1831 = vmatprep.subr.bf16.mxu0 %v2667_v40  ;;  %1995 = vmatprep.subr.bf16.mxu1 %v2669_v41  ;;  %v2739_v40 = vld [vmem:[%s3108_s25 + $0x2a0] ss:$16 sps:$4 sm:$0xff]   ;;  %v2742_v41 = vld [vmem:[%s3108_s25 + $0x2a8] ss:$16 sps:$4 sm:$0xff]  }
  0x3e   : > { %1832 = vmatpush1.bf16.msra.mxu0 %v2671_v42  ;;  %1996 = vmatpush1.bf16.msra.mxu1 %v2672_v45  ;;  %v2747_v42 = vld [vmem:[%s3108_s25 + $0x2c4] ss:$16 sps:$4 sm:$0xff]   ;;  %v2745_v45 = vld [vmem:[%s3108_s25 + $0x2c0] ss:$16 sps:$4 sm:$0xff]  }
  0x3f   : > { %1833 = vmatprep.subr.bf16.mxu0 %v2673_v46  ;;  %1997 = vmatprep.subr.bf16.mxu1 %v2675_v47  ;;  %v2748_v46 = vld [vmem:[%s3108_s25 + $0x2c8] ss:$16 sps:$4 sm:$0xff]   ;;  %v2753_v47 = vld [vmem:[%s3108_s25 + $0x2e4] ss:$16 sps:$4 sm:$0xff]  }
  0x42   : > { %1834 = vmatpush1.bf16.msra.mxu0 %v2677_v48  ;;  %1998 = vmatpush1.bf16.msra.mxu1 %v2678_v49  ;;  %v2756_v48 = vld [vmem:[%s3108_s25 + $0x2ec] ss:$16 sps:$4 sm:$0xff]   ;;  %v2751_v49 = vld [vmem:[%s3108_s25 + $0x2e0] ss:$16 sps:$4 sm:$0xff]  }
  0x43   : > { %1835 = vmatprep.subr.bf16.mxu0 %v2679_v51  ;;  %1999 = vmatprep.subr.bf16.mxu1 %v2681_v52  ;;  %v2759_v51 = vld [vmem:[%s3108_s25 + $0x304] ss:$16 sps:$4 sm:$0xff]   ;;  %v2762_v52 = vld [vmem:[%s3108_s25 + $0x30c] ss:$16 sps:$4 sm:$0xff]  }
  0x46   : > { %1836 = vmatpush1.bf16.msra.mxu0 %v2683_v54  ;;  %2000 = vmatpush1.bf16.msra.mxu1 %v2684_v56  ;;  %v2760_v54 = vld [vmem:[%s3108_s25 + $0x308] ss:$16 sps:$4 sm:$0xff]   ;;  %v2768_v56 = vld [vmem:[%s3108_s25 + $0x32c] ss:$16 sps:$4 sm:$0xff]  }
  0x47   : > { %1837 = vmatprep.subr.bf16.mxu0 %v2685_v57  ;;  %2001 = vmatprep.subr.bf16.mxu1 %v2687_v58  ;;  %v2763_v57 = vld [vmem:[%s3108_s25 + $0x320] ss:$16 sps:$4 sm:$0xff]   ;;  %v2766_v58 = vld [vmem:[%s3108_s25 + $0x328] ss:$16 sps:$4 sm:$0xff]  }
  0x4a   : > { %1838 = vmatpush1.bf16.msra.mxu0 %v2689_v60  ;;  %2002 = vmatpush1.bf16.msra.mxu1 %v2690_v62  ;;  %v2774_v60 = vld [vmem:[%s3108_s25 + $0x34c] ss:$16 sps:$4 sm:$0xff]   ;;  %v2772_v62 = vld [vmem:[%s3108_s25 + $0x348] ss:$16 sps:$4 sm:$0xff]  }
  0x4b   : > { %1839 = vmatprep.subr.bf16.mxu0 %v2691_v63  ;;  %2003 = vmatprep.subr.bf16.mxu1 %v2693_v0  ;;  %v2777_v63 = vld [vmem:[%s3108_s25 + $0x364] ss:$16 sps:$4 sm:$0xff]   ;;  %v2780_v0 = vld [vmem:[%s3108_s25 + $0x36c] ss:$16 sps:$4 sm:$0xff]  }
  0x4e   : > { %1840 = vmatpush1.bf16.msra.mxu0 %v2695_v1  ;;  %2004 = vmatpush1.bf16.msra.mxu1 %v2696_v2  ;;  %v2775_v1 = vld [vmem:[%s3108_s25 + $0x360] ss:$16 sps:$4 sm:$0xff]   ;;  %v2778_v2 = vld [vmem:[%s3108_s25 + $0x368] ss:$16 sps:$4 sm:$0xff]  }
  0x4f   : > { %1841 = vmatprep.subr.bf16.mxu0 %v2697_v3  ;;  %2005 = vmatprep.subr.bf16.mxu1 %v2699_v4  ;;  %v2783_v3 = vld [vmem:[%s3108_s25 + $0x384] ss:$16 sps:$4 sm:$0xff]   ;;  %v2786_v4 = vld [vmem:[%s3108_s25 + $0x38c] ss:$16 sps:$4 sm:$0xff]  }
  0x52   : > { %1842 = vmatpush1.bf16.msra.mxu0 %v2701_v5  ;;  %2006 = vmatpush1.bf16.msra.mxu1 %v2702_v6  ;;  %v2781_v5 = vld [vmem:[%s3108_s25 + $0x380] ss:$16 sps:$4 sm:$0xff]   ;;  %v2784_v6 = vld [vmem:[%s3108_s25 + $0x388] ss:$16 sps:$4 sm:$0xff]  }
  0x53   : > { %1843 = vmatprep.subr.bf16.mxu0 %v2703_v7  ;;  %2007 = vmatprep.subr.bf16.mxu1 %v2705_v8  ;;  %v2789_v7 = vld [vmem:[%s3108_s25 + $0x3a4] ss:$16 sps:$4 sm:$0xff]   ;;  %v2792_v8 = vld [vmem:[%s3108_s25 + $0x3ac] ss:$16 sps:$4 sm:$0xff]  }
  0x56   : > { %1844 = vmatpush1.bf16.msra.mxu0 %v2707_v9  ;;  %2008 = vmatpush1.bf16.msra.mxu1 %v2708_v11  ;;  %v2787_v9 = vld [vmem:[%s3108_s25 + $0x3a0] ss:$16 sps:$4 sm:$0xff]   ;;  %v2795_v11 = vld [vmem:[%s3108_s25 + $0x3c4] ss:$16 sps:$4 sm:$0xff]  }
  0x57   : > { %1854 = vmatprep.subr.bf16.mxu0 %v2711_v12  ;;  %2018 = vmatprep.subr.bf16.mxu1 %v2714_v13  ;;  %v2798_v12 = vld [vmem:[%s3108_s25 + $0x3cc] ss:$16 sps:$4 sm:$0xff]   ;;  %v2793_v13 = vld [vmem:[%s3108_s25 + $0x3c0] ss:$16 sps:$4 sm:$0xff]  }
  0x59   : > { %1846 = vmatmul.mubr.bf16.vlgmr.msra.gmra.mrb[0].mxu0 %v3192_v16  ;;  %2010 = vmatmul.mubr.bf16.vlgmr.msra.gmra.mrb[0].mxu1 %v3192_v16 }
  0x5a   : > { %1855 = vmatpush1.bf16.msra.mxu0 %v2709_v15  ;;  %2019 = vmatpush1.bf16.msra.mxu1 %v2712_v18  ;;  %v2801_v15 = vld [vmem:[%s3108_s25 + $0x3e4] ss:$16 sps:$4 sm:$0xff]   ;;  %v2799_v18 = vld [vmem:[%s3108_s25 + $0x3e0] ss:$16 sps:$4 sm:$0xff]  }
  0x5b   : > { %1856 = vmatprep.subr.bf16.mxu0 %v2717_v19  ;;  %2020 = vmatprep.subr.bf16.mxu1 %v2720_v20  ;;  %v2802_v19 = vld [vmem:[%s3108_s25 + $0x3e8] ss:$16 sps:$4 sm:$0xff]   ;;  %v2807_v20 = vld [vmem:[%s3108_s25 + $0x404] ss:$16 sps:$4 sm:$0xff]  }
  0x5c   : > { %1886 = vmatprep.mubr.bf16.mxu0 %v523_v23  ;;  %2050 = vmatprep.mubr.bf16.mxu1 %v523_v23  ;;  %v2810_v23 = vld [vmem:[%s3108_s25 + $0x40c] ss:$16 sps:$4 sm:$0xff]  }
  0x5e   : > { %1857 = vmatpush1.bf16.msra.mxu0 %v2715_v24  ;;  %2021 = vmatpush1.bf16.msra.mxu1 %v2718_v25  ;;  %v2805_v24 = vld [vmem:[%s3108_s25 + $0x400] ss:$16 sps:$4 sm:$0xff]   ;;  %v521_v25 = vcombine.high %v3192_v16, %v3192_v16  ;;  %v2814_v16 = vld [vmem:[%s3108_s25 + $0x428] ss:$16 sps:$4 sm:$0xff]  }
  0x5f   : > { %1858 = vmatprep.subr.bf16.mxu0 %v2723_v26  ;;  %2022 = vmatprep.subr.bf16.mxu1 %v2726_v27  ;;  %v2808_v26 = vld [vmem:[%s3108_s25 + $0x408] ss:$16 sps:$4 sm:$0xff]   ;;  %v2813_v27 = vld [vmem:[%s3108_s25 + $0x424] ss:$16 sps:$4 sm:$0xff]  }
  0x62   : > { %1859 = vmatpush1.bf16.msra.mxu0 %v2721_v28  ;;  %2023 = vmatpush1.bf16.msra.mxu1 %v2724_v29  ;;  %v2816_v28 = vld [vmem:[%s3108_s25 + $0x42c] ss:$16 sps:$4 sm:$0xff]   ;;  %v2811_v29 = vld [vmem:[%s3108_s25 + $0x420] ss:$16 sps:$4 sm:$0xff]  }
  0x63   : > { %1860 = vmatprep.subr.bf16.mxu0 %v2729_v30  ;;  %2024 = vmatprep.subr.bf16.mxu1 %v2732_v31  ;;  %v2819_v30 = vld [vmem:[%s3108_s25 + $0x444] ss:$16 sps:$4 sm:$0xff]   ;;  %v2822_v31 = vld [vmem:[%s3108_s25 + $0x44c] ss:$16 sps:$4 sm:$0xff]  }
  0x66   : > { %1861 = vmatpush1.bf16.msra.mxu0 %v2727_v32  ;;  %2025 = vmatpush1.bf16.msra.mxu1 %v2730_v33  ;;  %v2817_v32 = vld [vmem:[%s3108_s25 + $0x440] ss:$16 sps:$4 sm:$0xff]   ;;  %v2820_v33 = vld [vmem:[%s3108_s25 + $0x448] ss:$16 sps:$4 sm:$0xff]  }
  0x67   : > { %1862 = vmatprep.subr.bf16.mxu0 %v2735_v34  ;;  %2026 = vmatprep.subr.bf16.mxu1 %v2738_v35  ;;  %v2825_v34 = vld [vmem:[%s3108_s25 + $0x464] ss:$16 sps:$4 sm:$0xff]   ;;  %v2828_v35 = vld [vmem:[%s3108_s25 + $0x46c] ss:$16 sps:$4 sm:$0xff]  }
  0x6a   : > { %1863 = vmatpush1.bf16.msra.mxu0 %v2733_v36  ;;  %2027 = vmatpush1.bf16.msra.mxu1 %v2736_v37  ;;  %v2823_v36 = vld [vmem:[%s3108_s25 + $0x460] ss:$16 sps:$4 sm:$0xff]   ;;  %v2826_v37 = vld [vmem:[%s3108_s25 + $0x468] ss:$16 sps:$4 sm:$0xff]  }
  0x6b   : > { %1864 = vmatprep.subr.bf16.mxu0 %v2741_v38  ;;  %2028 = vmatprep.subr.bf16.mxu1 %v2744_v39  ;;  %v2831_v38 = vld [vmem:[%s3108_s25 + $0x484] ss:$16 sps:$4 sm:$0xff]   ;;  %v2834_v39 = vld [vmem:[%s3108_s25 + $0x48c] ss:$16 sps:$4 sm:$0xff]  }
  0x6e   : > { %1865 = vmatpush1.bf16.msra.mxu0 %v2739_v40  ;;  %2029 = vmatpush1.bf16.msra.mxu1 %v2742_v41  ;;  %v2829_v40 = vld [vmem:[%s3108_s25 + $0x480] ss:$16 sps:$4 sm:$0xff]   ;;  %v2832_v41 = vld [vmem:[%s3108_s25 + $0x488] ss:$16 sps:$4 sm:$0xff]  }
  0x6f   : > { %1866 = vmatprep.subr.bf16.mxu0 %v2747_v42  ;;  %2030 = vmatprep.subr.bf16.mxu1 %v2750_v43  ;;  %v2837_v42 = vld [vmem:[%s3108_s25 + $0x4a4] ss:$16 sps:$4 sm:$0xff]   ;;  %v2840_v43 = vld [vmem:[%s3108_s25 + $0x4ac] ss:$16 sps:$4 sm:$0xff]  }
  0x72   : > { %1867 = vmatpush1.bf16.msra.mxu0 %v2745_v45  ;;  %2031 = vmatpush1.bf16.msra.mxu1 %v2748_v46  ;;  %v2835_v45 = vld [vmem:[%s3108_s25 + $0x4a0] ss:$16 sps:$4 sm:$0xff]   ;;  %v2838_v46 = vld [vmem:[%s3108_s25 + $0x4a8] ss:$16 sps:$4 sm:$0xff]  }
  0x73   : > { %1868 = vmatprep.subr.bf16.mxu0 %v2753_v47  ;;  %2032 = vmatprep.subr.bf16.mxu1 %v2756_v48  ;;  %v2843_v47 = vld [vmem:[%s3108_s25 + $0x4c4] ss:$16 sps:$4 sm:$0xff]   ;;  %v2846_v48 = vld [vmem:[%s3108_s25 + $0x4cc] ss:$16 sps:$4 sm:$0xff]  }
  0x76   : > { %1869 = vmatpush1.bf16.msra.mxu0 %v2751_v49  ;;  %2033 = vmatpush1.bf16.msra.mxu1 %v2754_v50  ;;  %v2841_v49 = vld [vmem:[%s3108_s25 + $0x4c0] ss:$16 sps:$4 sm:$0xff]   ;;  %v2844_v50 = vld [vmem:[%s3108_s25 + $0x4c8] ss:$16 sps:$4 sm:$0xff]  }
  0x77   : > { %1870 = vmatprep.subr.bf16.mxu0 %v2759_v51  ;;  %2034 = vmatprep.subr.bf16.mxu1 %v2762_v52  ;;  %v2849_v51 = vld [vmem:[%s3108_s25 + $0x4e4] ss:$16 sps:$4 sm:$0xff]   ;;  %v2852_v52 = vld [vmem:[%s3108_s25 + $0x4ec] ss:$16 sps:$4 sm:$0xff]  }
  0x7a   : > { %1871 = vmatpush1.bf16.msra.mxu0 %v2757_v53  ;;  %2035 = vmatpush1.bf16.msra.mxu1 %v2760_v54  ;;  %v2847_v53 = vld [vmem:[%s3108_s25 + $0x4e0] ss:$16 sps:$4 sm:$0xff]   ;;  %v2850_v54 = vld [vmem:[%s3108_s25 + $0x4e8] ss:$16 sps:$4 sm:$0xff]  }
  0x7b   : > { %1872 = vmatprep.subr.bf16.mxu0 %v2765_v55  ;;  %2036 = vmatprep.subr.bf16.mxu1 %v2768_v56  ;;  %v2855_v55 = vld [vmem:[%s3108_s25 + $0x504] ss:$16 sps:$4 sm:$0xff]   ;;  %v2858_v56 = vld [vmem:[%s3108_s25 + $0x50c] ss:$16 sps:$4 sm:$0xff]  }
  0x7e   : > { %1873 = vmatpush1.bf16.msra.mxu0 %v2763_v57  ;;  %2037 = vmatpush1.bf16.msra.mxu1 %v2766_v58  ;;  %v2853_v57 = vld [vmem:[%s3108_s25 + $0x500] ss:$16 sps:$4 sm:$0xff]   ;;  %v2856_v58 = vld [vmem:[%s3108_s25 + $0x508] ss:$16 sps:$4 sm:$0xff]  }
  0x7f   : > { %1874 = vmatprep.subr.bf16.mxu0 %v2771_v59  ;;  %2038 = vmatprep.subr.bf16.mxu1 %v2774_v60  ;;  %v2861_v59 = vld [vmem:[%s3108_s25 + $0x524] ss:$16 sps:$4 sm:$0xff]   ;;  %v2864_v60 = vld [vmem:[%s3108_s25 + $0x52c] ss:$16 sps:$4 sm:$0xff]  }
  0x82   : > { %1875 = vmatpush1.bf16.msra.mxu0 %v2769_v61  ;;  %2039 = vmatpush1.bf16.msra.mxu1 %v2772_v62  ;;  %v2859_v61 = vld [vmem:[%s3108_s25 + $0x520] ss:$16 sps:$4 sm:$0xff]   ;;  %v2862_v62 = vld [vmem:[%s3108_s25 + $0x528] ss:$16 sps:$4 sm:$0xff]  }
  0x83   : > { %1876 = vmatprep.subr.bf16.mxu0 %v2777_v63  ;;  %2040 = vmatprep.subr.bf16.mxu1 %v2780_v0  ;;  %v2867_v63 = vld [vmem:[%s3108_s25 + $0x544] ss:$16 sps:$4 sm:$0xff]   ;;  %v2870_v0 = vld [vmem:[%s3108_s25 + $0x54c] ss:$16 sps:$4 sm:$0xff]  }
  0x86   : > { %1877 = vmatpush1.bf16.msra.mxu0 %v2775_v1  ;;  %2041 = vmatpush1.bf16.msra.mxu1 %v2778_v2  ;;  %v2865_v1 = vld [vmem:[%s3108_s25 + $0x540] ss:$16 sps:$4 sm:$0xff]   ;;  %v2868_v2 = vld [vmem:[%s3108_s25 + $0x548] ss:$16 sps:$4 sm:$0xff]  }
  0x87   : > { %1878 = vmatprep.subr.bf16.mxu0 %v2783_v3  ;;  %2042 = vmatprep.subr.bf16.mxu1 %v2786_v4  ;;  %v2873_v3 = vld [vmem:[%s3108_s25 + $0x564] ss:$16 sps:$4 sm:$0xff]   ;;  %v2876_v4 = vld [vmem:[%s3108_s25 + $0x56c] ss:$16 sps:$4 sm:$0xff]  }
  0x8a   : > { %1879 = vmatpush1.bf16.msra.mxu0 %v2781_v5  ;;  %2043 = vmatpush1.bf16.msra.mxu1 %v2784_v6  ;;  %v2871_v5 = vld [vmem:[%s3108_s25 + $0x560] ss:$16 sps:$4 sm:$0xff]   ;;  %v2874_v6 = vld [vmem:[%s3108_s25 + $0x568] ss:$16 sps:$4 sm:$0xff]  }
  0x8b   : > { %1880 = vmatprep.subr.bf16.mxu0 %v2789_v7  ;;  %2044 = vmatprep.subr.bf16.mxu1 %v2792_v8  ;;  %v2879_v7 = vld [vmem:[%s3108_s25 + $0x584] ss:$16 sps:$4 sm:$0xff]   ;;  %v2882_v8 = vld [vmem:[%s3108_s25 + $0x58c] ss:$16 sps:$4 sm:$0xff]  }
  0x8e   : > { %1881 = vmatpush1.bf16.msra.mxu0 %v2787_v9  ;;  %2045 = vmatpush1.bf16.msra.mxu1 %v2790_v10  ;;  %v2877_v9 = vld [vmem:[%s3108_s25 + $0x580] ss:$16 sps:$4 sm:$0xff]   ;;  %v2880_v10 = vld [vmem:[%s3108_s25 + $0x588] ss:$16 sps:$4 sm:$0xff]  }
  0x8f   : > { %1882 = vmatprep.subr.bf16.mxu0 %v2795_v11  ;;  %2046 = vmatprep.subr.bf16.mxu1 %v2798_v12  ;;  %v2885_v11 = vld [vmem:[%s3108_s25 + $0x5a4] ss:$16 sps:$4 sm:$0xff]   ;;  %v2888_v12 = vld [vmem:[%s3108_s25 + $0x5ac] ss:$16 sps:$4 sm:$0xff]  }
  0x92   : > { %1883 = vmatpush1.bf16.msra.mxu0 %v2793_v13  ;;  %2047 = vmatpush1.bf16.msra.mxu1 %v2796_v14  ;;  %v2883_v13 = vld [vmem:[%s3108_s25 + $0x5a0] ss:$16 sps:$4 sm:$0xff]   ;;  %v2886_v14 = vld [vmem:[%s3108_s25 + $0x5a8] ss:$16 sps:$4 sm:$0xff]  }
  0x93   : > { %1884 = vmatprep.subr.bf16.mxu0 %v2801_v15  ;;  %2048 = vmatprep.subr.bf16.mxu1 %v2804_v17  ;;  %v2891_v15 = vld [vmem:[%s3108_s25 + $0x5c4] ss:$16 sps:$4 sm:$0xff]   ;;  %v2894_v17 = vld [vmem:[%s3108_s25 + $0x5cc] ss:$16 sps:$4 sm:$0xff]  }
  0x96   : > { %1885 = vmatpush1.bf16.msra.mxu0 %v2799_v18  ;;  %2049 = vmatpush1.bf16.msra.mxu1 %v2802_v19  ;;  %v2889_v18 = vld [vmem:[%s3108_s25 + $0x5c0] ss:$16 sps:$4 sm:$0xff]   ;;  %v2892_v19 = vld [vmem:[%s3108_s25 + $0x5c8] ss:$16 sps:$4 sm:$0xff]  }
  0x97   : > { %1895 = vmatprep.subr.bf16.mxu0 %v2807_v20  ;;  %2059 = vmatprep.subr.bf16.mxu1 %v2810_v23  ;;  %v2897_v20 = vld [vmem:[%s3108_s25 + $0x5e4] ss:$16 sps:$4 sm:$0xff]   ;;  %v2900_v23 = vld [vmem:[%s3108_s25 + $0x5ec] ss:$16 sps:$4 sm:$0xff]  }
  0x99   : > { %1887 = vmatmul.mubr.bf16.vlgmr.msra.gmra.mrb[0].mxu0 %v521_v25  ;;  %2051 = vmatmul.mubr.bf16.vlgmr.msra.gmra.mrb[0].mxu1 %v521_v25  ;;  %v2898_v25 = vld [vmem:[%s3108_s25 + $0x5e8] ss:$16 sps:$4 sm:$0xff]  }
  0x9a   : > { %1896 = vmatpush1.bf16.msra.mxu0 %v2805_v24  ;;  %2060 = vmatpush1.bf16.msra.mxu1 %v2808_v26  ;;  %v2895_v24 = vld [vmem:[%s3108_s25 + $0x5e0] ss:$16 sps:$4 sm:$0xff]   ;;  %v2904_v26 = vld [vmem:[%s3108_s25 + $0x604] ss:$16 sps:$4 sm:$0xff]  }
  0x9b   : > { %1897 = vmatprep.subr.bf16.mxu0 %v2813_v27  ;;  %2061 = vmatprep.subr.bf16.mxu1 %v2816_v28  ;;  %v2907_v27 = vld [vmem:[%s3108_s25 + $0x60c] ss:$16 sps:$4 sm:$0xff]   ;;  %v2902_v28 = vld [vmem:[%s3108_s25 + $0x600] ss:$16 sps:$4 sm:$0xff]  }
  0x9c   : > { %1927 = vmatprep.mubr.bf16.mxu0 %v3198_v21  ;;  %2091 = vmatprep.mubr.bf16.mxu1 %v3198_v21 }
  0x9e   : > { %1898 = vmatpush1.bf16.msra.mxu0 %v2811_v29  ;;  %2062 = vmatpush1.bf16.msra.mxu1 %v2814_v16  ;;  %v2905_v29 = vld [vmem:[%s3108_s25 + $0x608] ss:$16 sps:$4 sm:$0xff]   ;;  %v2910_v16 = vld [vmem:[%s3108_s25 + $0x624] ss:$16 sps:$4 sm:$0xff]  }
  0x9f   : > { %1899 = vmatprep.subr.bf16.mxu0 %v2819_v30  ;;  %2063 = vmatprep.subr.bf16.mxu1 %v2822_v31  ;;  %v2913_v30 = vld [vmem:[%s3108_s25 + $0x62c] ss:$16 sps:$4 sm:$0xff]   ;;  %v524_v31 = vcombine.high %v3198_v21, %v3198_v21  ;;  %v2914_v21 = vld [vmem:[%s3108_s25 + $0x640] ss:$16 sps:$4 sm:$0xff]  }
  0xa2   : > { %1900 = vmatpush1.bf16.msra.mxu0 %v2817_v32  ;;  %2064 = vmatpush1.bf16.msra.mxu1 %v2820_v33  ;;  %v2908_v32 = vld [vmem:[%s3108_s25 + $0x620] ss:$16 sps:$4 sm:$0xff]   ;;  %v2911_v33 = vld [vmem:[%s3108_s25 + $0x628] ss:$16 sps:$4 sm:$0xff]  }
  0xa3   : > { %1901 = vmatprep.subr.bf16.mxu0 %v2825_v34  ;;  %2065 = vmatprep.subr.bf16.mxu1 %v2828_v35  ;;  %v2916_v34 = vld [vmem:[%s3108_s25 + $0x644] ss:$16 sps:$4 sm:$0xff]   ;;  %v2919_v35 = vld [vmem:[%s3108_s25 + $0x64c] ss:$16 sps:$4 sm:$0xff]  }
  0xa6   : > { %1902 = vmatpush1.bf16.msra.mxu0 %v2823_v36  ;;  %2066 = vmatpush1.bf16.msra.mxu1 %v2826_v37  ;;  %v2917_v36 = vld [vmem:[%s3108_s25 + $0x648] ss:$16 sps:$4 sm:$0xff]   ;;  %v2922_v37 = vld [vmem:[%s3108_s25 + $0x664] ss:$16 sps:$4 sm:$0xff]  }
  0xa7   : > { %1903 = vmatprep.subr.bf16.mxu0 %v2831_v38  ;;  %2067 = vmatprep.subr.bf16.mxu1 %v2834_v39  ;;  %v2925_v38 = vld [vmem:[%s3108_s25 + $0x66c] ss:$16 sps:$4 sm:$0xff]   ;;  %v2920_v39 = vld [vmem:[%s3108_s25 + $0x660] ss:$16 sps:$4 sm:$0xff]  }
  0xaa   : > { %1904 = vmatpush1.bf16.msra.mxu0 %v2829_v40  ;;  %2068 = vmatpush1.bf16.msra.mxu1 %v2832_v41  ;;  %v2923_v40 = vld [vmem:[%s3108_s25 + $0x668] ss:$16 sps:$4 sm:$0xff]   ;;  %v2928_v41 = vld [vmem:[%s3108_s25 + $0x684] ss:$16 sps:$4 sm:$0xff]  }
  0xab   : > { %1905 = vmatprep.subr.bf16.mxu0 %v2837_v42  ;;  %2069 = vmatprep.subr.bf16.mxu1 %v2840_v43  ;;  %v2931_v42 = vld [vmem:[%s3108_s25 + $0x68c] ss:$16 sps:$4 sm:$0xff]   ;;  %v2926_v43 = vld [vmem:[%s3108_s25 + $0x680] ss:$16 sps:$4 sm:$0xff]  }
  0xae   : > { %1906 = vmatpush1.bf16.msra.mxu0 %v2835_v45  ;;  %2070 = vmatpush1.bf16.msra.mxu1 %v2838_v46  ;;  %v2929_v45 = vld [vmem:[%s3108_s25 + $0x688] ss:$16 sps:$4 sm:$0xff]   ;;  %v2934_v46 = vld [vmem:[%s3108_s25 + $0x6a4] ss:$16 sps:$4 sm:$0xff]  }
  0xaf   : > { %1907 = vmatprep.subr.bf16.mxu0 %v2843_v47  ;;  %2071 = vmatprep.subr.bf16.mxu1 %v2846_v48  ;;  %v2937_v47 = vld [vmem:[%s3108_s25 + $0x6ac] ss:$16 sps:$4 sm:$0xff]   ;;  %v2932_v48 = vld [vmem:[%s3108_s25 + $0x6a0] ss:$16 sps:$4 sm:$0xff]  }
  0xb2   : > { %1908 = vmatpush1.bf16.msra.mxu0 %v2841_v49  ;;  %2072 = vmatpush1.bf16.msra.mxu1 %v2844_v50  ;;  %v2935_v49 = vld [vmem:[%s3108_s25 + $0x6a8] ss:$16 sps:$4 sm:$0xff]   ;;  %v2940_v50 = vld [vmem:[%s3108_s25 + $0x6c4] ss:$16 sps:$4 sm:$0xff]  }
  0xb3   : > { %1909 = vmatprep.subr.bf16.mxu0 %v2849_v51  ;;  %2073 = vmatprep.subr.bf16.mxu1 %v2852_v52  ;;  %v2943_v51 = vld [vmem:[%s3108_s25 + $0x6cc] ss:$16 sps:$4 sm:$0xff]   ;;  %v2938_v52 = vld [vmem:[%s3108_s25 + $0x6c0] ss:$16 sps:$4 sm:$0xff]  }
  0xb6   : > { %1910 = vmatpush1.bf16.msra.mxu0 %v2847_v53  ;;  %2074 = vmatpush1.bf16.msra.mxu1 %v2850_v54  ;;  %v2941_v53 = vld [vmem:[%s3108_s25 + $0x6c8] ss:$16 sps:$4 sm:$0xff]   ;;  %v2946_v54 = vld [vmem:[%s3108_s25 + $0x6e4] ss:$16 sps:$4 sm:$0xff]  }
  0xb7   : > { %1911 = vmatprep.subr.bf16.mxu0 %v2855_v55  ;;  %2075 = vmatprep.subr.bf16.mxu1 %v2858_v56  ;;  %v2949_v55 = vld [vmem:[%s3108_s25 + $0x6ec] ss:$16 sps:$4 sm:$0xff]   ;;  %v2944_v56 = vld [vmem:[%s3108_s25 + $0x6e0] ss:$16 sps:$4 sm:$0xff]  }
  0xba   : > { %1912 = vmatpush1.bf16.msra.mxu0 %v2853_v57  ;;  %2076 = vmatpush1.bf16.msra.mxu1 %v2856_v58  ;;  %v2947_v57 = vld [vmem:[%s3108_s25 + $0x6e8] ss:$16 sps:$4 sm:$0xff]   ;;  %v2952_v58 = vld [vmem:[%s3108_s25 + $0x704] ss:$16 sps:$4 sm:$0xff]  }
  0xbb   : > { %1913 = vmatprep.subr.bf16.mxu0 %v2861_v59  ;;  %2077 = vmatprep.subr.bf16.mxu1 %v2864_v60  ;;  %v2955_v59 = vld [vmem:[%s3108_s25 + $0x70c] ss:$16 sps:$4 sm:$0xff]   ;;  %v2950_v60 = vld [vmem:[%s3108_s25 + $0x700] ss:$16 sps:$4 sm:$0xff]  }
  0xbe   : > { %1914 = vmatpush1.bf16.msra.mxu0 %v2859_v61  ;;  %2078 = vmatpush1.bf16.msra.mxu1 %v2862_v62  ;;  %v2953_v61 = vld [vmem:[%s3108_s25 + $0x708] ss:$16 sps:$4 sm:$0xff]   ;;  %v2958_v62 = vld [vmem:[%s3108_s25 + $0x724] ss:$16 sps:$4 sm:$0xff]  }
  0xbf   : > { %1915 = vmatprep.subr.bf16.mxu0 %v2867_v63  ;;  %2079 = vmatprep.subr.bf16.mxu1 %v2870_v0  ;;  %v2961_v63 = vld [vmem:[%s3108_s25 + $0x72c] ss:$16 sps:$4 sm:$0xff]   ;;  %v2956_v0 = vld [vmem:[%s3108_s25 + $0x720] ss:$16 sps:$4 sm:$0xff]  }
  0xc2   : > { %1916 = vmatpush1.bf16.msra.mxu0 %v2865_v1  ;;  %2080 = vmatpush1.bf16.msra.mxu1 %v2868_v2  ;;  %v2959_v1 = vld [vmem:[%s3108_s25 + $0x728] ss:$16 sps:$4 sm:$0xff]   ;;  %v2964_v2 = vld [vmem:[%s3108_s25 + $0x744] ss:$16 sps:$4 sm:$0xff]  }
  0xc3   : > { %1917 = vmatprep.subr.bf16.mxu0 %v2873_v3  ;;  %2081 = vmatprep.subr.bf16.mxu1 %v2876_v4  ;;  %v2967_v3 = vld [vmem:[%s3108_s25 + $0x74c] ss:$16 sps:$4 sm:$0xff]   ;;  %v2962_v4 = vld [vmem:[%s3108_s25 + $0x740] ss:$16 sps:$4 sm:$0xff]  }
  0xc6   : > { %1918 = vmatpush1.bf16.msra.mxu0 %v2871_v5  ;;  %2082 = vmatpush1.bf16.msra.mxu1 %v2874_v6  ;;  %v2965_v5 = vld [vmem:[%s3108_s25 + $0x748] ss:$16 sps:$4 sm:$0xff]   ;;  %v2970_v6 = vld [vmem:[%s3108_s25 + $0x764] ss:$16 sps:$4 sm:$0xff]  }
  0xc7   : > { %1919 = vmatprep.subr.bf16.mxu0 %v2879_v7  ;;  %2083 = vmatprep.subr.bf16.mxu1 %v2882_v8  ;;  %v2973_v7 = vld [vmem:[%s3108_s25 + $0x76c] ss:$16 sps:$4 sm:$0xff]   ;;  %v2968_v8 = vld [vmem:[%s3108_s25 + $0x760] ss:$16 sps:$4 sm:$0xff]  }
  0xca   : > { %1920 = vmatpush1.bf16.msra.mxu0 %v2877_v9  ;;  %2084 = vmatpush1.bf16.msra.mxu1 %v2880_v10  ;;  %v2971_v9 = vld [vmem:[%s3108_s25 + $0x768] ss:$16 sps:$4 sm:$0xff]   ;;  %v2976_v10 = vld [vmem:[%s3108_s25 + $0x784] ss:$16 sps:$4 sm:$0xff]  }
  0xcb   : > { %1921 = vmatprep.subr.bf16.mxu0 %v2885_v11  ;;  %2085 = vmatprep.subr.bf16.mxu1 %v2888_v12  ;;  %v2979_v11 = vld [vmem:[%s3108_s25 + $0x78c] ss:$16 sps:$4 sm:$0xff]   ;;  %v2974_v12 = vld [vmem:[%s3108_s25 + $0x780] ss:$16 sps:$4 sm:$0xff]  }
  0xce   : > { %1922 = vmatpush1.bf16.msra.mxu0 %v2883_v13  ;;  %2086 = vmatpush1.bf16.msra.mxu1 %v2886_v14  ;;  %v2977_v13 = vld [vmem:[%s3108_s25 + $0x788] ss:$16 sps:$4 sm:$0xff]   ;;  %v2982_v14 = vld [vmem:[%s3108_s25 + $0x7a4] ss:$16 sps:$4 sm:$0xff]  }
  0xcf   : > { %1923 = vmatprep.subr.bf16.mxu0 %v2891_v15  ;;  %2087 = vmatprep.subr.bf16.mxu1 %v2894_v17  ;;  %v2985_v15 = vld [vmem:[%s3108_s25 + $0x7ac] ss:$16 sps:$4 sm:$0xff]   ;;  %v2980_v17 = vld [vmem:[%s3108_s25 + $0x7a0] ss:$16 sps:$4 sm:$0xff]  }
  0xd2   : > { %1924 = vmatpush1.bf16.msra.mxu0 %v2889_v18  ;;  %2088 = vmatpush1.bf16.msra.mxu1 %v2892_v19  ;;  %v2983_v18 = vld [vmem:[%s3108_s25 + $0x7a8] ss:$16 sps:$4 sm:$0xff]   ;;  %v2988_v19 = vld [vmem:[%s3108_s25 + $0x7c4] ss:$16 sps:$4 sm:$0xff]  }
  0xd3   : > { %1925 = vmatprep.subr.bf16.mxu0 %v2897_v20  ;;  %2089 = vmatprep.subr.bf16.mxu1 %v2900_v23  ;;  %v2991_v20 = vld [vmem:[%s3108_s25 + $0x7cc] ss:$16 sps:$4 sm:$0xff]   ;;  %v2986_v23 = vld [vmem:[%s3108_s25 + $0x7c0] ss:$16 sps:$4 sm:$0xff]  }
  0xd6   : > { %1926 = vmatpush1.bf16.msra.mxu0 %v2895_v24  ;;  %2090 = vmatpush1.bf16.msra.mxu1 %v2898_v25  ;;  %v2989_v24 = vld [vmem:[%s3108_s25 + $0x7c8] ss:$16 sps:$4 sm:$0xff]   ;;  %v2994_v25 = vld [vmem:[%s3108_s25 + $0x7e4] ss:$16 sps:$4 sm:$0xff]  }
  0xd7   : > { %1936 = vmatprep.subr.bf16.mxu0 %v2904_v26  ;;  %2100 = vmatprep.subr.bf16.mxu1 %v2907_v27  ;;  %v2997_v26 = vld [vmem:[%s3108_s25 + $0x7ec] ss:$16 sps:$4 sm:$0xff]   ;;  %v2992_v27 = vld [vmem:[%s3108_s25 + $0x7e0] ss:$16 sps:$4 sm:$0xff]  }
  0xd9   : > { %1928 = vmatmul.mubr.bf16.vlgmr.msra.gmra.mrb[0].mxu0 %v3201_v22  ;;  %2092 = vmatmul.mubr.bf16.vlgmr.msra.gmra.mrb[0].mxu1 %v3201_v22 }
  0xda   : > { %1937 = vmatpush1.bf16.msra.mxu0 %v2902_v28  ;;  %2101 = vmatpush1.bf16.msra.mxu1 %v2905_v29  ;;  %v2995_v28 = vld [vmem:[%s3108_s25 + $0x7e8] ss:$16 sps:$4 sm:$0xff]   ;;  %v522_v29 = vcombine.high %v3201_v22, %v3201_v22 }
  0xdb   : > { %1938 = vmatprep.subr.bf16.mxu0 %v2910_v16  ;;  %2102 = vmatprep.subr.bf16.mxu1 %v2913_v30  ;;  %v3054_v16 = vmov 1983009808  }
  0xdc   : > { %1968 = vmatprep.mubr.bf16.mxu0 %v524_v31  ;;  %2132 = vmatprep.mubr.bf16.mxu1 %v524_v31  ;;  %v2148_v30 = vunpack.c.l.s4 %v3054_v16 }
  0xde   : > { %1939 = vmatpush1.bf16.msra.mxu0 %v2908_v32  ;;  %2103 = vmatpush1.bf16.msra.mxu1 %v2911_v33  ;;  %v2149_v31 = vunpack.c.0.s8 %v2148_v30 }
  0xdf   : > { %1940 = vmatprep.subr.bf16.mxu0 %v2916_v34  ;;  %2104 = vmatprep.subr.bf16.mxu1 %v2919_v35 }
  0xe0   : > { %v2152_v34 = vsub.s32 %v2149_v31, %v3150_v44 }
  0xe2   : > { %1941 = vmatpush1.bf16.msra.mxu0 %v2914_v21  ;;  %2105 = vmatpush1.bf16.msra.mxu1 %v2917_v36 }
  0xe3   : > { %1942 = vmatprep.subr.bf16.mxu0 %v2922_v37  ;;  %2106 = vmatprep.subr.bf16.mxu1 %v2925_v38 }
  0xe6   : > { %1943 = vmatpush1.bf16.msra.mxu0 %v2920_v39  ;;  %2107 = vmatpush1.bf16.msra.mxu1 %v2923_v40 }
  0xe7   : > { %1944 = vmatprep.subr.bf16.mxu0 %v2928_v41  ;;  %2108 = vmatprep.subr.bf16.mxu1 %v2931_v42 }
  0xea   : > { %1945 = vmatpush1.bf16.msra.mxu0 %v2926_v43  ;;  %2109 = vmatpush1.bf16.msra.mxu1 %v2929_v45  ;;  %v217_v43 = vld [vmem:[#allocation2] sm:$0xff] }
  0xeb   : > { %1946 = vmatprep.subr.bf16.mxu0 %v2934_v46  ;;  %2110 = vmatprep.subr.bf16.mxu1 %v2937_v47  ;;  %v2170_v47 = vld [vmem:[%s3449_s2] sm:$0xf] (!%p2549_p7) }
  0xee   : > { %1947 = vmatpush1.bf16.msra.mxu0 %v2932_v48  ;;  %2111 = vmatpush1.bf16.msra.mxu1 %v2935_v49  ;;  %v2174_v48 = vsub.s32 (!%p2549_p7), 0, %v3150_v44  ;;  %v2178_v49 = vsub.s32 (!%p2549_p7), 1, %v3150_v44 }
  0xef   : > { %1948 = vmatprep.subr.bf16.mxu0 %v2940_v50  ;;  %2112 = vmatprep.subr.bf16.mxu1 %v2943_v51  ;;  %v2182_v50 = vsub.s32 (!%p2549_p7), 2, %v3150_v44  ;;  %v2186_v51 = vsub.s32 (!%p2549_p7), 3, %v3150_v44 }
  0xf2   : > { %1949 = vmatpush1.bf16.msra.mxu0 %v2938_v52  ;;  %2113 = vmatpush1.bf16.msra.mxu1 %v2941_v53  ;;  %v2175_v52 = vrot.slane (!%p2549_p7), %v2170_v47, %v2174_v48  ;;  %v2179_v53 = vrot.slane (!%p2549_p7), %v2170_v47, %v2178_v49 }
  0xf3   : > { %1950 = vmatprep.subr.bf16.mxu0 %v2946_v54  ;;  %2114 = vmatprep.subr.bf16.mxu1 %v2949_v55  ;;  %v2183_v54 = vrot.slane (!%p2549_p7), %v2170_v47, %v2182_v50  ;;  %v2187_v55 = vrot.slane (!%p2549_p7), %v2170_v47, %v2186_v51 }
  0xf6   : > { %1951 = vmatpush1.bf16.msra.mxu0 %v2944_v56  ;;  %2115 = vmatpush1.bf16.msra.mxu1 %v2947_v57  ;;  %v2188_v56 = vcombine.low (!%p2549_p7), %v2175_v52, %v2179_v53  ;;  %v2189_v57 = vcombine.low (!%p2549_p7), %v2183_v54, %v2187_v55 }
  0xf7   : > { %1952 = vmatprep.subr.bf16.mxu0 %v2952_v58  ;;  %2116 = vmatprep.subr.bf16.mxu1 %v2955_v59 }
  0xf8   : > { %v2196_v58 = vrot.slane (!%p2549_p7), %v2188_v56, %v2152_v34  ;;  %v2203_v59 = vrot.slane (!%p2549_p7), %v2189_v57, %v2152_v34 }
  0xfa   : > { %1953 = vmatpush1.bf16.msra.mxu0 %v2950_v60  ;;  %2117 = vmatpush1.bf16.msra.mxu1 %v2953_v61  ;;  %v2204_v61 = vcombine.low (!%p2549_p7), %v2196_v58, %v2203_v59 }
  0xfb   : > { %1954 = vmatprep.subr.bf16.mxu0 %v2958_v62  ;;  %2118 = vmatprep.subr.bf16.mxu1 %v2961_v63 }
  0xfe   : > { %1955 = vmatpush1.bf16.msra.mxu0 %v2956_v0  ;;  %2119 = vmatpush1.bf16.msra.mxu1 %v2959_v1 }
  0xff   : > { %1956 = vmatprep.subr.bf16.mxu0 %v2964_v2  ;;  %2120 = vmatprep.subr.bf16.mxu1 %v2967_v3 }
 0x102   : > { %1957 = vmatpush1.bf16.msra.mxu0 %v2962_v4  ;;  %2121 = vmatpush1.bf16.msra.mxu1 %v2965_v5 }
 0x103   : > { %1958 = vmatprep.subr.bf16.mxu0 %v2970_v6  ;;  %2122 = vmatprep.subr.bf16.mxu1 %v2973_v7 }
 0x106   : > { %1959 = vmatpush1.bf16.msra.mxu0 %v2968_v8  ;;  %2123 = vmatpush1.bf16.msra.mxu1 %v2971_v9 }
 0x107   : > { %1960 = vmatprep.subr.bf16.mxu0 %v2976_v10  ;;  %2124 = vmatprep.subr.bf16.mxu1 %v2979_v11 }
 0x10a   : > { %1961 = vmatpush1.bf16.msra.mxu0 %v2974_v12  ;;  %2125 = vmatpush1.bf16.msra.mxu1 %v2977_v13 }
 0x10b   : > { %1962 = vmatprep.subr.bf16.mxu0 %v2982_v14  ;;  %2126 = vmatprep.subr.bf16.mxu1 %v2985_v15 }
 0x10e   : > { %1963 = vmatpush1.bf16.msra.mxu0 %v2980_v17  ;;  %2127 = vmatpush1.bf16.msra.mxu1 %v2983_v18 }
 0x10f   : > { %1964 = vmatprep.subr.bf16.mxu0 %v2988_v19  ;;  %2128 = vmatprep.subr.bf16.mxu1 %v2991_v20 }
 0x112   : > { %1965 = vmatpush1.bf16.msra.mxu0 %v2986_v23  ;;  %2129 = vmatpush1.bf16.msra.mxu1 %v2989_v24 }
 0x113   : > { %1966 = vmatprep.subr.bf16.mxu0 %v2994_v25  ;;  %2130 = vmatprep.subr.bf16.mxu1 %v2997_v26 }
 0x116   : > { %1967 = vmatpush1.bf16.msra.mxu0 %v2992_v27  ;;  %2131 = vmatpush1.bf16.msra.mxu1 %v2995_v28 }
 0x119   : > { %1969 = vmatmul.mubr.bf16.vlgmr.msra.gmra.mrb[0].mxu0 %v522_v29  ;;  %2133 = vmatmul.mubr.bf16.vlgmr.msra.gmra.mrb[0].mxu1 %v522_v29 }
 0x1ec   : > { %v1970_v32 = vpop.f32.mrb[0].mxu0  ;;  %v2134_v33 = vpop.f32.mrb[0].mxu1 }
 0x1ed   : > { %v1972_v35 = vpop.f32.mrb[1].mxu0  ;;  %v2136_v21 = vpop.f32.mrb[1].mxu1 }
 0x1ee   : > { %v2145_v36 = vcombine.low %v1970_v32, %v1972_v35  ;;  %v2146_v37 = vcombine.low %v2134_v33, %v2136_v21  ;;  %v1974_v38 = vpop.f32.mrb[2].mxu0  ;;  %v2138_v39 = vpop.f32.mrb[2].mxu1 }
 0x1ef   : > { %v1975_v40 = vpop.f32.mrb[3].mxu0  ;;  %v2139_v41 = vpop.f32.mrb[3].mxu1 }
 0x1f0   : > { %v2153_v22 = vrot.slane %v2145_v36, %v2152_v34  ;;  %v2160_v42 = vrot.slane %v2146_v37, %v2152_v34  ;;  %2168 = sbr.rel (%p2549_p7) target bundleno = 515 (0x203), region = 40 }
 0x1f2   : > { %v2161_v45 = vcombine.low %v2153_v22, %v2160_v42 }
 0x1f4   : > { %v2163_v46 = vadd.f32 %v2161_v45, %v217_v43 }
 0x1f6   : > { %2164 = vst [vmem:[#allocation2] sm:$0xff] %v2163_v46 }
 0x1fd   : > { %v2169_v60 = vld [vmem:[#allocation2] sm:$0xff] }
 0x1fe   : > { %v2206_v62 = vadd.f32 %v2204_v61, %v2169_v60 }
 0x200   : > { %v2207_v63 = vmax.f32 %v2206_v62, 0.0 }
 0x202   : > { %2208 = vst [vmem:[#allocation3] sm:$0xff] %v2207_v63 }
 0x203 PF: > { %p3412_p8 = scmp.eq.s32.totalorder %s2284_s15, 7  ;;  %s3055_s4 = smov [#allocation3]  }
 0x204   : > { %s2219_s5 = sshll.u32 %s3055_s4, 4  ;;  %s2220_s5 = int_to_ptr.vmem [resolvable:$true] %s2219_s5 }
 0x205   : > { %s2998_s6 = scalar_lea.vmem %s2220_s5, 128  ;;  %p3005_p12 = scmp.lt.s32.totalorder %s2220_s5, %s2220_s5 }
 0x206   : > { %p2999_p9 = scmp.ne.s32.totalorder %s2220_s5, %s2998_s6  ;;  %p3006_p13 = scmp.lt.s32.totalorder %s2998_s6, %s2998_s6 }
 0x208   : > { %p3000_p10 = pnand %p2999_p9, %p3412_p8  ;;  %p3007_p0 = por %p3006_p13, %p3005_p12 }
 0x20a   : > { %p3001_p11 = pneg %p3000_p10 }
 0x20c   : > { %p3008_p1 = pnand %p3007_p0, %p3001_p11 }
 0x20e   : > { %3011 = shalt.err (!%p3008_p1)
}
 0x20f   : > { %s3012_s9 = scalar_lea.hbm %s3450_s3, 128 }
 0x210   : > { %p3013_p2 = scmp.ne.s32.totalorder %s3450_s3, %s3012_s9  ;;  %p3018_p5 = scmp.lt.u32.totalorder %s3012_s9, %s3450_s3 }
 0x212   : > { %p3014_p3 = pnand %p3013_p2, %p3412_p8 }
 0x214   : > { %p3015_p4 = pneg %p3014_p3 }
 0x216   : > { %p3020_p6 = pnand %p3018_p5, %p3015_p4 }
 0x218   : > { %3023 = shalt.err (!%p3020_p6)
}
 0x219   : > { %2580 = dma.vmem_to_hbm [thread:$0]  (%p3412_p8), %s2220_s5, 128, %s3450_s3, [#allocation4]  }
 0x21a   : > { %3037 = dma.done.wait (%p3412_p8), [#allocation4], 128  }
 0x21b   : > { %3039 = vsyncadd (%p3412_p8), [#allocation4], 4294967168 }
 0x21c PF: > { %s14_s14 = sadd.s32 1, %s3050_s14   ;;  %s3452_s12 = smov %s3046_s13 }
 0x21d   : > { %p11_p7 = scmp.ge.s32.totalorder %s14_s14, 10   ;;  %s3453_s13 = smov %s3455_s16 }
 0x21f   :  { %13 = sbr.rel (!%p11_p7) target bundleno = 2 (0x2), region = 71 }
 0x226   :  { %2232 = vsyncpa [#allocation4], 1 }
 0x227   :  { %2234 = vsyncpa [#allocation4 + $0x1], 1 }

</bundles_post_ra>
